<compile_context>
chip_gen: v7x
topology: tpu7x:2x2x1
jax: 0.10.0
libtpu: 0.0.40
codegen_flags: <defaults>
</compile_context>

<pallas_src>
import functools

import jax
import jax.numpy as jnp
import numpy as np
from jax import lax
from jax.experimental import pallas as pl
from jax.experimental.pallas import tpu as pltpu

IN_DIM = 300      # module default in_dim
HIDDEN = 128      # module default hiddem_dim  -> sent_emb dim 256
VOCAB = 27297     # module embedding vocab size
CHUNK_T = 32      # max timesteps per streamed time chunk
MAX_BT = 128      # max batch rows per grid tile


def bilstm_kernel(gxf_ref, gxb_ref, whh_ref, len_ref, out_ref,
                  h_ref, cf_ref, cb_ref, *, hidden, chunk, total_t):
    """One grid step = one (batch_tile, time_chunk).

    gxf_ref : (CT, BT, 4H) bf16  forward input-gate projections (+bias).
    gxb_ref : (CT, BT, 4H) bf16  backward projections, pre-reversed in time.
    whh_ref : (2H, 8H) f32       block-diagonal recurrent weight
                                 (top-left W_hh_f^T, bottom-right W_hh_b^T).
    len_ref : (BT, 1) int32      sequence lengths (0 for padded batch rows).
    out_ref : (BT, 2H) f32       [h_fwd_final | h_bwd_final].
    h_ref   : (BT, 2H) f32 VMEM scratch — h state for both directions.
    cf_ref  : (BT, H)  f32 VMEM scratch — forward cell state.
    cb_ref  : (BT, H)  f32 VMEM scratch — backward cell state.
    """
    H = hidden
    tc = pl.program_id(1)                # time-chunk index ("arbitrary" axis)

    @pl.when(tc == 0)
    def _init():
        h_ref[...] = jnp.zeros_like(h_ref)
        cf_ref[...] = jnp.zeros_like(cf_ref)
        cb_ref[...] = jnp.zeros_like(cb_ref)

    w_bd = whh_ref[...]                  # (2H, 8H) — hoisted out of the loop
    lens = len_ref[...]                  # (BT, 1) int32
    t0 = tc * chunk

    def cell(gates, c):
        i = jax.nn.sigmoid(gates[:, 0 * H:1 * H])
        f = jax.nn.sigmoid(gates[:, 1 * H:2 * H])
        g = jnp.tanh(gates[:, 2 * H:3 * H])
        o = jax.nn.sigmoid(gates[:, 3 * H:4 * H])
        c_new = f * c + i * g
        return o * jnp.tanh(c_new), c_new

    def step(s, carry):
        h_cat = h_ref[...]               # (BT, 2H) current state from scratch
        c_f = cf_ref[...]
        c_b = cb_ref[...]

        t = t0 + s                       # global forward timestep
        gx_f = gxf_ref[s].astype(jnp.float32)     # (BT, 4H)
        gx_b = gxb_ref[s].astype(jnp.float32)     # (BT, 4H)

        # One fused recurrent matmul for both directions (block-diag weight).
        # TODO(synk): on v5e (128x128 MXU) un-fuse into two (H,4H) matmuls to
        # skip the all-zero weight tiles of the block-diagonal form.
        g_rec = jnp.dot(h_cat, w_bd, preferred_element_type=jnp.float32)

        h_f_new, c_f_new = cell(g_rec[:, :4 * H] + gx_f, c_f)
        h_b_new, c_b_new = cell(g_rec[:, 4 * H:] + gx_b, c_b)

        m_f = t < lens                               # (BT, 1) valid fwd step
        m_b = (total_t - 1 - t) < lens               # (BT, 1) valid bwd step

        h_ref[:, :H] = jnp.where(m_f, h_f_new, h_cat[:, :H])
        h_ref[:, H:] = jnp.where(m_b, h_b_new, h_cat[:, H:])
        cf_ref[...] = jnp.where(m_f, c_f_new, c_f)
        cb_ref[...] = jnp.where(m_b, c_b_new, c_b)
        return carry

    lax.fori_loop(0, chunk, step, 0,
                  unroll=(True if chunk <= 8 else 4))

    @pl.when(tc == pl.num_programs(1) - 1)
    def _finalize():
        out_ref[...] = h_ref[...]


def bilstm_final_hidden(gx_f, gx_b_rev, w_bd, lengths, *, chunk, bt):
    """gx_f/gx_b_rev: (Tp, Bp, 4H) bf16, w_bd: (2H, 8H) f32, lengths: (Bp,)."""
    Tp, Bp, G4 = gx_f.shape
    H = G4 // 4
    n_tc = Tp // chunk
    n_bt = Bp // bt
    len2d = lengths.astype(jnp.int32).reshape(Bp, 1)

    kernel = functools.partial(bilstm_kernel, hidden=H, chunk=chunk, total_t=Tp)

    return pl.pallas_call(
        kernel,
        out_shape=jax.ShapeDtypeStruct((Bp, 2 * H), jnp.float32),
        grid_spec=pltpu.PrefetchScalarGridSpec(
            num_scalar_prefetch=0,
            grid=(n_bt, n_tc),
            in_specs=[
                pl.BlockSpec((chunk, bt, 4 * H), lambda b, t: (t, b, 0)),  # gx_f
                pl.BlockSpec((chunk, bt, 4 * H), lambda b, t: (t, b, 0)),  # gx_b_rev
                pl.BlockSpec((2 * H, 8 * H), lambda b, t: (0, 0)),         # w_bd (resident)
                pl.BlockSpec((bt, 1), lambda b, t: (b, 0)),                # lengths
            ],
            out_specs=pl.BlockSpec((bt, 2 * H), lambda b, t: (b, 0)),
            scratch_shapes=[
                pltpu.VMEM((bt, 2 * H), jnp.float32),   # h state (both dirs)
                pltpu.VMEM((bt, H), jnp.float32),       # c forward
                pltpu.VMEM((bt, H), jnp.float32),       # c backward
            ],
        ),
        compiler_params=pltpu.CompilerParams(
            dimension_semantics=("parallel", "arbitrary"),
            vmem_limit_bytes=40 * 1024 * 1024,
        ),
    )(gx_f, gx_b_rev, w_bd, len2d)


def init_params(key):
    H, D = HIDDEN, IN_DIM
    k = 1.0 / np.sqrt(H)
    keys = jax.random.split(key, 9)
    u = lambda kk, shape: jax.random.uniform(kk, shape, jnp.float32, -k, k)
    return {
        "embedding": jax.random.normal(keys[0], (VOCAB, D), jnp.float32) * 0.1,
        "w_ih_f": u(keys[1], (4 * H, D)),
        "w_hh_f": u(keys[2], (4 * H, H)),
        "b_ih_f": u(keys[3], (4 * H,)),
        "b_hh_f": u(keys[4], (4 * H,)),
        "w_ih_b": u(keys[5], (4 * H, D)),
        "w_hh_b": u(keys[6], (4 * H, H)),
        "b_ih_b": u(keys[7], (4 * H,)),
        "b_hh_b": u(keys[8], (4 * H,)),
    }


@jax.jit
def encoder_forward(tokens, lengths, params):
    H = HIDDEN
    # embedding lookup (gather) is glue in plain JAX
    emb = params["embedding"][tokens]                 # (B, T, D)
    # TODO(synk): nn.Dropout(0.2) is identity in eval mode; not applied here.
    B, T, D = emb.shape
    x_tbd = jnp.transpose(emb, (1, 0, 2))             # (T, B, D) time-major

    # batch tiling: pad to full sublane groups; tile at most MAX_BT rows/core
    if B <= MAX_BT:
        Bp = max(8, -(-B // 8) * 8)
        bt = Bp
    else:
        bt = MAX_BT
        Bp = -(-B // bt) * bt

    # time chunking: minimal padding, chunk length <= CHUNK_T
    n_tc = -(-T // CHUNK_T)
    ct = -(-T // n_tc)
    Tp = n_tc * ct

    x_tbd = jnp.pad(x_tbd, ((0, Tp - T), (0, Bp - B), (0, 0)))
    lens_p = jnp.pad(lengths.astype(jnp.int32), (0, Bp - B))  # padded rows: len 0

    # --- hoisted input projection: one big (Tp*Bp, D) x (D, 8H) matmul ---
    w_ih_cat = jnp.concatenate(
        [params["w_ih_f"].T, params["w_ih_b"].T], axis=-1)           # (D, 8H)
    b_cat = jnp.concatenate(
        [params["b_ih_f"] + params["b_hh_f"],
         params["b_ih_b"] + params["b_hh_b"]])                       # (8H,)
    gates = (x_tbd.reshape(Tp * Bp, D) @ w_ih_cat + b_cat).reshape(Tp, Bp, 8 * H)
    # TODO(synk): on v5e, fuse this projection into the kernel (stream emb
    # chunks and compute gates one chunk ahead) to skip the gates HBM round-trip.

    # direction-split, backward pre-reversed over padded time, bf16 streaming
    gx_f = gates[:, :, :4 * H].astype(jnp.bfloat16)
    gx_b_rev = gates[::-1, :, 4 * H:].astype(jnp.bfloat16)

    # --- block-diagonal recurrent weight: fwd/bwd fused into one matmul ---
    w_bd = jnp.zeros((2 * H, 8 * H), jnp.float32)
    w_bd = w_bd.at[:H, :4 * H].set(params["w_hh_f"].T)
    w_bd = w_bd.at[H:, 4 * H:].set(params["w_hh_b"].T)

    sent_emb = bilstm_final_hidden(gx_f, gx_b_rev, w_bd, lens_p, chunk=ct, bt=bt)
    return sent_emb[:B]                                # (B, 256)


# ----- pure-JAX reference for a sanity check -----
def _ref_dir(x, lengths, wih, whh, b, reverse):
    B, T, D = x.shape
    H = HIDDEN
    ts = jnp.arange(T)
    if reverse:
        ts = ts[::-1]

    def step(carry, t):
        h, c = carry
        x_t = x[:, t, :]
        gates = x_t @ wih + h @ whh + b
        i = jax.nn.sigmoid(gates[:, :H])
        f = jax.nn.sigmoid(gates[:, H:2 * H])
        g = jnp.tanh(gates[:, 2 * H:3 * H])
        o = jax.nn.sigmoid(gates[:, 3 * H:])
        c_new = f * c + i * g
        h_new = o * jnp.tanh(c_new)
        m = (t < lengths).astype(jnp.float32)[:, None]
        return (m * h_new + (1 - m) * h, m * c_new + (1 - m) * c), None

    (h, _), _ = jax.lax.scan(step, (jnp.zeros((B, H)), jnp.zeros((B, H))), ts)
    return h


def encoder_reference(tokens, lengths, params):
    emb = params["embedding"][tokens]
    h_f = _ref_dir(emb, lengths, params["w_ih_f"].T, params["w_hh_f"].T,
                   params["b_ih_f"] + params["b_hh_f"], reverse=False)
    h_b = _ref_dir(emb, lengths, params["w_ih_b"].T, params["w_hh_b"].T,
                   params["b_ih_b"] + params["b_hh_b"], reverse=True)
    return jnp.concatenate([h_f, h_b], axis=-1)


if __name__ == "__main__":
    key = jax.random.PRNGKey(0)
    pkey, tkey1, tkey2 = jax.random.split(key, 3)
    params = init_params(pkey)

    # Test 1: small single-chunk case (B=2, T=8), like the original spec usage.
    B1, T1 = 2, 8
    tok1 = jax.random.randint(tkey1, (B1, T1), 0, VOCAB, dtype=jnp.int32)
    len1 = jnp.array([8, 5], dtype=jnp.int32)       # sorted, like pack_padded_sequence
    out1 = jax.block_until_ready(encoder_forward(tok1, len1, params))
    ref1 = jax.block_until_ready(encoder_reference(tok1, len1, params))
    np.testing.assert_allclose(np.asarray(out1), np.asarray(ref1),
                               rtol=1e-2, atol=1e-2)
    assert out1.shape == (B1, 256)

    # Test 2: exercises multi-chunk time streaming (B=3, T=40 -> 2 chunks of 20).
    B2, T2 = 3, 40
    tok2 = jax.random.randint(tkey2, (B2, T2), 0, VOCAB, dtype=jnp.int32)
    len2 = jnp.array([40, 33, 17], dtype=jnp.int32)
    out2 = jax.block_until_ready(encoder_forward(tok2, len2, params))
    ref2 = jax.block_until_ready(encoder_reference(tok2, len2, params))
    np.testing.assert_allclose(np.asarray(out2), np.asarray(ref2),
                               rtol=1e-2, atol=1e-2)
    assert out2.shape == (B2, 256)

    print("KERNEL_OK")
</pallas_src>

<mosaic_0001>
module attributes {stable_mosaic.version = 11 : i64} {
  func.func @bilstm_kernel(%arg0: i32, %arg1: i32, %arg2: memref<8x8x512xbf16, #tpu.memory_space<vmem>>, %arg3: memref<8x8x512xbf16, #tpu.memory_space<vmem>>, %arg4: memref<256x1024xf32, #tpu.memory_space<vmem>>, %arg5: memref<8x1xi32, #tpu.memory_space<vmem>>, %arg6: memref<8x256xf32, #tpu.memory_space<vmem>>, %arg7: memref<8x256xf32, #tpu.memory_space<vmem>>, %arg8: memref<8x128xf32, #tpu.memory_space<vmem>>, %arg9: memref<8x128xf32, #tpu.memory_space<vmem>>) attributes {dimension_semantics = [#tpu.dimension_semantics<parallel>, #tpu.dimension_semantics<arbitrary>], iteration_bounds = array<i64: 1, 1>, scalar_prefetch = 0 : i64, scratch_operands = 3 : i64, tpu.core_type = #tpu.core_type<tc>, window_params = [{transform_indices = @transform_0, window_bounds = array<i64: 8, 8, 512>}, {transform_indices = @transform_1, window_bounds = array<i64: 8, 8, 512>}, {pipeline_mode = #tpu.pipeline_mode<synchronous>, transform_indices = @transform_2, window_bounds = array<i64: 256, 1024>}, {transform_indices = @transform_3, window_bounds = array<i64: 8, 1>}, {transform_indices = @transform_4, window_bounds = array<i64: 8, 256>}]} {
    %c0_i32 = arith.constant 0 : i32
    %0 = arith.cmpi eq, %arg1, %c0_i32 : i32
    %1 = arith.extui %0 : i1 to i32
    %c0_i32_0 = arith.constant 0 : i32
    %2 = arith.cmpi ne, %1, %c0_i32_0 : i32
    scf.if %2 {
      %cst_214 = arith.constant 0.000000e+00 : f32
      %729 = vector.broadcast %cst_214 : f32 to vector<8x256xf32>
      %c0_215 = arith.constant 0 : index
      %c0_216 = arith.constant 0 : index
      %730 = vector.load %arg7[%c0_215, %c0_216] : memref<8x256xf32, #tpu.memory_space<vmem>>, vector<8x256xf32>
      tpu.vector_store %arg7[%c0_215, %c0_216], %729 {strides = array<i32>} : memref<8x256xf32, #tpu.memory_space<vmem>>, vector<8x256xf32>,
      %cst_217 = arith.constant 0.000000e+00 : f32
      %731 = vector.broadcast %cst_217 : f32 to vector<8x128xf32>
      %c0_218 = arith.constant 0 : index
      %c0_219 = arith.constant 0 : index
      %732 = vector.load %arg8[%c0_218, %c0_219] : memref<8x128xf32, #tpu.memory_space<vmem>>, vector<8x128xf32>
      tpu.vector_store %arg8[%c0_218, %c0_219], %731 {strides = array<i32>} : memref<8x128xf32, #tpu.memory_space<vmem>>, vector<8x128xf32>,
      %cst_220 = arith.constant 0.000000e+00 : f32
      %733 = vector.broadcast %cst_220 : f32 to vector<8x128xf32>
      %c0_221 = arith.constant 0 : index
      %c0_222 = arith.constant 0 : index
      %734 = vector.load %arg9[%c0_221, %c0_222] : memref<8x128xf32, #tpu.memory_space<vmem>>, vector<8x128xf32>
      tpu.vector_store %arg9[%c0_221, %c0_222], %733 {strides = array<i32>} : memref<8x128xf32, #tpu.memory_space<vmem>>, vector<8x128xf32>,
    } else {
    }
    %c0 = arith.constant 0 : index
    %c0_1 = arith.constant 0 : index
    %3 = vector.load %arg4[%c0, %c0_1] : memref<256x1024xf32, #tpu.memory_space<vmem>>, vector<256x1024xf32>
    %c0_2 = arith.constant 0 : index
    %c0_3 = arith.constant 0 : index
    %4 = vector.load %arg5[%c0_2, %c0_3] : memref<8x1xi32, #tpu.memory_space<vmem>>, vector<8x1xi32>
    %c8_i32 = arith.constant 8 : i32
    %5 = arith.muli %arg1, %c8_i32 : i32
    %c0_i32_4 = arith.constant 0 : i32
    %c0_5 = arith.constant 0 : index
    %c0_6 = arith.constant 0 : index
    %6 = vector.load %arg7[%c0_5, %c0_6] : memref<8x256xf32, #tpu.memory_space<vmem>>, vector<8x256xf32>
    %c0_7 = arith.constant 0 : index
    %c0_8 = arith.constant 0 : index
    %7 = vector.load %arg8[%c0_7, %c0_8] : memref<8x128xf32, #tpu.memory_space<vmem>>, vector<8x128xf32>
    %c0_9 = arith.constant 0 : index
    %c0_10 = arith.constant 0 : index
    %8 = vector.load %arg9[%c0_9, %c0_10] : memref<8x128xf32, #tpu.memory_space<vmem>>, vector<8x128xf32>
    %9 = arith.addi %5, %c0_i32_4 : i32
    %10 = arith.index_cast %c0_i32_4 : i32 to index
    %c0_11 = arith.constant 0 : index
    %c0_12 = arith.constant 0 : index
    %11 = vector.load %arg2[%10, %c0_11, %c0_12] : memref<8x8x512xbf16, #tpu.memory_space<vmem>>, vector<1x8x512xbf16>
    %12 = vector.shape_cast %11 : vector<1x8x512xbf16> to vector<8x512xbf16>
    %13 = arith.extf %12 : vector<8x512xbf16> to vector<8x512xf32>
    %14 = arith.index_cast %c0_i32_4 : i32 to index
    %c0_13 = arith.constant 0 : index
    %c0_14 = arith.constant 0 : index
    %15 = vector.load %arg3[%14, %c0_13, %c0_14] : memref<8x8x512xbf16, #tpu.memory_space<vmem>>, vector<1x8x512xbf16>
    %16 = vector.shape_cast %15 : vector<1x8x512xbf16> to vector<8x512xbf16>
    %17 = arith.extf %16 : vector<8x512xbf16> to vector<8x512xf32>
    %cst = arith.constant dense<0.000000e+00> : vector<8x1024xf32>
    %18 = tpu.matmul %6, %3, %cst {dimension_numbers = #tpu.dot_dimension_numbers<[1], [0], [0], [1], [0, 0, 1, 1], [], []>} : vector<8x256xf32>, vector<256x1024xf32>, vector<8x1024xf32> -> vector<8x1024xf32>
    %19 = vector.extract_strided_slice %18 {offsets = [0, 0], sizes = [8, 512], strides = [1, 1]} : vector<8x1024xf32> to vector<8x512xf32>
    %20 = arith.addf %19, %13 : vector<8x512xf32>
    %21 = vector.extract_strided_slice %20 {offsets = [0, 0], sizes = [8, 128], strides = [1, 1]} : vector<8x512xf32> to vector<8x128xf32>
    %22 = arith.negf %21 : vector<8x128xf32>
    %23 = math.exp %22 : vector<8x128xf32>
    %cst_15 = arith.constant 1.000000e+00 : f32
    %24 = vector.broadcast %cst_15 : f32 to vector<8x128xf32>
    %25 = arith.addf %24, %23 : vector<8x128xf32>
    %26 = arith.divf %24, %25 : vector<8x128xf32>
    %27 = vector.extract_strided_slice %20 {offsets = [0, 128], sizes = [8, 128], strides = [1, 1]} : vector<8x512xf32> to vector<8x128xf32>
    %28 = arith.negf %27 : vector<8x128xf32>
    %29 = math.exp %28 : vector<8x128xf32>
    %cst_16 = arith.constant 1.000000e+00 : f32
    %30 = vector.broadcast %cst_16 : f32 to vector<8x128xf32>
    %31 = arith.addf %30, %29 : vector<8x128xf32>
    %32 = arith.divf %30, %31 : vector<8x128xf32>
    %33 = vector.extract_strided_slice %20 {offsets = [0, 256], sizes = [8, 128], strides = [1, 1]} : vector<8x512xf32> to vector<8x128xf32>
    %34 = math.tanh %33 : vector<8x128xf32>
    %35 = vector.extract_strided_slice %20 {offsets = [0, 384], sizes = [8, 128], strides = [1, 1]} : vector<8x512xf32> to vector<8x128xf32>
    %36 = arith.negf %35 : vector<8x128xf32>
    %37 = math.exp %36 : vector<8x128xf32>
    %cst_17 = arith.constant 1.000000e+00 : f32
    %38 = vector.broadcast %cst_17 : f32 to vector<8x128xf32>
    %39 = arith.addf %38, %37 : vector<8x128xf32>
    %40 = arith.divf %38, %39 : vector<8x128xf32>
    %41 = arith.mulf %32, %7 : vector<8x128xf32>
    %42 = arith.mulf %26, %34 : vector<8x128xf32>
    %43 = arith.addf %41, %42 : vector<8x128xf32>
    %44 = math.tanh %43 : vector<8x128xf32>
    %45 = arith.mulf %40, %44 : vector<8x128xf32>
    %46 = vector.extract_strided_slice %18 {offsets = [0, 512], sizes = [8, 512], strides = [1, 1]} : vector<8x1024xf32> to vector<8x512xf32>
    %47 = arith.addf %46, %17 : vector<8x512xf32>
    %48 = vector.extract_strided_slice %47 {offsets = [0, 0], sizes = [8, 128], strides = [1, 1]} : vector<8x512xf32> to vector<8x128xf32>
    %49 = arith.negf %48 : vector<8x128xf32>
    %50 = math.exp %49 : vector<8x128xf32>
    %cst_18 = arith.constant 1.000000e+00 : f32
    %51 = vector.broadcast %cst_18 : f32 to vector<8x128xf32>
    %52 = arith.addf %51, %50 : vector<8x128xf32>
    %53 = arith.divf %51, %52 : vector<8x128xf32>
    %54 = vector.extract_strided_slice %47 {offsets = [0, 128], sizes = [8, 128], strides = [1, 1]} : vector<8x512xf32> to vector<8x128xf32>
    %55 = arith.negf %54 : vector<8x128xf32>
    %56 = math.exp %55 : vector<8x128xf32>
    %cst_19 = arith.constant 1.000000e+00 : f32
    %57 = vector.broadcast %cst_19 : f32 to vector<8x128xf32>
    %58 = arith.addf %57, %56 : vector<8x128xf32>
    %59 = arith.divf %57, %58 : vector<8x128xf32>
    %60 = vector.extract_strided_slice %47 {offsets = [0, 256], sizes = [8, 128], strides = [1, 1]} : vector<8x512xf32> to vector<8x128xf32>
    %61 = math.tanh %60 : vector<8x128xf32>
    %62 = vector.extract_strided_slice %47 {offsets = [0, 384], sizes = [8, 128], strides = [1, 1]} : vector<8x512xf32> to vector<8x128xf32>
    %63 = arith.negf %62 : vector<8x128xf32>
    %64 = math.exp %63 : vector<8x128xf32>
    %cst_20 = arith.constant 1.000000e+00 : f32
    %65 = vector.broadcast %cst_20 : f32 to vector<8x128xf32>
    %66 = arith.addf %65, %64 : vector<8x128xf32>
    %67 = arith.divf %65, %66 : vector<8x128xf32>
    %68 = arith.mulf %59, %8 : vector<8x128xf32>
    %69 = arith.mulf %53, %61 : vector<8x128xf32>
    %70 = arith.addf %68, %69 : vector<8x128xf32>
    %71 = math.tanh %70 : vector<8x128xf32>
    %72 = arith.mulf %67, %71 : vector<8x128xf32>
    %73 = vector.broadcast %9 : i32 to vector<8x1xi32>
    %74 = arith.cmpi slt, %73, %4 : vector<8x1xi32>
    %c7_i32 = arith.constant 7 : i32
    %75 = arith.subi %c7_i32, %9 : i32
    %76 = vector.broadcast %75 : i32 to vector<8x1xi32>
    %77 = arith.cmpi slt, %76, %4 : vector<8x1xi32>
    %78 = vector.extract_strided_slice %6 {offsets = [0, 0], sizes = [8, 128], strides = [1, 1]} : vector<8x256xf32> to vector<8x128xf32>
    %79 = vector.shape_cast %74 : vector<8x1xi1> to vector<8x1xi1>
    %80 = vector.broadcast %79 : vector<8x1xi1> to vector<8x128xi1>
    %81 = arith.select %80, %45, %78 : vector<8x128xi1>, vector<8x128xf32>
    %c0_21 = arith.constant 0 : index
    %c0_22 = arith.constant 0 : index
    %82 = vector.load %arg7[%c0_21, %c0_22] : memref<8x256xf32, #tpu.memory_space<vmem>>, vector<8x128xf32>
    tpu.vector_store %arg7[%c0_21, %c0_22], %81 {strides = array<i32>} : memref<8x256xf32, #tpu.memory_space<vmem>>, vector<8x128xf32>,
    %83 = vector.extract_strided_slice %6 {offsets = [0, 128], sizes = [8, 128], strides = [1, 1]} : vector<8x256xf32> to vector<8x128xf32>
    %84 = vector.shape_cast %77 : vector<8x1xi1> to vector<8x1xi1>
    %85 = vector.broadcast %84 : vector<8x1xi1> to vector<8x128xi1>
    %86 = arith.select %85, %72, %83 : vector<8x128xi1>, vector<8x128xf32>
    %c0_23 = arith.constant 0 : index
    %c128 = arith.constant 128 : index
    %87 = vector.load %arg7[%c0_23, %c128] : memref<8x256xf32, #tpu.memory_space<vmem>>, vector<8x128xf32>
    tpu.vector_store %arg7[%c0_23, %c128], %86 {strides = array<i32>} : memref<8x256xf32, #tpu.memory_space<vmem>>, vector<8x128xf32>,
    %88 = vector.shape_cast %74 : vector<8x1xi1> to vector<8x1xi1>
    %89 = vector.broadcast %88 : vector<8x1xi1> to vector<8x128xi1>
    %90 = arith.select %89, %43, %7 : vector<8x128xi1>, vector<8x128xf32>
    %c0_24 = arith.constant 0 : index
    %c0_25 = arith.constant 0 : index
    %91 = vector.load %arg8[%c0_24, %c0_25] : memref<8x128xf32, #tpu.memory_space<vmem>>, vector<8x128xf32>
    tpu.vector_store %arg8[%c0_24, %c0_25], %90 {strides = array<i32>} : memref<8x128xf32, #tpu.memory_space<vmem>>, vector<8x128xf32>,
    %92 = vector.shape_cast %77 : vector<8x1xi1> to vector<8x1xi1>
    %93 = vector.broadcast %92 : vector<8x1xi1> to vector<8x128xi1>
    %94 = arith.select %93, %70, %8 : vector<8x128xi1>, vector<8x128xf32>
    %c0_26 = arith.constant 0 : index
    %c0_27 = arith.constant 0 : index
    %95 = vector.load %arg9[%c0_26, %c0_27] : memref<8x128xf32, #tpu.memory_space<vmem>>, vector<8x128xf32>
    tpu.vector_store %arg9[%c0_26, %c0_27], %94 {strides = array<i32>} : memref<8x128xf32, #tpu.memory_space<vmem>>, vector<8x128xf32>,
    %c1_i32 = arith.constant 1 : i32
    %c0_28 = arith.constant 0 : index
    %c0_29 = arith.constant 0 : index
    %96 = vector.load %arg7[%c0_28, %c0_29] : memref<8x256xf32, #tpu.memory_space<vmem>>, vector<8x256xf32>
    %c0_30 = arith.constant 0 : index
    %c0_31 = arith.constant 0 : index
    %97 = vector.load %arg8[%c0_30, %c0_31] : memref<8x128xf32, #tpu.memory_space<vmem>>, vector<8x128xf32>
    %c0_32 = arith.constant 0 : index
    %c0_33 = arith.constant 0 : index
    %98 = vector.load %arg9[%c0_32, %c0_33] : memref<8x128xf32, #tpu.memory_space<vmem>>, vector<8x128xf32>
    %99 = arith.addi %5, %c1_i32 : i32
    %100 = arith.index_cast %c1_i32 : i32 to index
    %c0_34 = arith.constant 0 : index
    %c0_35 = arith.constant 0 : index
    %101 = vector.load %arg2[%100, %c0_34, %c0_35] : memref<8x8x512xbf16, #tpu.memory_space<vmem>>, vector<1x8x512xbf16>
    %102 = vector.shape_cast %101 : vector<1x8x512xbf16> to vector<8x512xbf16>
    %103 = arith.extf %102 : vector<8x512xbf16> to vector<8x512xf32>
    %104 = arith.index_cast %c1_i32 : i32 to index
    %c0_36 = arith.constant 0 : index
    %c0_37 = arith.constant 0 : index
    %105 = vector.load %arg3[%104, %c0_36, %c0_37] : memref<8x8x512xbf16, #tpu.memory_space<vmem>>, vector<1x8x512xbf16>
    %106 = vector.shape_cast %105 : vector<1x8x512xbf16> to vector<8x512xbf16>
    %107 = arith.extf %106 : vector<8x512xbf16> to vector<8x512xf32>
    %cst_38 = arith.constant dense<0.000000e+00> : vector<8x1024xf32>
    %108 = tpu.matmul %96, %3, %cst_38 {dimension_numbers = #tpu.dot_dimension_numbers<[1], [0], [0], [1], [0, 0, 1, 1], [], []>} : vector<8x256xf32>, vector<256x1024xf32>, vector<8x1024xf32> -> vector<8x1024xf32>
    %109 = vector.extract_strided_slice %108 {offsets = [0, 0], sizes = [8, 512], strides = [1, 1]} : vector<8x1024xf32> to vector<8x512xf32>
    %110 = arith.addf %109, %103 : vector<8x512xf32>
    %111 = vector.extract_strided_slice %110 {offsets = [0, 0], sizes = [8, 128], strides = [1, 1]} : vector<8x512xf32> to vector<8x128xf32>
    %112 = arith.negf %111 : vector<8x128xf32>
    %113 = math.exp %112 : vector<8x128xf32>
    %cst_39 = arith.constant 1.000000e+00 : f32
    %114 = vector.broadcast %cst_39 : f32 to vector<8x128xf32>
    %115 = arith.addf %114, %113 : vector<8x128xf32>
    %116 = arith.divf %114, %115 : vector<8x128xf32>
    %117 = vector.extract_strided_slice %110 {offsets = [0, 128], sizes = [8, 128], strides = [1, 1]} : vector<8x512xf32> to vector<8x128xf32>
    %118 = arith.negf %117 : vector<8x128xf32>
    %119 = math.exp %118 : vector<8x128xf32>
    %cst_40 = arith.constant 1.000000e+00 : f32
    %120 = vector.broadcast %cst_40 : f32 to vector<8x128xf32>
    %121 = arith.addf %120, %119 : vector<8x128xf32>
    %122 = arith.divf %120, %121 : vector<8x128xf32>
    %123 = vector.extract_strided_slice %110 {offsets = [0, 256], sizes = [8, 128], strides = [1, 1]} : vector<8x512xf32> to vector<8x128xf32>
    %124 = math.tanh %123 : vector<8x128xf32>
    %125 = vector.extract_strided_slice %110 {offsets = [0, 384], sizes = [8, 128], strides = [1, 1]} : vector<8x512xf32> to vector<8x128xf32>
    %126 = arith.negf %125 : vector<8x128xf32>
    %127 = math.exp %126 : vector<8x128xf32>
    %cst_41 = arith.constant 1.000000e+00 : f32
    %128 = vector.broadcast %cst_41 : f32 to vector<8x128xf32>
    %129 = arith.addf %128, %127 : vector<8x128xf32>
    %130 = arith.divf %128, %129 : vector<8x128xf32>
    %131 = arith.mulf %122, %97 : vector<8x128xf32>
    %132 = arith.mulf %116, %124 : vector<8x128xf32>
    %133 = arith.addf %131, %132 : vector<8x128xf32>
    %134 = math.tanh %133 : vector<8x128xf32>
    %135 = arith.mulf %130, %134 : vector<8x128xf32>
    %136 = vector.extract_strided_slice %108 {offsets = [0, 512], sizes = [8, 512], strides = [1, 1]} : vector<8x1024xf32> to vector<8x512xf32>
    %137 = arith.addf %136, %107 : vector<8x512xf32>
    %138 = vector.extract_strided_slice %137 {offsets = [0, 0], sizes = [8, 128], strides = [1, 1]} : vector<8x512xf32> to vector<8x128xf32>
    %139 = arith.negf %138 : vector<8x128xf32>
    %140 = math.exp %139 : vector<8x128xf32>
    %cst_42 = arith.constant 1.000000e+00 : f32
    %141 = vector.broadcast %cst_42 : f32 to vector<8x128xf32>
    %142 = arith.addf %141, %140 : vector<8x128xf32>
    %143 = arith.divf %141, %142 : vector<8x128xf32>
    %144 = vector.extract_strided_slice %137 {offsets = [0, 128], sizes = [8, 128], strides = [1, 1]} : vector<8x512xf32> to vector<8x128xf32>
    %145 = arith.negf %144 : vector<8x128xf32>
    %146 = math.exp %145 : vector<8x128xf32>
    %cst_43 = arith.constant 1.000000e+00 : f32
    %147 = vector.broadcast %cst_43 : f32 to vector<8x128xf32>
    %148 = arith.addf %147, %146 : vector<8x128xf32>
    %149 = arith.divf %147, %148 : vector<8x128xf32>
    %150 = vector.extract_strided_slice %137 {offsets = [0, 256], sizes = [8, 128], strides = [1, 1]} : vector<8x512xf32> to vector<8x128xf32>
    %151 = math.tanh %150 : vector<8x128xf32>
    %152 = vector.extract_strided_slice %137 {offsets = [0, 384], sizes = [8, 128], strides = [1, 1]} : vector<8x512xf32> to vector<8x128xf32>
    %153 = arith.negf %152 : vector<8x128xf32>
    %154 = math.exp %153 : vector<8x128xf32>
    %cst_44 = arith.constant 1.000000e+00 : f32
    %155 = vector.broadcast %cst_44 : f32 to vector<8x128xf32>
    %156 = arith.addf %155, %154 : vector<8x128xf32>
    %157 = arith.divf %155, %156 : vector<8x128xf32>
    %158 = arith.mulf %149, %98 : vector<8x128xf32>
    %159 = arith.mulf %143, %151 : vector<8x128xf32>
    %160 = arith.addf %158, %159 : vector<8x128xf32>
    %161 = math.tanh %160 : vector<8x128xf32>
    %162 = arith.mulf %157, %161 : vector<8x128xf32>
    %163 = vector.broadcast %99 : i32 to vector<8x1xi32>
    %164 = arith.cmpi slt, %163, %4 : vector<8x1xi32>
    %c7_i32_45 = arith.constant 7 : i32
    %165 = arith.subi %c7_i32_45, %99 : i32
    %166 = vector.broadcast %165 : i32 to vector<8x1xi32>
    %167 = arith.cmpi slt, %166, %4 : vector<8x1xi32>
    %168 = vector.extract_strided_slice %96 {offsets = [0, 0], sizes = [8, 128], strides = [1, 1]} : vector<8x256xf32> to vector<8x128xf32>
    %169 = vector.shape_cast %164 : vector<8x1xi1> to vector<8x1xi1>
    %170 = vector.broadcast %169 : vector<8x1xi1> to vector<8x128xi1>
    %171 = arith.select %170, %135, %168 : vector<8x128xi1>, vector<8x128xf32>
    %c0_46 = arith.constant 0 : index
    %c0_47 = arith.constant 0 : index
    %172 = vector.load %arg7[%c0_46, %c0_47] : memref<8x256xf32, #tpu.memory_space<vmem>>, vector<8x128xf32>
    tpu.vector_store %arg7[%c0_46, %c0_47], %171 {strides = array<i32>} : memref<8x256xf32, #tpu.memory_space<vmem>>, vector<8x128xf32>,
    %173 = vector.extract_strided_slice %96 {offsets = [0, 128], sizes = [8, 128], strides = [1, 1]} : vector<8x256xf32> to vector<8x128xf32>
    %174 = vector.shape_cast %167 : vector<8x1xi1> to vector<8x1xi1>
    %175 = vector.broadcast %174 : vector<8x1xi1> to vector<8x128xi1>
    %176 = arith.select %175, %162, %173 : vector<8x128xi1>, vector<8x128xf32>
    %c0_48 = arith.constant 0 : index
    %c128_49 = arith.constant 128 : index
    %177 = vector.load %arg7[%c0_48, %c128_49] : memref<8x256xf32, #tpu.memory_space<vmem>>, vector<8x128xf32>
    tpu.vector_store %arg7[%c0_48, %c128_49], %176 {strides = array<i32>} : memref<8x256xf32, #tpu.memory_space<vmem>>, vector<8x128xf32>,
    %178 = vector.shape_cast %164 : vector<8x1xi1> to vector<8x1xi1>
    %179 = vector.broadcast %178 : vector<8x1xi1> to vector<8x128xi1>
    %180 = arith.select %179, %133, %97 : vector<8x128xi1>, vector<8x128xf32>
    %c0_50 = arith.constant 0 : index
    %c0_51 = arith.constant 0 : index
    %181 = vector.load %arg8[%c0_50, %c0_51] : memref<8x128xf32, #tpu.memory_space<vmem>>, vector<8x128xf32>
    tpu.vector_store %arg8[%c0_50, %c0_51], %180 {strides = array<i32>} : memref<8x128xf32, #tpu.memory_space<vmem>>, vector<8x128xf32>,
    %182 = vector.shape_cast %167 : vector<8x1xi1> to vector<8x1xi1>
    %183 = vector.broadcast %182 : vector<8x1xi1> to vector<8x128xi1>
    %184 = arith.select %183, %160, %98 : vector<8x128xi1>, vector<8x128xf32>
    %c0_52 = arith.constant 0 : index
    %c0_53 = arith.constant 0 : index
    %185 = vector.load %arg9[%c0_52, %c0_53] : memref<8x128xf32, #tpu.memory_space<vmem>>, vector<8x128xf32>
    tpu.vector_store %arg9[%c0_52, %c0_53], %184 {strides = array<i32>} : memref<8x128xf32, #tpu.memory_space<vmem>>, vector<8x128xf32>,
    %c2_i32 = arith.constant 2 : i32
    %c0_54 = arith.constant 0 : index
    %c0_55 = arith.constant 0 : index
    %186 = vector.load %arg7[%c0_54, %c0_55] : memref<8x256xf32, #tpu.memory_space<vmem>>, vector<8x256xf32>
    %c0_56 = arith.constant 0 : index
    %c0_57 = arith.constant 0 : index
    %187 = vector.load %arg8[%c0_56, %c0_57] : memref<8x128xf32, #tpu.memory_space<vmem>>, vector<8x128xf32>
    %c0_58 = arith.constant 0 : index
    %c0_59 = arith.constant 0 : index
    %188 = vector.load %arg9[%c0_58, %c0_59] : memref<8x128xf32, #tpu.memory_space<vmem>>, vector<8x128xf32>
    %189 = arith.addi %5, %c2_i32 : i32
    %190 = arith.index_cast %c2_i32 : i32 to index
    %c0_60 = arith.constant 0 : index
    %c0_61 = arith.constant 0 : index
    %191 = vector.load %arg2[%190, %c0_60, %c0_61] : memref<8x8x512xbf16, #tpu.memory_space<vmem>>, vector<1x8x512xbf16>
    %192 = vector.shape_cast %191 : vector<1x8x512xbf16> to vector<8x512xbf16>
    %193 = arith.extf %192 : vector<8x512xbf16> to vector<8x512xf32>
    %194 = arith.index_cast %c2_i32 : i32 to index
    %c0_62 = arith.constant 0 : index
    %c0_63 = arith.constant 0 : index
    %195 = vector.load %arg3[%194, %c0_62, %c0_63] : memref<8x8x512xbf16, #tpu.memory_space<vmem>>, vector<1x8x512xbf16>
    %196 = vector.shape_cast %195 : vector<1x8x512xbf16> to vector<8x512xbf16>
    %197 = arith.extf %196 : vector<8x512xbf16> to vector<8x512xf32>
    %cst_64 = arith.constant dense<0.000000e+00> : vector<8x1024xf32>
    %198 = tpu.matmul %186, %3, %cst_64 {dimension_numbers = #tpu.dot_dimension_numbers<[1], [0], [0], [1], [0, 0, 1, 1], [], []>} : vector<8x256xf32>, vector<256x1024xf32>, vector<8x1024xf32> -> vector<8x1024xf32>
    %199 = vector.extract_strided_slice %198 {offsets = [0, 0], sizes = [8, 512], strides = [1, 1]} : vector<8x1024xf32> to vector<8x512xf32>
    %200 = arith.addf %199, %193 : vector<8x512xf32>
    %201 = vector.extract_strided_slice %200 {offsets = [0, 0], sizes = [8, 128], strides = [1, 1]} : vector<8x512xf32> to vector<8x128xf32>
    %202 = arith.negf %201 : vector<8x128xf32>
    %203 = math.exp %202 : vector<8x128xf32>
    %cst_65 = arith.constant 1.000000e+00 : f32
    %204 = vector.broadcast %cst_65 : f32 to vector<8x128xf32>
    %205 = arith.addf %204, %203 : vector<8x128xf32>
    %206 = arith.divf %204, %205 : vector<8x128xf32>
    %207 = vector.extract_strided_slice %200 {offsets = [0, 128], sizes = [8, 128], strides = [1, 1]} : vector<8x512xf32> to vector<8x128xf32>
    %208 = arith.negf %207 : vector<8x128xf32>
    %209 = math.exp %208 : vector<8x128xf32>
    %cst_66 = arith.constant 1.000000e+00 : f32
    %210 = vector.broadcast %cst_66 : f32 to vector<8x128xf32>
    %211 = arith.addf %210, %209 : vector<8x128xf32>
    %212 = arith.divf %210, %211 : vector<8x128xf32>
    %213 = vector.extract_strided_slice %200 {offsets = [0, 256], sizes = [8, 128], strides = [1, 1]} : vector<8x512xf32> to vector<8x128xf32>
    %214 = math.tanh %213 : vector<8x128xf32>
    %215 = vector.extract_strided_slice %200 {offsets = [0, 384], sizes = [8, 128], strides = [1, 1]} : vector<8x512xf32> to vector<8x128xf32>
    %216 = arith.negf %215 : vector<8x128xf32>
    %217 = math.exp %216 : vector<8x128xf32>
    %cst_67 = arith.constant 1.000000e+00 : f32
    %218 = vector.broadcast %cst_67 : f32 to vector<8x128xf32>
    %219 = arith.addf %218, %217 : vector<8x128xf32>
    %220 = arith.divf %218, %219 : vector<8x128xf32>
    %221 = arith.mulf %212, %187 : vector<8x128xf32>
    %222 = arith.mulf %206, %214 : vector<8x128xf32>
    %223 = arith.addf %221, %222 : vector<8x128xf32>
    %224 = math.tanh %223 : vector<8x128xf32>
    %225 = arith.mulf %220, %224 : vector<8x128xf32>
    %226 = vector.extract_strided_slice %198 {offsets = [0, 512], sizes = [8, 512], strides = [1, 1]} : vector<8x1024xf32> to vector<8x512xf32>
    %227 = arith.addf %226, %197 : vector<8x512xf32>
    %228 = vector.extract_strided_slice %227 {offsets = [0, 0], sizes = [8, 128], strides = [1, 1]} : vector<8x512xf32> to vector<8x128xf32>
    %229 = arith.negf %228 : vector<8x128xf32>
    %230 = math.exp %229 : vector<8x128xf32>
    %cst_68 = arith.constant 1.000000e+00 : f32
    %231 = vector.broadcast %cst_68 : f32 to vector<8x128xf32>
    %232 = arith.addf %231, %230 : vector<8x128xf32>
    %233 = arith.divf %231, %232 : vector<8x128xf32>
    %234 = vector.extract_strided_slice %227 {offsets = [0, 128], sizes = [8, 128], strides = [1, 1]} : vector<8x512xf32> to vector<8x128xf32>
    %235 = arith.negf %234 : vector<8x128xf32>
    %236 = math.exp %235 : vector<8x128xf32>
    %cst_69 = arith.constant 1.000000e+00 : f32
    %237 = vector.broadcast %cst_69 : f32 to vector<8x128xf32>
    %238 = arith.addf %237, %236 : vector<8x128xf32>
    %239 = arith.divf %237, %238 : vector<8x128xf32>
    %240 = vector.extract_strided_slice %227 {offsets = [0, 256], sizes = [8, 128], strides = [1, 1]} : vector<8x512xf32> to vector<8x128xf32>
    %241 = math.tanh %240 : vector<8x128xf32>
    %242 = vector.extract_strided_slice %227 {offsets = [0, 384], sizes = [8, 128], strides = [1, 1]} : vector<8x512xf32> to vector<8x128xf32>
    %243 = arith.negf %242 : vector<8x128xf32>
    %244 = math.exp %243 : vector<8x128xf32>
    %cst_70 = arith.constant 1.000000e+00 : f32
    %245 = vector.broadcast %cst_70 : f32 to vector<8x128xf32>
    %246 = arith.addf %245, %244 : vector<8x128xf32>
    %247 = arith.divf %245, %246 : vector<8x128xf32>
    %248 = arith.mulf %239, %188 : vector<8x128xf32>
    %249 = arith.mulf %233, %241 : vector<8x128xf32>
    %250 = arith.addf %248, %249 : vector<8x128xf32>
    %251 = math.tanh %250 : vector<8x128xf32>
    %252 = arith.mulf %247, %251 : vector<8x128xf32>
    %253 = vector.broadcast %189 : i32 to vector<8x1xi32>
    %254 = arith.cmpi slt, %253, %4 : vector<8x1xi32>
    %c7_i32_71 = arith.constant 7 : i32
    %255 = arith.subi %c7_i32_71, %189 : i32
    %256 = vector.broadcast %255 : i32 to vector<8x1xi32>
    %257 = arith.cmpi slt, %256, %4 : vector<8x1xi32>
    %258 = vector.extract_strided_slice %186 {offsets = [0, 0], sizes = [8, 128], strides = [1, 1]} : vector<8x256xf32> to vector<8x128xf32>
    %259 = vector.shape_cast %254 : vector<8x1xi1> to vector<8x1xi1>
    %260 = vector.broadcast %259 : vector<8x1xi1> to vector<8x128xi1>
    %261 = arith.select %260, %225, %258 : vector<8x128xi1>, vector<8x128xf32>
    %c0_72 = arith.constant 0 : index
    %c0_73 = arith.constant 0 : index
    %262 = vector.load %arg7[%c0_72, %c0_73] : memref<8x256xf32, #tpu.memory_space<vmem>>, vector<8x128xf32>
    tpu.vector_store %arg7[%c0_72, %c0_73], %261 {strides = array<i32>} : memref<8x256xf32, #tpu.memory_space<vmem>>, vector<8x128xf32>,
    %263 = vector.extract_strided_slice %186 {offsets = [0, 128], sizes = [8, 128], strides = [1, 1]} : vector<8x256xf32> to vector<8x128xf32>
    %264 = vector.shape_cast %257 : vector<8x1xi1> to vector<8x1xi1>
    %265 = vector.broadcast %264 : vector<8x1xi1> to vector<8x128xi1>
    %266 = arith.select %265, %252, %263 : vector<8x128xi1>, vector<8x128xf32>
    %c0_74 = arith.constant 0 : index
    %c128_75 = arith.constant 128 : index
    %267 = vector.load %arg7[%c0_74, %c128_75] : memref<8x256xf32, #tpu.memory_space<vmem>>, vector<8x128xf32>
    tpu.vector_store %arg7[%c0_74, %c128_75], %266 {strides = array<i32>} : memref<8x256xf32, #tpu.memory_space<vmem>>, vector<8x128xf32>,
    %268 = vector.shape_cast %254 : vector<8x1xi1> to vector<8x1xi1>
    %269 = vector.broadcast %268 : vector<8x1xi1> to vector<8x128xi1>
    %270 = arith.select %269, %223, %187 : vector<8x128xi1>, vector<8x128xf32>
    %c0_76 = arith.constant 0 : index
    %c0_77 = arith.constant 0 : index
    %271 = vector.load %arg8[%c0_76, %c0_77] : memref<8x128xf32, #tpu.memory_space<vmem>>, vector<8x128xf32>
    tpu.vector_store %arg8[%c0_76, %c0_77], %270 {strides = array<i32>} : memref<8x128xf32, #tpu.memory_space<vmem>>, vector<8x128xf32>,
    %272 = vector.shape_cast %257 : vector<8x1xi1> to vector<8x1xi1>
    %273 = vector.broadcast %272 : vector<8x1xi1> to vector<8x128xi1>
    %274 = arith.select %273, %250, %188 : vector<8x128xi1>, vector<8x128xf32>
    %c0_78 = arith.constant 0 : index
    %c0_79 = arith.constant 0 : index
    %275 = vector.load %arg9[%c0_78, %c0_79] : memref<8x128xf32, #tpu.memory_space<vmem>>, vector<8x128xf32>
    tpu.vector_store %arg9[%c0_78, %c0_79], %274 {strides = array<i32>} : memref<8x128xf32, #tpu.memory_space<vmem>>, vector<8x128xf32>,
    %c3_i32 = arith.constant 3 : i32
    %c0_80 = arith.constant 0 : index
    %c0_81 = arith.constant 0 : index
    %276 = vector.load %arg7[%c0_80, %c0_81] : memref<8x256xf32, #tpu.memory_space<vmem>>, vector<8x256xf32>
    %c0_82 = arith.constant 0 : index
    %c0_83 = arith.constant 0 : index
    %277 = vector.load %arg8[%c0_82, %c0_83] : memref<8x128xf32, #tpu.memory_space<vmem>>, vector<8x128xf32>
    %c0_84 = arith.constant 0 : index
    %c0_85 = arith.constant 0 : index
    %278 = vector.load %arg9[%c0_84, %c0_85] : memref<8x128xf32, #tpu.memory_space<vmem>>, vector<8x128xf32>
    %279 = arith.addi %5, %c3_i32 : i32
    %280 = arith.index_cast %c3_i32 : i32 to index
    %c0_86 = arith.constant 0 : index
    %c0_87 = arith.constant 0 : index
    %281 = vector.load %arg2[%280, %c0_86, %c0_87] : memref<8x8x512xbf16, #tpu.memory_space<vmem>>, vector<1x8x512xbf16>
    %282 = vector.shape_cast %281 : vector<1x8x512xbf16> to vector<8x512xbf16>
    %283 = arith.extf %282 : vector<8x512xbf16> to vector<8x512xf32>
    %284 = arith.index_cast %c3_i32 : i32 to index
    %c0_88 = arith.constant 0 : index
    %c0_89 = arith.constant 0 : index
    %285 = vector.load %arg3[%284, %c0_88, %c0_89] : memref<8x8x512xbf16, #tpu.memory_space<vmem>>, vector<1x8x512xbf16>
    %286 = vector.shape_cast %285 : vector<1x8x512xbf16> to vector<8x512xbf16>
    %287 = arith.extf %286 : vector<8x512xbf16> to vector<8x512xf32>
    %cst_90 = arith.constant dense<0.000000e+00> : vector<8x1024xf32>
    %288 = tpu.matmul %276, %3, %cst_90 {dimension_numbers = #tpu.dot_dimension_numbers<[1], [0], [0], [1], [0, 0, 1, 1], [], []>} : vector<8x256xf32>, vector<256x1024xf32>, vector<8x1024xf32> -> vector<8x1024xf32>
    %289 = vector.extract_strided_slice %288 {offsets = [0, 0], sizes = [8, 512], strides = [1, 1]} : vector<8x1024xf32> to vector<8x512xf32>
    %290 = arith.addf %289, %283 : vector<8x512xf32>
    %291 = vector.extract_strided_slice %290 {offsets = [0, 0], sizes = [8, 128], strides = [1, 1]} : vector<8x512xf32> to vector<8x128xf32>
    %292 = arith.negf %291 : vector<8x128xf32>
    %293 = math.exp %292 : vector<8x128xf32>
    %cst_91 = arith.constant 1.000000e+00 : f32
    %294 = vector.broadcast %cst_91 : f32 to vector<8x128xf32>
    %295 = arith.addf %294, %293 : vector<8x128xf32>
    %296 = arith.divf %294, %295 : vector<8x128xf32>
    %297 = vector.extract_strided_slice %290 {offsets = [0, 128], sizes = [8, 128], strides = [1, 1]} : vector<8x512xf32> to vector<8x128xf32>
    %298 = arith.negf %297 : vector<8x128xf32>
    %299 = math.exp %298 : vector<8x128xf32>
    %cst_92 = arith.constant 1.000000e+00 : f32
    %300 = vector.broadcast %cst_92 : f32 to vector<8x128xf32>
    %301 = arith.addf %300, %299 : vector<8x128xf32>
    %302 = arith.divf %300, %301 : vector<8x128xf32>
    %303 = vector.extract_strided_slice %290 {offsets = [0, 256], sizes = [8, 128], strides = [1, 1]} : vector<8x512xf32> to vector<8x128xf32>
    %304 = math.tanh %303 : vector<8x128xf32>
    %305 = vector.extract_strided_slice %290 {offsets = [0, 384], sizes = [8, 128], strides = [1, 1]} : vector<8x512xf32> to vector<8x128xf32>
    %306 = arith.negf %305 : vector<8x128xf32>
    %307 = math.exp %306 : vector<8x128xf32>
    %cst_93 = arith.constant 1.000000e+00 : f32
    %308 = vector.broadcast %cst_93 : f32 to vector<8x128xf32>
    %309 = arith.addf %308, %307 : vector<8x128xf32>
    %310 = arith.divf %308, %309 : vector<8x128xf32>
    %311 = arith.mulf %302, %277 : vector<8x128xf32>
    %312 = arith.mulf %296, %304 : vector<8x128xf32>
    %313 = arith.addf %311, %312 : vector<8x128xf32>
    %314 = math.tanh %313 : vector<8x128xf32>
    %315 = arith.mulf %310, %314 : vector<8x128xf32>
    %316 = vector.extract_strided_slice %288 {offsets = [0, 512], sizes = [8, 512], strides = [1, 1]} : vector<8x1024xf32> to vector<8x512xf32>
    %317 = arith.addf %316, %287 : vector<8x512xf32>
    %318 = vector.extract_strided_slice %317 {offsets = [0, 0], sizes = [8, 128], strides = [1, 1]} : vector<8x512xf32> to vector<8x128xf32>
    %319 = arith.negf %318 : vector<8x128xf32>
    %320 = math.exp %319 : vector<8x128xf32>
    %cst_94 = arith.constant 1.000000e+00 : f32
    %321 = vector.broadcast %cst_94 : f32 to vector<8x128xf32>
    %322 = arith.addf %321, %320 : vector<8x128xf32>
    %323 = arith.divf %321, %322 : vector<8x128xf32>
    %324 = vector.extract_strided_slice %317 {offsets = [0, 128], sizes = [8, 128], strides = [1, 1]} : vector<8x512xf32> to vector<8x128xf32>
    %325 = arith.negf %324 : vector<8x128xf32>
    %326 = math.exp %325 : vector<8x128xf32>
    %cst_95 = arith.constant 1.000000e+00 : f32
    %327 = vector.broadcast %cst_95 : f32 to vector<8x128xf32>
    %328 = arith.addf %327, %326 : vector<8x128xf32>
    %329 = arith.divf %327, %328 : vector<8x128xf32>
    %330 = vector.extract_strided_slice %317 {offsets = [0, 256], sizes = [8, 128], strides = [1, 1]} : vector<8x512xf32> to vector<8x128xf32>
    %331 = math.tanh %330 : vector<8x128xf32>
    %332 = vector.extract_strided_slice %317 {offsets = [0, 384], sizes = [8, 128], strides = [1, 1]} : vector<8x512xf32> to vector<8x128xf32>
    %333 = arith.negf %332 : vector<8x128xf32>
    %334 = math.exp %333 : vector<8x128xf32>
    %cst_96 = arith.constant 1.000000e+00 : f32
    %335 = vector.broadcast %cst_96 : f32 to vector<8x128xf32>
    %336 = arith.addf %335, %334 : vector<8x128xf32>
    %337 = arith.divf %335, %336 : vector<8x128xf32>
    %338 = arith.mulf %329, %278 : vector<8x128xf32>
    %339 = arith.mulf %323, %331 : vector<8x128xf32>
    %340 = arith.addf %338, %339 : vector<8x128xf32>
    %341 = math.tanh %340 : vector<8x128xf32>
    %342 = arith.mulf %337, %341 : vector<8x128xf32>
    %343 = vector.broadcast %279 : i32 to vector<8x1xi32>
    %344 = arith.cmpi slt, %343, %4 : vector<8x1xi32>
    %c7_i32_97 = arith.constant 7 : i32
    %345 = arith.subi %c7_i32_97, %279 : i32
    %346 = vector.broadcast %345 : i32 to vector<8x1xi32>
    %347 = arith.cmpi slt, %346, %4 : vector<8x1xi32>
    %348 = vector.extract_strided_slice %276 {offsets = [0, 0], sizes = [8, 128], strides = [1, 1]} : vector<8x256xf32> to vector<8x128xf32>
    %349 = vector.shape_cast %344 : vector<8x1xi1> to vector<8x1xi1>
    %350 = vector.broadcast %349 : vector<8x1xi1> to vector<8x128xi1>
    %351 = arith.select %350, %315, %348 : vector<8x128xi1>, vector<8x128xf32>
    %c0_98 = arith.constant 0 : index
    %c0_99 = arith.constant 0 : index
    %352 = vector.load %arg7[%c0_98, %c0_99] : memref<8x256xf32, #tpu.memory_space<vmem>>, vector<8x128xf32>
    tpu.vector_store %arg7[%c0_98, %c0_99], %351 {strides = array<i32>} : memref<8x256xf32, #tpu.memory_space<vmem>>, vector<8x128xf32>,
    %353 = vector.extract_strided_slice %276 {offsets = [0, 128], sizes = [8, 128], strides = [1, 1]} : vector<8x256xf32> to vector<8x128xf32>
    %354 = vector.shape_cast %347 : vector<8x1xi1> to vector<8x1xi1>
    %355 = vector.broadcast %354 : vector<8x1xi1> to vector<8x128xi1>
    %356 = arith.select %355, %342, %353 : vector<8x128xi1>, vector<8x128xf32>
    %c0_100 = arith.constant 0 : index
    %c128_101 = arith.constant 128 : index
    %357 = vector.load %arg7[%c0_100, %c128_101] : memref<8x256xf32, #tpu.memory_space<vmem>>, vector<8x128xf32>
    tpu.vector_store %arg7[%c0_100, %c128_101], %356 {strides = array<i32>} : memref<8x256xf32, #tpu.memory_space<vmem>>, vector<8x128xf32>,
    %358 = vector.shape_cast %344 : vector<8x1xi1> to vector<8x1xi1>
    %359 = vector.broadcast %358 : vector<8x1xi1> to vector<8x128xi1>
    %360 = arith.select %359, %313, %277 : vector<8x128xi1>, vector<8x128xf32>
    %c0_102 = arith.constant 0 : index
    %c0_103 = arith.constant 0 : index
    %361 = vector.load %arg8[%c0_102, %c0_103] : memref<8x128xf32, #tpu.memory_space<vmem>>, vector<8x128xf32>
    tpu.vector_store %arg8[%c0_102, %c0_103], %360 {strides = array<i32>} : memref<8x128xf32, #tpu.memory_space<vmem>>, vector<8x128xf32>,
    %362 = vector.shape_cast %347 : vector<8x1xi1> to vector<8x1xi1>
    %363 = vector.broadcast %362 : vector<8x1xi1> to vector<8x128xi1>
    %364 = arith.select %363, %340, %278 : vector<8x128xi1>, vector<8x128xf32>
    %c0_104 = arith.constant 0 : index
    %c0_105 = arith.constant 0 : index
    %365 = vector.load %arg9[%c0_104, %c0_105] : memref<8x128xf32, #tpu.memory_space<vmem>>, vector<8x128xf32>
    tpu.vector_store %arg9[%c0_104, %c0_105], %364 {strides = array<i32>} : memref<8x128xf32, #tpu.memory_space<vmem>>, vector<8x128xf32>,
    %c4_i32 = arith.constant 4 : i32
    %c0_106 = arith.constant 0 : index
    %c0_107 = arith.constant 0 : index
    %366 = vector.load %arg7[%c0_106, %c0_107] : memref<8x256xf32, #tpu.memory_space<vmem>>, vector<8x256xf32>
    %c0_108 = arith.constant 0 : index
    %c0_109 = arith.constant 0 : index
    %367 = vector.load %arg8[%c0_108, %c0_109] : memref<8x128xf32, #tpu.memory_space<vmem>>, vector<8x128xf32>
    %c0_110 = arith.constant 0 : index
    %c0_111 = arith.constant 0 : index
    %368 = vector.load %arg9[%c0_110, %c0_111] : memref<8x128xf32, #tpu.memory_space<vmem>>, vector<8x128xf32>
    %369 = arith.addi %5, %c4_i32 : i32
    %370 = arith.index_cast %c4_i32 : i32 to index
    %c0_112 = arith.constant 0 : index
    %c0_113 = arith.constant 0 : index
    %371 = vector.load %arg2[%370, %c0_112, %c0_113] : memref<8x8x512xbf16, #tpu.memory_space<vmem>>, vector<1x8x512xbf16>
    %372 = vector.shape_cast %371 : vector<1x8x512xbf16> to vector<8x512xbf16>
    %373 = arith.extf %372 : vector<8x512xbf16> to vector<8x512xf32>
    %374 = arith.index_cast %c4_i32 : i32 to index
    %c0_114 = arith.constant 0 : index
    %c0_115 = arith.constant 0 : index
    %375 = vector.load %arg3[%374, %c0_114, %c0_115] : memref<8x8x512xbf16, #tpu.memory_space<vmem>>, vector<1x8x512xbf16>
    %376 = vector.shape_cast %375 : vector<1x8x512xbf16> to vector<8x512xbf16>
    %377 = arith.extf %376 : vector<8x512xbf16> to vector<8x512xf32>
    %cst_116 = arith.constant dense<0.000000e+00> : vector<8x1024xf32>
    %378 = tpu.matmul %366, %3, %cst_116 {dimension_numbers = #tpu.dot_dimension_numbers<[1], [0], [0], [1], [0, 0, 1, 1], [], []>} : vector<8x256xf32>, vector<256x1024xf32>, vector<8x1024xf32> -> vector<8x1024xf32>
    %379 = vector.extract_strided_slice %378 {offsets = [0, 0], sizes = [8, 512], strides = [1, 1]} : vector<8x1024xf32> to vector<8x512xf32>
    %380 = arith.addf %379, %373 : vector<8x512xf32>
    %381 = vector.extract_strided_slice %380 {offsets = [0, 0], sizes = [8, 128], strides = [1, 1]} : vector<8x512xf32> to vector<8x128xf32>
    %382 = arith.negf %381 : vector<8x128xf32>
    %383 = math.exp %382 : vector<8x128xf32>
    %cst_117 = arith.constant 1.000000e+00 : f32
    %384 = vector.broadcast %cst_117 : f32 to vector<8x128xf32>
    %385 = arith.addf %384, %383 : vector<8x128xf32>
    %386 = arith.divf %384, %385 : vector<8x128xf32>
    %387 = vector.extract_strided_slice %380 {offsets = [0, 128], sizes = [8, 128], strides = [1, 1]} : vector<8x512xf32> to vector<8x128xf32>
    %388 = arith.negf %387 : vector<8x128xf32>
    %389 = math.exp %388 : vector<8x128xf32>
    %cst_118 = arith.constant 1.000000e+00 : f32
    %390 = vector.broadcast %cst_118 : f32 to vector<8x128xf32>
    %391 = arith.addf %390, %389 : vector<8x128xf32>
    %392 = arith.divf %390, %391 : vector<8x128xf32>
    %393 = vector.extract_strided_slice %380 {offsets = [0, 256], sizes = [8, 128], strides = [1, 1]} : vector<8x512xf32> to vector<8x128xf32>
    %394 = math.tanh %393 : vector<8x128xf32>
    %395 = vector.extract_strided_slice %380 {offsets = [0, 384], sizes = [8, 128], strides = [1, 1]} : vector<8x512xf32> to vector<8x128xf32>
    %396 = arith.negf %395 : vector<8x128xf32>
    %397 = math.exp %396 : vector<8x128xf32>
    %cst_119 = arith.constant 1.000000e+00 : f32
    %398 = vector.broadcast %cst_119 : f32 to vector<8x128xf32>
    %399 = arith.addf %398, %397 : vector<8x128xf32>
    %400 = arith.divf %398, %399 : vector<8x128xf32>
    %401 = arith.mulf %392, %367 : vector<8x128xf32>
    %402 = arith.mulf %386, %394 : vector<8x128xf32>
    %403 = arith.addf %401, %402 : vector<8x128xf32>
    %404 = math.tanh %403 : vector<8x128xf32>
    %405 = arith.mulf %400, %404 : vector<8x128xf32>
    %406 = vector.extract_strided_slice %378 {offsets = [0, 512], sizes = [8, 512], strides = [1, 1]} : vector<8x1024xf32> to vector<8x512xf32>
    %407 = arith.addf %406, %377 : vector<8x512xf32>
    %408 = vector.extract_strided_slice %407 {offsets = [0, 0], sizes = [8, 128], strides = [1, 1]} : vector<8x512xf32> to vector<8x128xf32>
    %409 = arith.negf %408 : vector<8x128xf32>
    %410 = math.exp %409 : vector<8x128xf32>
    %cst_120 = arith.constant 1.000000e+00 : f32
    %411 = vector.broadcast %cst_120 : f32 to vector<8x128xf32>
    %412 = arith.addf %411, %410 : vector<8x128xf32>
    %413 = arith.divf %411, %412 : vector<8x128xf32>
    %414 = vector.extract_strided_slice %407 {offsets = [0, 128], sizes = [8, 128], strides = [1, 1]} : vector<8x512xf32> to vector<8x128xf32>
    %415 = arith.negf %414 : vector<8x128xf32>
    %416 = math.exp %415 : vector<8x128xf32>
    %cst_121 = arith.constant 1.000000e+00 : f32
    %417 = vector.broadcast %cst_121 : f32 to vector<8x128xf32>
    %418 = arith.addf %417, %416 : vector<8x128xf32>
    %419 = arith.divf %417, %418 : vector<8x128xf32>
    %420 = vector.extract_strided_slice %407 {offsets = [0, 256], sizes = [8, 128], strides = [1, 1]} : vector<8x512xf32> to vector<8x128xf32>
    %421 = math.tanh %420 : vector<8x128xf32>
    %422 = vector.extract_strided_slice %407 {offsets = [0, 384], sizes = [8, 128], strides = [1, 1]} : vector<8x512xf32> to vector<8x128xf32>
    %423 = arith.negf %422 : vector<8x128xf32>
    %424 = math.exp %423 : vector<8x128xf32>
    %cst_122 = arith.constant 1.000000e+00 : f32
    %425 = vector.broadcast %cst_122 : f32 to vector<8x128xf32>
    %426 = arith.addf %425, %424 : vector<8x128xf32>
    %427 = arith.divf %425, %426 : vector<8x128xf32>
    %428 = arith.mulf %419, %368 : vector<8x128xf32>
    %429 = arith.mulf %413, %421 : vector<8x128xf32>
    %430 = arith.addf %428, %429 : vector<8x128xf32>
    %431 = math.tanh %430 : vector<8x128xf32>
    %432 = arith.mulf %427, %431 : vector<8x128xf32>
    %433 = vector.broadcast %369 : i32 to vector<8x1xi32>
    %434 = arith.cmpi slt, %433, %4 : vector<8x1xi32>
    %c7_i32_123 = arith.constant 7 : i32
    %435 = arith.subi %c7_i32_123, %369 : i32
    %436 = vector.broadcast %435 : i32 to vector<8x1xi32>
    %437 = arith.cmpi slt, %436, %4 : vector<8x1xi32>
    %438 = vector.extract_strided_slice %366 {offsets = [0, 0], sizes = [8, 128], strides = [1, 1]} : vector<8x256xf32> to vector<8x128xf32>
    %439 = vector.shape_cast %434 : vector<8x1xi1> to vector<8x1xi1>
    %440 = vector.broadcast %439 : vector<8x1xi1> to vector<8x128xi1>
    %441 = arith.select %440, %405, %438 : vector<8x128xi1>, vector<8x128xf32>
    %c0_124 = arith.constant 0 : index
    %c0_125 = arith.constant 0 : index
    %442 = vector.load %arg7[%c0_124, %c0_125] : memref<8x256xf32, #tpu.memory_space<vmem>>, vector<8x128xf32>
    tpu.vector_store %arg7[%c0_124, %c0_125], %441 {strides = array<i32>} : memref<8x256xf32, #tpu.memory_space<vmem>>, vector<8x128xf32>,
    %443 = vector.extract_strided_slice %366 {offsets = [0, 128], sizes = [8, 128], strides = [1, 1]} : vector<8x256xf32> to vector<8x128xf32>
    %444 = vector.shape_cast %437 : vector<8x1xi1> to vector<8x1xi1>
    %445 = vector.broadcast %444 : vector<8x1xi1> to vector<8x128xi1>
    %446 = arith.select %445, %432, %443 : vector<8x128xi1>, vector<8x128xf32>
    %c0_126 = arith.constant 0 : index
    %c128_127 = arith.constant 128 : index
    %447 = vector.load %arg7[%c0_126, %c128_127] : memref<8x256xf32, #tpu.memory_space<vmem>>, vector<8x128xf32>
    tpu.vector_store %arg7[%c0_126, %c128_127], %446 {strides = array<i32>} : memref<8x256xf32, #tpu.memory_space<vmem>>, vector<8x128xf32>,
    %448 = vector.shape_cast %434 : vector<8x1xi1> to vector<8x1xi1>
    %449 = vector.broadcast %448 : vector<8x1xi1> to vector<8x128xi1>
    %450 = arith.select %449, %403, %367 : vector<8x128xi1>, vector<8x128xf32>
    %c0_128 = arith.constant 0 : index
    %c0_129 = arith.constant 0 : index
    %451 = vector.load %arg8[%c0_128, %c0_129] : memref<8x128xf32, #tpu.memory_space<vmem>>, vector<8x128xf32>
    tpu.vector_store %arg8[%c0_128, %c0_129], %450 {strides = array<i32>} : memref<8x128xf32, #tpu.memory_space<vmem>>, vector<8x128xf32>,
    %452 = vector.shape_cast %437 : vector<8x1xi1> to vector<8x1xi1>
    %453 = vector.broadcast %452 : vector<8x1xi1> to vector<8x128xi1>
    %454 = arith.select %453, %430, %368 : vector<8x128xi1>, vector<8x128xf32>
    %c0_130 = arith.constant 0 : index
    %c0_131 = arith.constant 0 : index
    %455 = vector.load %arg9[%c0_130, %c0_131] : memref<8x128xf32, #tpu.memory_space<vmem>>, vector<8x128xf32>
    tpu.vector_store %arg9[%c0_130, %c0_131], %454 {strides = array<i32>} : memref<8x128xf32, #tpu.memory_space<vmem>>, vector<8x128xf32>,
    %c5_i32 = arith.constant 5 : i32
    %c0_132 = arith.constant 0 : index
    %c0_133 = arith.constant 0 : index
    %456 = vector.load %arg7[%c0_132, %c0_133] : memref<8x256xf32, #tpu.memory_space<vmem>>, vector<8x256xf32>
    %c0_134 = arith.constant 0 : index
    %c0_135 = arith.constant 0 : index
    %457 = vector.load %arg8[%c0_134, %c0_135] : memref<8x128xf32, #tpu.memory_space<vmem>>, vector<8x128xf32>
    %c0_136 = arith.constant 0 : index
    %c0_137 = arith.constant 0 : index
    %458 = vector.load %arg9[%c0_136, %c0_137] : memref<8x128xf32, #tpu.memory_space<vmem>>, vector<8x128xf32>
    %459 = arith.addi %5, %c5_i32 : i32
    %460 = arith.index_cast %c5_i32 : i32 to index
    %c0_138 = arith.constant 0 : index
    %c0_139 = arith.constant 0 : index
    %461 = vector.load %arg2[%460, %c0_138, %c0_139] : memref<8x8x512xbf16, #tpu.memory_space<vmem>>, vector<1x8x512xbf16>
    %462 = vector.shape_cast %461 : vector<1x8x512xbf16> to vector<8x512xbf16>
    %463 = arith.extf %462 : vector<8x512xbf16> to vector<8x512xf32>
    %464 = arith.index_cast %c5_i32 : i32 to index
    %c0_140 = arith.constant 0 : index
    %c0_141 = arith.constant 0 : index
    %465 = vector.load %arg3[%464, %c0_140, %c0_141] : memref<8x8x512xbf16, #tpu.memory_space<vmem>>, vector<1x8x512xbf16>
    %466 = vector.shape_cast %465 : vector<1x8x512xbf16> to vector<8x512xbf16>
    %467 = arith.extf %466 : vector<8x512xbf16> to vector<8x512xf32>
    %cst_142 = arith.constant dense<0.000000e+00> : vector<8x1024xf32>
    %468 = tpu.matmul %456, %3, %cst_142 {dimension_numbers = #tpu.dot_dimension_numbers<[1], [0], [0], [1], [0, 0, 1, 1], [], []>} : vector<8x256xf32>, vector<256x1024xf32>, vector<8x1024xf32> -> vector<8x1024xf32>
    %469 = vector.extract_strided_slice %468 {offsets = [0, 0], sizes = [8, 512], strides = [1, 1]} : vector<8x1024xf32> to vector<8x512xf32>
    %470 = arith.addf %469, %463 : vector<8x512xf32>
    %471 = vector.extract_strided_slice %470 {offsets = [0, 0], sizes = [8, 128], strides = [1, 1]} : vector<8x512xf32> to vector<8x128xf32>
    %472 = arith.negf %471 : vector<8x128xf32>
    %473 = math.exp %472 : vector<8x128xf32>
    %cst_143 = arith.constant 1.000000e+00 : f32
    %474 = vector.broadcast %cst_143 : f32 to vector<8x128xf32>
    %475 = arith.addf %474, %473 : vector<8x128xf32>
    %476 = arith.divf %474, %475 : vector<8x128xf32>
    %477 = vector.extract_strided_slice %470 {offsets = [0, 128], sizes = [8, 128], strides = [1, 1]} : vector<8x512xf32> to vector<8x128xf32>
    %478 = arith.negf %477 : vector<8x128xf32>
    %479 = math.exp %478 : vector<8x128xf32>
    %cst_144 = arith.constant 1.000000e+00 : f32
    %480 = vector.broadcast %cst_144 : f32 to vector<8x128xf32>
    %481 = arith.addf %480, %479 : vector<8x128xf32>
    %482 = arith.divf %480, %481 : vector<8x128xf32>
    %483 = vector.extract_strided_slice %470 {offsets = [0, 256], sizes = [8, 128], strides = [1, 1]} : vector<8x512xf32> to vector<8x128xf32>
    %484 = math.tanh %483 : vector<8x128xf32>
    %485 = vector.extract_strided_slice %470 {offsets = [0, 384], sizes = [8, 128], strides = [1, 1]} : vector<8x512xf32> to vector<8x128xf32>
    %486 = arith.negf %485 : vector<8x128xf32>
    %487 = math.exp %486 : vector<8x128xf32>
    %cst_145 = arith.constant 1.000000e+00 : f32
    %488 = vector.broadcast %cst_145 : f32 to vector<8x128xf32>
    %489 = arith.addf %488, %487 : vector<8x128xf32>
    %490 = arith.divf %488, %489 : vector<8x128xf32>
    %491 = arith.mulf %482, %457 : vector<8x128xf32>
    %492 = arith.mulf %476, %484 : vector<8x128xf32>
    %493 = arith.addf %491, %492 : vector<8x128xf32>
    %494 = math.tanh %493 : vector<8x128xf32>
    %495 = arith.mulf %490, %494 : vector<8x128xf32>
    %496 = vector.extract_strided_slice %468 {offsets = [0, 512], sizes = [8, 512], strides = [1, 1]} : vector<8x1024xf32> to vector<8x512xf32>
    %497 = arith.addf %496, %467 : vector<8x512xf32>
    %498 = vector.extract_strided_slice %497 {offsets = [0, 0], sizes = [8, 128], strides = [1, 1]} : vector<8x512xf32> to vector<8x128xf32>
    %499 = arith.negf %498 : vector<8x128xf32>
    %500 = math.exp %499 : vector<8x128xf32>
    %cst_146 = arith.constant 1.000000e+00 : f32
    %501 = vector.broadcast %cst_146 : f32 to vector<8x128xf32>
    %502 = arith.addf %501, %500 : vector<8x128xf32>
    %503 = arith.divf %501, %502 : vector<8x128xf32>
    %504 = vector.extract_strided_slice %497 {offsets = [0, 128], sizes = [8, 128], strides = [1, 1]} : vector<8x512xf32> to vector<8x128xf32>
    %505 = arith.negf %504 : vector<8x128xf32>
    %506 = math.exp %505 : vector<8x128xf32>
    %cst_147 = arith.constant 1.000000e+00 : f32
    %507 = vector.broadcast %cst_147 : f32 to vector<8x128xf32>
    %508 = arith.addf %507, %506 : vector<8x128xf32>
    %509 = arith.divf %507, %508 : vector<8x128xf32>
    %510 = vector.extract_strided_slice %497 {offsets = [0, 256], sizes = [8, 128], strides = [1, 1]} : vector<8x512xf32> to vector<8x128xf32>
    %511 = math.tanh %510 : vector<8x128xf32>
    %512 = vector.extract_strided_slice %497 {offsets = [0, 384], sizes = [8, 128], strides = [1, 1]} : vector<8x512xf32> to vector<8x128xf32>
    %513 = arith.negf %512 : vector<8x128xf32>
    %514 = math.exp %513 : vector<8x128xf32>
    %cst_148 = arith.constant 1.000000e+00 : f32
    %515 = vector.broadcast %cst_148 : f32 to vector<8x128xf32>
    %516 = arith.addf %515, %514 : vector<8x128xf32>
    %517 = arith.divf %515, %516 : vector<8x128xf32>
    %518 = arith.mulf %509, %458 : vector<8x128xf32>
    %519 = arith.mulf %503, %511 : vector<8x128xf32>
    %520 = arith.addf %518, %519 : vector<8x128xf32>
    %521 = math.tanh %520 : vector<8x128xf32>
    %522 = arith.mulf %517, %521 : vector<8x128xf32>
    %523 = vector.broadcast %459 : i32 to vector<8x1xi32>
    %524 = arith.cmpi slt, %523, %4 : vector<8x1xi32>
    %c7_i32_149 = arith.constant 7 : i32
    %525 = arith.subi %c7_i32_149, %459 : i32
    %526 = vector.broadcast %525 : i32 to vector<8x1xi32>
    %527 = arith.cmpi slt, %526, %4 : vector<8x1xi32>
    %528 = vector.extract_strided_slice %456 {offsets = [0, 0], sizes = [8, 128], strides = [1, 1]} : vector<8x256xf32> to vector<8x128xf32>
    %529 = vector.shape_cast %524 : vector<8x1xi1> to vector<8x1xi1>
    %530 = vector.broadcast %529 : vector<8x1xi1> to vector<8x128xi1>
    %531 = arith.select %530, %495, %528 : vector<8x128xi1>, vector<8x128xf32>
    %c0_150 = arith.constant 0 : index
    %c0_151 = arith.constant 0 : index
    %532 = vector.load %arg7[%c0_150, %c0_151] : memref<8x256xf32, #tpu.memory_space<vmem>>, vector<8x128xf32>
    tpu.vector_store %arg7[%c0_150, %c0_151], %531 {strides = array<i32>} : memref<8x256xf32, #tpu.memory_space<vmem>>, vector<8x128xf32>,
    %533 = vector.extract_strided_slice %456 {offsets = [0, 128], sizes = [8, 128], strides = [1, 1]} : vector<8x256xf32> to vector<8x128xf32>
    %534 = vector.shape_cast %527 : vector<8x1xi1> to vector<8x1xi1>
    %535 = vector.broadcast %534 : vector<8x1xi1> to vector<8x128xi1>
    %536 = arith.select %535, %522, %533 : vector<8x128xi1>, vector<8x128xf32>
    %c0_152 = arith.constant 0 : index
    %c128_153 = arith.constant 128 : index
    %537 = vector.load %arg7[%c0_152, %c128_153] : memref<8x256xf32, #tpu.memory_space<vmem>>, vector<8x128xf32>
    tpu.vector_store %arg7[%c0_152, %c128_153], %536 {strides = array<i32>} : memref<8x256xf32, #tpu.memory_space<vmem>>, vector<8x128xf32>,
    %538 = vector.shape_cast %524 : vector<8x1xi1> to vector<8x1xi1>
    %539 = vector.broadcast %538 : vector<8x1xi1> to vector<8x128xi1>
    %540 = arith.select %539, %493, %457 : vector<8x128xi1>, vector<8x128xf32>
    %c0_154 = arith.constant 0 : index
    %c0_155 = arith.constant 0 : index
    %541 = vector.load %arg8[%c0_154, %c0_155] : memref<8x128xf32, #tpu.memory_space<vmem>>, vector<8x128xf32>
    tpu.vector_store %arg8[%c0_154, %c0_155], %540 {strides = array<i32>} : memref<8x128xf32, #tpu.memory_space<vmem>>, vector<8x128xf32>,
    %542 = vector.shape_cast %527 : vector<8x1xi1> to vector<8x1xi1>
    %543 = vector.broadcast %542 : vector<8x1xi1> to vector<8x128xi1>
    %544 = arith.select %543, %520, %458 : vector<8x128xi1>, vector<8x128xf32>
    %c0_156 = arith.constant 0 : index
    %c0_157 = arith.constant 0 : index
    %545 = vector.load %arg9[%c0_156, %c0_157] : memref<8x128xf32, #tpu.memory_space<vmem>>, vector<8x128xf32>
    tpu.vector_store %arg9[%c0_156, %c0_157], %544 {strides = array<i32>} : memref<8x128xf32, #tpu.memory_space<vmem>>, vector<8x128xf32>,
    %c6_i32 = arith.constant 6 : i32
    %c0_158 = arith.constant 0 : index
    %c0_159 = arith.constant 0 : index
    %546 = vector.load %arg7[%c0_158, %c0_159] : memref<8x256xf32, #tpu.memory_space<vmem>>, vector<8x256xf32>
    %c0_160 = arith.constant 0 : index
    %c0_161 = arith.constant 0 : index
    %547 = vector.load %arg8[%c0_160, %c0_161] : memref<8x128xf32, #tpu.memory_space<vmem>>, vector<8x128xf32>
    %c0_162 = arith.constant 0 : index
    %c0_163 = arith.constant 0 : index
    %548 = vector.load %arg9[%c0_162, %c0_163] : memref<8x128xf32, #tpu.memory_space<vmem>>, vector<8x128xf32>
    %549 = arith.addi %5, %c6_i32 : i32
    %550 = arith.index_cast %c6_i32 : i32 to index
    %c0_164 = arith.constant 0 : index
    %c0_165 = arith.constant 0 : index
    %551 = vector.load %arg2[%550, %c0_164, %c0_165] : memref<8x8x512xbf16, #tpu.memory_space<vmem>>, vector<1x8x512xbf16>
    %552 = vector.shape_cast %551 : vector<1x8x512xbf16> to vector<8x512xbf16>
    %553 = arith.extf %552 : vector<8x512xbf16> to vector<8x512xf32>
    %554 = arith.index_cast %c6_i32 : i32 to index
    %c0_166 = arith.constant 0 : index
    %c0_167 = arith.constant 0 : index
    %555 = vector.load %arg3[%554, %c0_166, %c0_167] : memref<8x8x512xbf16, #tpu.memory_space<vmem>>, vector<1x8x512xbf16>
    %556 = vector.shape_cast %555 : vector<1x8x512xbf16> to vector<8x512xbf16>
    %557 = arith.extf %556 : vector<8x512xbf16> to vector<8x512xf32>
    %cst_168 = arith.constant dense<0.000000e+00> : vector<8x1024xf32>
    %558 = tpu.matmul %546, %3, %cst_168 {dimension_numbers = #tpu.dot_dimension_numbers<[1], [0], [0], [1], [0, 0, 1, 1], [], []>} : vector<8x256xf32>, vector<256x1024xf32>, vector<8x1024xf32> -> vector<8x1024xf32>
    %559 = vector.extract_strided_slice %558 {offsets = [0, 0], sizes = [8, 512], strides = [1, 1]} : vector<8x1024xf32> to vector<8x512xf32>
    %560 = arith.addf %559, %553 : vector<8x512xf32>
    %561 = vector.extract_strided_slice %560 {offsets = [0, 0], sizes = [8, 128], strides = [1, 1]} : vector<8x512xf32> to vector<8x128xf32>
    %562 = arith.negf %561 : vector<8x128xf32>
    %563 = math.exp %562 : vector<8x128xf32>
    %cst_169 = arith.constant 1.000000e+00 : f32
    %564 = vector.broadcast %cst_169 : f32 to vector<8x128xf32>
    %565 = arith.addf %564, %563 : vector<8x128xf32>
    %566 = arith.divf %564, %565 : vector<8x128xf32>
    %567 = vector.extract_strided_slice %560 {offsets = [0, 128], sizes = [8, 128], strides = [1, 1]} : vector<8x512xf32> to vector<8x128xf32>
    %568 = arith.negf %567 : vector<8x128xf32>
    %569 = math.exp %568 : vector<8x128xf32>
    %cst_170 = arith.constant 1.000000e+00 : f32
    %570 = vector.broadcast %cst_170 : f32 to vector<8x128xf32>
    %571 = arith.addf %570, %569 : vector<8x128xf32>
    %572 = arith.divf %570, %571 : vector<8x128xf32>
    %573 = vector.extract_strided_slice %560 {offsets = [0, 256], sizes = [8, 128], strides = [1, 1]} : vector<8x512xf32> to vector<8x128xf32>
    %574 = math.tanh %573 : vector<8x128xf32>
    %575 = vector.extract_strided_slice %560 {offsets = [0, 384], sizes = [8, 128], strides = [1, 1]} : vector<8x512xf32> to vector<8x128xf32>
    %576 = arith.negf %575 : vector<8x128xf32>
    %577 = math.exp %576 : vector<8x128xf32>
    %cst_171 = arith.constant 1.000000e+00 : f32
    %578 = vector.broadcast %cst_171 : f32 to vector<8x128xf32>
    %579 = arith.addf %578, %577 : vector<8x128xf32>
    %580 = arith.divf %578, %579 : vector<8x128xf32>
    %581 = arith.mulf %572, %547 : vector<8x128xf32>
    %582 = arith.mulf %566, %574 : vector<8x128xf32>
    %583 = arith.addf %581, %582 : vector<8x128xf32>
    %584 = math.tanh %583 : vector<8x128xf32>
    %585 = arith.mulf %580, %584 : vector<8x128xf32>
    %586 = vector.extract_strided_slice %558 {offsets = [0, 512], sizes = [8, 512], strides = [1, 1]} : vector<8x1024xf32> to vector<8x512xf32>
    %587 = arith.addf %586, %557 : vector<8x512xf32>
    %588 = vector.extract_strided_slice %587 {offsets = [0, 0], sizes = [8, 128], strides = [1, 1]} : vector<8x512xf32> to vector<8x128xf32>
    %589 = arith.negf %588 : vector<8x128xf32>
    %590 = math.exp %589 : vector<8x128xf32>
    %cst_172 = arith.constant 1.000000e+00 : f32
    %591 = vector.broadcast %cst_172 : f32 to vector<8x128xf32>
    %592 = arith.addf %591, %590 : vector<8x128xf32>
    %593 = arith.divf %591, %592 : vector<8x128xf32>
    %594 = vector.extract_strided_slice %587 {offsets = [0, 128], sizes = [8, 128], strides = [1, 1]} : vector<8x512xf32> to vector<8x128xf32>
    %595 = arith.negf %594 : vector<8x128xf32>
    %596 = math.exp %595 : vector<8x128xf32>
    %cst_173 = arith.constant 1.000000e+00 : f32
    %597 = vector.broadcast %cst_173 : f32 to vector<8x128xf32>
    %598 = arith.addf %597, %596 : vector<8x128xf32>
    %599 = arith.divf %597, %598 : vector<8x128xf32>
    %600 = vector.extract_strided_slice %587 {offsets = [0, 256], sizes = [8, 128], strides = [1, 1]} : vector<8x512xf32> to vector<8x128xf32>
    %601 = math.tanh %600 : vector<8x128xf32>
    %602 = vector.extract_strided_slice %587 {offsets = [0, 384], sizes = [8, 128], strides = [1, 1]} : vector<8x512xf32> to vector<8x128xf32>
    %603 = arith.negf %602 : vector<8x128xf32>
    %604 = math.exp %603 : vector<8x128xf32>
    %cst_174 = arith.constant 1.000000e+00 : f32
    %605 = vector.broadcast %cst_174 : f32 to vector<8x128xf32>
    %606 = arith.addf %605, %604 : vector<8x128xf32>
    %607 = arith.divf %605, %606 : vector<8x128xf32>
    %608 = arith.mulf %599, %548 : vector<8x128xf32>
    %609 = arith.mulf %593, %601 : vector<8x128xf32>
    %610 = arith.addf %608, %609 : vector<8x128xf32>
    %611 = math.tanh %610 : vector<8x128xf32>
    %612 = arith.mulf %607, %611 : vector<8x128xf32>
    %613 = vector.broadcast %549 : i32 to vector<8x1xi32>
    %614 = arith.cmpi slt, %613, %4 : vector<8x1xi32>
    %c7_i32_175 = arith.constant 7 : i32
    %615 = arith.subi %c7_i32_175, %549 : i32
    %616 = vector.broadcast %615 : i32 to vector<8x1xi32>
    %617 = arith.cmpi slt, %616, %4 : vector<8x1xi32>
    %618 = vector.extract_strided_slice %546 {offsets = [0, 0], sizes = [8, 128], strides = [1, 1]} : vector<8x256xf32> to vector<8x128xf32>
    %619 = vector.shape_cast %614 : vector<8x1xi1> to vector<8x1xi1>
    %620 = vector.broadcast %619 : vector<8x1xi1> to vector<8x128xi1>
    %621 = arith.select %620, %585, %618 : vector<8x128xi1>, vector<8x128xf32>
    %c0_176 = arith.constant 0 : index
    %c0_177 = arith.constant 0 : index
    %622 = vector.load %arg7[%c0_176, %c0_177] : memref<8x256xf32, #tpu.memory_space<vmem>>, vector<8x128xf32>
    tpu.vector_store %arg7[%c0_176, %c0_177], %621 {strides = array<i32>} : memref<8x256xf32, #tpu.memory_space<vmem>>, vector<8x128xf32>,
    %623 = vector.extract_strided_slice %546 {offsets = [0, 128], sizes = [8, 128], strides = [1, 1]} : vector<8x256xf32> to vector<8x128xf32>
    %624 = vector.shape_cast %617 : vector<8x1xi1> to vector<8x1xi1>
    %625 = vector.broadcast %624 : vector<8x1xi1> to vector<8x128xi1>
    %626 = arith.select %625, %612, %623 : vector<8x128xi1>, vector<8x128xf32>
    %c0_178 = arith.constant 0 : index
    %c128_179 = arith.constant 128 : index
    %627 = vector.load %arg7[%c0_178, %c128_179] : memref<8x256xf32, #tpu.memory_space<vmem>>, vector<8x128xf32>
    tpu.vector_store %arg7[%c0_178, %c128_179], %626 {strides = array<i32>} : memref<8x256xf32, #tpu.memory_space<vmem>>, vector<8x128xf32>,
    %628 = vector.shape_cast %614 : vector<8x1xi1> to vector<8x1xi1>
    %629 = vector.broadcast %628 : vector<8x1xi1> to vector<8x128xi1>
    %630 = arith.select %629, %583, %547 : vector<8x128xi1>, vector<8x128xf32>
    %c0_180 = arith.constant 0 : index
    %c0_181 = arith.constant 0 : index
    %631 = vector.load %arg8[%c0_180, %c0_181] : memref<8x128xf32, #tpu.memory_space<vmem>>, vector<8x128xf32>
    tpu.vector_store %arg8[%c0_180, %c0_181], %630 {strides = array<i32>} : memref<8x128xf32, #tpu.memory_space<vmem>>, vector<8x128xf32>,
    %632 = vector.shape_cast %617 : vector<8x1xi1> to vector<8x1xi1>
    %633 = vector.broadcast %632 : vector<8x1xi1> to vector<8x128xi1>
    %634 = arith.select %633, %610, %548 : vector<8x128xi1>, vector<8x128xf32>
    %c0_182 = arith.constant 0 : index
    %c0_183 = arith.constant 0 : index
    %635 = vector.load %arg9[%c0_182, %c0_183] : memref<8x128xf32, #tpu.memory_space<vmem>>, vector<8x128xf32>
    tpu.vector_store %arg9[%c0_182, %c0_183], %634 {strides = array<i32>} : memref<8x128xf32, #tpu.memory_space<vmem>>, vector<8x128xf32>,
    %c7_i32_184 = arith.constant 7 : i32
    %c0_185 = arith.constant 0 : index
    %c0_186 = arith.constant 0 : index
    %636 = vector.load %arg7[%c0_185, %c0_186] : memref<8x256xf32, #tpu.memory_space<vmem>>, vector<8x256xf32>
    %c0_187 = arith.constant 0 : index
    %c0_188 = arith.constant 0 : index
    %637 = vector.load %arg8[%c0_187, %c0_188] : memref<8x128xf32, #tpu.memory_space<vmem>>, vector<8x128xf32>
    %c0_189 = arith.constant 0 : index
    %c0_190 = arith.constant 0 : index
    %638 = vector.load %arg9[%c0_189, %c0_190] : memref<8x128xf32, #tpu.memory_space<vmem>>, vector<8x128xf32>
    %639 = arith.addi %5, %c7_i32_184 : i32
    %640 = arith.index_cast %c7_i32_184 : i32 to index
    %c0_191 = arith.constant 0 : index
    %c0_192 = arith.constant 0 : index
    %641 = vector.load %arg2[%640, %c0_191, %c0_192] : memref<8x8x512xbf16, #tpu.memory_space<vmem>>, vector<1x8x512xbf16>
    %642 = vector.shape_cast %641 : vector<1x8x512xbf16> to vector<8x512xbf16>
    %643 = arith.extf %642 : vector<8x512xbf16> to vector<8x512xf32>
    %644 = arith.index_cast %c7_i32_184 : i32 to index
    %c0_193 = arith.constant 0 : index
    %c0_194 = arith.constant 0 : index
    %645 = vector.load %arg3[%644, %c0_193, %c0_194] : memref<8x8x512xbf16, #tpu.memory_space<vmem>>, vector<1x8x512xbf16>
    %646 = vector.shape_cast %645 : vector<1x8x512xbf16> to vector<8x512xbf16>
    %647 = arith.extf %646 : vector<8x512xbf16> to vector<8x512xf32>
    %cst_195 = arith.constant dense<0.000000e+00> : vector<8x1024xf32>
    %648 = tpu.matmul %636, %3, %cst_195 {dimension_numbers = #tpu.dot_dimension_numbers<[1], [0], [0], [1], [0, 0, 1, 1], [], []>} : vector<8x256xf32>, vector<256x1024xf32>, vector<8x1024xf32> -> vector<8x1024xf32>
    %649 = vector.extract_strided_slice %648 {offsets = [0, 0], sizes = [8, 512], strides = [1, 1]} : vector<8x1024xf32> to vector<8x512xf32>
    %650 = arith.addf %649, %643 : vector<8x512xf32>
    %651 = vector.extract_strided_slice %650 {offsets = [0, 0], sizes = [8, 128], strides = [1, 1]} : vector<8x512xf32> to vector<8x128xf32>
    %652 = arith.negf %651 : vector<8x128xf32>
    %653 = math.exp %652 : vector<8x128xf32>
    %cst_196 = arith.constant 1.000000e+00 : f32
    %654 = vector.broadcast %cst_196 : f32 to vector<8x128xf32>
    %655 = arith.addf %654, %653 : vector<8x128xf32>
    %656 = arith.divf %654, %655 : vector<8x128xf32>
    %657 = vector.extract_strided_slice %650 {offsets = [0, 128], sizes = [8, 128], strides = [1, 1]} : vector<8x512xf32> to vector<8x128xf32>
    %658 = arith.negf %657 : vector<8x128xf32>
    %659 = math.exp %658 : vector<8x128xf32>
    %cst_197 = arith.constant 1.000000e+00 : f32
    %660 = vector.broadcast %cst_197 : f32 to vector<8x128xf32>
    %661 = arith.addf %660, %659 : vector<8x128xf32>
    %662 = arith.divf %660, %661 : vector<8x128xf32>
    %663 = vector.extract_strided_slice %650 {offsets = [0, 256], sizes = [8, 128], strides = [1, 1]} : vector<8x512xf32> to vector<8x128xf32>
    %664 = math.tanh %663 : vector<8x128xf32>
    %665 = vector.extract_strided_slice %650 {offsets = [0, 384], sizes = [8, 128], strides = [1, 1]} : vector<8x512xf32> to vector<8x128xf32>
    %666 = arith.negf %665 : vector<8x128xf32>
    %667 = math.exp %666 : vector<8x128xf32>
    %cst_198 = arith.constant 1.000000e+00 : f32
    %668 = vector.broadcast %cst_198 : f32 to vector<8x128xf32>
    %669 = arith.addf %668, %667 : vector<8x128xf32>
    %670 = arith.divf %668, %669 : vector<8x128xf32>
    %671 = arith.mulf %662, %637 : vector<8x128xf32>
    %672 = arith.mulf %656, %664 : vector<8x128xf32>
    %673 = arith.addf %671, %672 : vector<8x128xf32>
    %674 = math.tanh %673 : vector<8x128xf32>
    %675 = arith.mulf %670, %674 : vector<8x128xf32>
    %676 = vector.extract_strided_slice %648 {offsets = [0, 512], sizes = [8, 512], strides = [1, 1]} : vector<8x1024xf32> to vector<8x512xf32>
    %677 = arith.addf %676, %647 : vector<8x512xf32>
    %678 = vector.extract_strided_slice %677 {offsets = [0, 0], sizes = [8, 128], strides = [1, 1]} : vector<8x512xf32> to vector<8x128xf32>
    %679 = arith.negf %678 : vector<8x128xf32>
    %680 = math.exp %679 : vector<8x128xf32>
    %cst_199 = arith.constant 1.000000e+00 : f32
    %681 = vector.broadcast %cst_199 : f32 to vector<8x128xf32>
    %682 = arith.addf %681, %680 : vector<8x128xf32>
    %683 = arith.divf %681, %682 : vector<8x128xf32>
    %684 = vector.extract_strided_slice %677 {offsets = [0, 128], sizes = [8, 128], strides = [1, 1]} : vector<8x512xf32> to vector<8x128xf32>
    %685 = arith.negf %684 : vector<8x128xf32>
    %686 = math.exp %685 : vector<8x128xf32>
    %cst_200 = arith.constant 1.000000e+00 : f32
    %687 = vector.broadcast %cst_200 : f32 to vector<8x128xf32>
    %688 = arith.addf %687, %686 : vector<8x128xf32>
    %689 = arith.divf %687, %688 : vector<8x128xf32>
    %690 = vector.extract_strided_slice %677 {offsets = [0, 256], sizes = [8, 128], strides = [1, 1]} : vector<8x512xf32> to vector<8x128xf32>
    %691 = math.tanh %690 : vector<8x128xf32>
    %692 = vector.extract_strided_slice %677 {offsets = [0, 384], sizes = [8, 128], strides = [1, 1]} : vector<8x512xf32> to vector<8x128xf32>
    %693 = arith.negf %692 : vector<8x128xf32>
    %694 = math.exp %693 : vector<8x128xf32>
    %cst_201 = arith.constant 1.000000e+00 : f32
    %695 = vector.broadcast %cst_201 : f32 to vector<8x128xf32>
    %696 = arith.addf %695, %694 : vector<8x128xf32>
    %697 = arith.divf %695, %696 : vector<8x128xf32>
    %698 = arith.mulf %689, %638 : vector<8x128xf32>
    %699 = arith.mulf %683, %691 : vector<8x128xf32>
    %700 = arith.addf %698, %699 : vector<8x128xf32>
    %701 = math.tanh %700 : vector<8x128xf32>
    %702 = arith.mulf %697, %701 : vector<8x128xf32>
    %703 = vector.broadcast %639 : i32 to vector<8x1xi32>
    %704 = arith.cmpi slt, %703, %4 : vector<8x1xi32>
    %c7_i32_202 = arith.constant 7 : i32
    %705 = arith.subi %c7_i32_202, %639 : i32
    %706 = vector.broadcast %705 : i32 to vector<8x1xi32>
    %707 = arith.cmpi slt, %706, %4 : vector<8x1xi32>
    %708 = vector.extract_strided_slice %636 {offsets = [0, 0], sizes = [8, 128], strides = [1, 1]} : vector<8x256xf32> to vector<8x128xf32>
    %709 = vector.shape_cast %704 : vector<8x1xi1> to vector<8x1xi1>
    %710 = vector.broadcast %709 : vector<8x1xi1> to vector<8x128xi1>
    %711 = arith.select %710, %675, %708 : vector<8x128xi1>, vector<8x128xf32>
    %c0_203 = arith.constant 0 : index
    %c0_204 = arith.constant 0 : index
    %712 = vector.load %arg7[%c0_203, %c0_204] : memref<8x256xf32, #tpu.memory_space<vmem>>, vector<8x128xf32>
    tpu.vector_store %arg7[%c0_203, %c0_204], %711 {strides = array<i32>} : memref<8x256xf32, #tpu.memory_space<vmem>>, vector<8x128xf32>,
    %713 = vector.extract_strided_slice %636 {offsets = [0, 128], sizes = [8, 128], strides = [1, 1]} : vector<8x256xf32> to vector<8x128xf32>
    %714 = vector.shape_cast %707 : vector<8x1xi1> to vector<8x1xi1>
    %715 = vector.broadcast %714 : vector<8x1xi1> to vector<8x128xi1>
    %716 = arith.select %715, %702, %713 : vector<8x128xi1>, vector<8x128xf32>
    %c0_205 = arith.constant 0 : index
    %c128_206 = arith.constant 128 : index
    %717 = vector.load %arg7[%c0_205, %c128_206] : memref<8x256xf32, #tpu.memory_space<vmem>>, vector<8x128xf32>
    tpu.vector_store %arg7[%c0_205, %c128_206], %716 {strides = array<i32>} : memref<8x256xf32, #tpu.memory_space<vmem>>, vector<8x128xf32>,
    %718 = vector.shape_cast %704 : vector<8x1xi1> to vector<8x1xi1>
    %719 = vector.broadcast %718 : vector<8x1xi1> to vector<8x128xi1>
    %720 = arith.select %719, %673, %637 : vector<8x128xi1>, vector<8x128xf32>
    %c0_207 = arith.constant 0 : index
    %c0_208 = arith.constant 0 : index
    %721 = vector.load %arg8[%c0_207, %c0_208] : memref<8x128xf32, #tpu.memory_space<vmem>>, vector<8x128xf32>
    tpu.vector_store %arg8[%c0_207, %c0_208], %720 {strides = array<i32>} : memref<8x128xf32, #tpu.memory_space<vmem>>, vector<8x128xf32>,
    %722 = vector.shape_cast %707 : vector<8x1xi1> to vector<8x1xi1>
    %723 = vector.broadcast %722 : vector<8x1xi1> to vector<8x128xi1>
    %724 = arith.select %723, %700, %638 : vector<8x128xi1>, vector<8x128xf32>
    %c0_209 = arith.constant 0 : index
    %c0_210 = arith.constant 0 : index
    %725 = vector.load %arg9[%c0_209, %c0_210] : memref<8x128xf32, #tpu.memory_space<vmem>>, vector<8x128xf32>
    tpu.vector_store %arg9[%c0_209, %c0_210], %724 {strides = array<i32>} : memref<8x128xf32, #tpu.memory_space<vmem>>, vector<8x128xf32>,
    %c8_i32_211 = arith.constant 8 : i32
    %c0_i32_212 = arith.constant 0 : i32
    %726 = arith.cmpi eq, %arg1, %c0_i32_212 : i32
    %727 = arith.extui %726 : i1 to i32
    %c0_i32_213 = arith.constant 0 : i32
    %728 = arith.cmpi ne, %727, %c0_i32_213 : i32
    scf.if %728 {
      %c0_214 = arith.constant 0 : index
      %c0_215 = arith.constant 0 : index
      %729 = vector.load %arg7[%c0_214, %c0_215] : memref<8x256xf32, #tpu.memory_space<vmem>>, vector<8x256xf32>
      %c0_216 = arith.constant 0 : index
      %c0_217 = arith.constant 0 : index
      %730 = vector.load %arg6[%c0_216, %c0_217] : memref<8x256xf32, #tpu.memory_space<vmem>>, vector<8x256xf32>
      tpu.vector_store %arg6[%c0_216, %c0_217], %729 {strides = array<i32>} : memref<8x256xf32, #tpu.memory_space<vmem>>, vector<8x256xf32>,
    } else {
    }
    return
  }
  func.func @transform_0(%arg0: i32, %arg1: i32) -> (i32, i32, i32) {
    %c0_i32 = arith.constant 0 : i32
    %c0_i32_0 = arith.constant 0 : i32
    return %arg1, %arg0, %c0_i32 : i32, i32, i32
  }
  func.func @transform_1(%arg0: i32, %arg1: i32) -> (i32, i32, i32) {
    %c0_i32 = arith.constant 0 : i32
    %c0_i32_0 = arith.constant 0 : i32
    return %arg1, %arg0, %c0_i32 : i32, i32, i32
  }
  func.func @transform_2(%arg0: i32, %arg1: i32) -> (i32, i32) {
    %c0_i32 = arith.constant 0 : i32
    %c0_i32_0 = arith.constant 0 : i32
    %c0_i32_1 = arith.constant 0 : i32
    return %c0_i32, %c0_i32_0 : i32, i32
  }
  func.func @transform_3(%arg0: i32, %arg1: i32) -> (i32, i32) {
    %c0_i32 = arith.constant 0 : i32
    %c0_i32_0 = arith.constant 0 : i32
    return %arg0, %c0_i32 : i32, i32
  }
  func.func @transform_4(%arg0: i32, %arg1: i32) -> (i32, i32) {
    %c0_i32 = arith.constant 0 : i32
    %c0_i32_0 = arith.constant 0 : i32
    return %arg0, %c0_i32 : i32, i32
  }
}

</mosaic_0001>

<bundles_post_ra>
// kernel: encoder_forward.1
= control target key start
LH: loop header
LB: loop body
LE: loop exit
PB: predicated region body
PF: predicated region fallthrough
CT: control target
= control target key end

     0   :  { %v8182_v3 = vmov 0.0   ;;  %v8180_v39 = vmov 0   ;;  %s8175_s2 = inlined_call_operand.vmem [shape: f32[256,1024], index: 2, kind: input, shape index: {}]   ;;  %s8176_s3 = inlined_call_operand.vmem [shape: s32[8,1], index: 3, kind: input, shape index: {}]   ;;  %s8177_s0 = inlined_call_operand.vmem [shape: bf16[8,8,512], index: 0, kind: input, shape index: {}]   ;;  %s8178_s1 = inlined_call_operand.vmem [shape: bf16[8,8,512], index: 1, kind: input, shape index: {}]   ;;  %s8179_s4 = inlined_call_operand.vmem [shape: f32[8,256], index: 4, kind: output, shape index: {}]  }
   0x1   :  { %v26_v0 = vld [vmem:[%s8175_s2 + $0x8] sm:$0xff]  ;;  %v25_v2 = vld [vmem:[%s8175_s2] sm:$0xff]  ;;  %363 = vmatprep.mubr.f32.mxu0 %v8182_v3  ;;  %434 = vmatprep.mubr.f32.mxu1 %v8182_v3  ;;  %v28_v19 = vld [vmem:[%s8175_s2 + $0x18] sm:$0xff] }
   0x2   :  { %v34_v1 = vld [vmem:[%s8175_s2 + $0x48] sm:$0xff]  ;;  %v33_v5 = vld [vmem:[%s8175_s2 + $0x40] sm:$0xff]  ;;  %v36_v20 = vld [vmem:[%s8175_s2 + $0x58] sm:$0xff]  ;;  %5497 = vset.pattern.permute.xlu0 %v8180_v39  ;;  %5498 = vset.pattern.permute.xlu1 %v8180_v39 }
   0x3   :  { %v5793_v4 = vpack.c.bf16 %v34_v1, %v26_v0  ;;  %v42_v6 = vld [vmem:[%s8175_s2 + $0x88] sm:$0xff]  ;;  %v5804_v8 = vpack.c.bf16 %v33_v5, %v25_v2  ;;  %v41_v10 = vld [vmem:[%s8175_s2 + $0x80] sm:$0xff]  ;;  %v5845_v22 = vpack.c.bf16 %v36_v20, %v28_v19  ;;  %v27_v23 = vld [vmem:[%s8175_s2 + $0x10] sm:$0xff] }
   0x4   :  { %v50_v7 = vld [vmem:[%s8175_s2 + $0xc8] sm:$0xff]  ;;  %v49_v11 = vld [vmem:[%s8175_s2 + $0xc0] sm:$0xff]  ;;  %v35_v24 = vld [vmem:[%s8175_s2 + $0x50] sm:$0xff] }
   0x5   :  { %8463 = vst [vmem:[#allocation5_spill] sm:$0xff] %v5793_v4  ;;  %8464 = vst [vmem:[#allocation6_spill] sm:$0xff] %v5804_v8  ;;  %v5806_v9 = vpack.c.bf16 %v50_v7, %v42_v6  ;;  %v58_v12 = vld [vmem:[%s8175_s2 + $0x108] sm:$0xff]  ;;  %3448 = vmatprep.subr.bf16.mxu0 %v5793_v4  ;;  %v5822_v14 = vpack.c.bf16 %v49_v11, %v41_v10  ;;  %v57_v15 = vld [vmem:[%s8175_s2 + $0x100] sm:$0xff]  ;;  %v5853_v25 = vpack.c.bf16 %v35_v24, %v27_v23 }
   0x6   :  { %v66_v13 = vld [vmem:[%s8175_s2 + $0x148] sm:$0xff]  ;;  %3450 = vmatpush1.bf16.msra.mxu0 %v5804_v8  ;;  %v65_v16 = vld [vmem:[%s8175_s2 + $0x140] sm:$0xff]  ;;  %8468 = vst [vmem:[#allocation10_spill] sm:$0xff] %v5845_v22  ;;  %3512 = vmatprep.subr.bf16.mxu1 %v5845_v22  ;;  %v44_v27 = vld [vmem:[%s8175_s2 + $0x98] sm:$0xff] }
   0x7   :  { %8465 = vst [vmem:[#allocation7_spill] sm:$0xff] %v5806_v9  ;;  %8466 = vst [vmem:[#allocation8_spill] sm:$0xff] %v5822_v14  ;;  %3452 = vmatprep.subr.bf16.mxu0 %v5806_v9  ;;  %v5831_v17 = vpack.c.bf16 %v66_v13, %v58_v12  ;;  %v74_v18 = vld [vmem:[%s8175_s2 + $0x188] sm:$0xff]  ;;  %v5856_v26 = vpack.c.bf16 %v65_v16, %v57_v15  ;;  %v52_v28 = vld [vmem:[%s8175_s2 + $0xd8] sm:$0xff]  ;;  %3514 = vmatpush1.bf16.msra.mxu1 %v5853_v25 }
   0x8   :  { %v82_v21 = vld [vmem:[%s8175_s2 + $0x1c8] sm:$0xff]  ;;  %8469 = vst [vmem:[#allocation11_spill] sm:$0xff] %v5853_v25  ;;  %v43_v29 = vld [vmem:[%s8175_s2 + $0x90] sm:$0xff]  ;;  %v73_v31 = vld [vmem:[%s8175_s2 + $0x180] sm:$0xff]  ;;  %v5878_v33 = vpack.c.bf16 %v52_v28, %v44_v27 }
   0x9   :  { %8467 = vst [vmem:[#allocation9_spill] sm:$0xff] %v5831_v17  ;;  %8470 = vst [vmem:[#allocation12_spill] sm:$0xff] %v5856_v26  ;;  %v5869_v30 = vpack.c.bf16 %v82_v21, %v74_v18  ;;  %v81_v32 = vld [vmem:[%s8175_s2 + $0x1c0] sm:$0xff]  ;;  %v51_v34 = vld [vmem:[%s8175_s2 + $0xd0] sm:$0xff] }
   0xa   :  { %3454 = vmatpush1.bf16.msra.mxu0 %v5822_v14  ;;  %8472 = vst [vmem:[#allocation14_spill] sm:$0xff] %v5878_v33  ;;  %v90_v35 = vld [vmem:[%s8175_s2 + $0x208] sm:$0xff]  ;;  %v5889_v37 = vpack.c.bf16 %v51_v34, %v43_v29  ;;  %v60_v38 = vld [vmem:[%s8175_s2 + $0x118] sm:$0xff]  ;;  %3516 = vmatprep.subr.bf16.mxu1 %v5878_v33  ;;  %v59_v41 = vld [vmem:[%s8175_s2 + $0x110] sm:$0xff]  ;;  %v5907_v43 = vpack.c.bf16 %v81_v32, %v73_v31 }
   0xb   :  { %3456 = vmatprep.subr.bf16.mxu0 %v5831_v17  ;;  %8471 = vst [vmem:[#allocation13_spill] sm:$0xff] %v5869_v30  ;;  %v98_v36 = vld [vmem:[%s8175_s2 + $0x248] sm:$0xff]  ;;  %v68_v40 = vld [vmem:[%s8175_s2 + $0x158] sm:$0xff]  ;;  %v67_v42 = vld [vmem:[%s8175_s2 + $0x150] sm:$0xff] }
   0xc   :  { %8473 = vst [vmem:[#allocation15_spill] sm:$0xff] %v5889_v37  ;;  %8474 = vst [vmem:[#allocation16_spill] sm:$0xff] %v5907_v43  ;;  %v89_v44 = vld [vmem:[%s8175_s2 + $0x200] sm:$0xff]  ;;  %v5915_v46 = vpack.c.bf16 %v68_v40, %v60_v38  ;;  %v5918_v47 = vpack.c.bf16 %v98_v36, %v90_v35  ;;  %3518 = vmatpush1.bf16.msra.mxu1 %v5889_v37  ;;  %v106_v48 = vld [vmem:[%s8175_s2 + $0x288] sm:$0xff]  ;;  %v5924_v49 = vpack.c.bf16 %v67_v42, %v59_v41 }
   0xd   :  { %v97_v45 = vld [vmem:[%s8175_s2 + $0x240] sm:$0xff]  ;;  %v76_v50 = vld [vmem:[%s8175_s2 + $0x198] sm:$0xff]  ;;  %v114_v52 = vld [vmem:[%s8175_s2 + $0x2c8] sm:$0xff] }
   0xe   :  { %3458 = vmatpush1.bf16.msra.mxu0 %v5856_v26  ;;  %8475 = vst [vmem:[#allocation17_spill] sm:$0xff] %v5915_v46  ;;  %8476 = vst [vmem:[#allocation18_spill] sm:$0xff] %v5918_v47  ;;  %v84_v51 = vld [vmem:[%s8175_s2 + $0x1d8] sm:$0xff]  ;;  %3520 = vmatprep.subr.bf16.mxu1 %v5915_v46  ;;  %v75_v54 = vld [vmem:[%s8175_s2 + $0x190] sm:$0xff]  ;;  %v5945_v56 = vpack.c.bf16 %v97_v45, %v89_v44  ;;  %v5954_v59 = vpack.c.bf16 %v114_v52, %v106_v48 }
   0xf   :  { %3460 = vmatprep.subr.bf16.mxu0 %v5869_v30  ;;  %8477 = vst [vmem:[#allocation19_spill] sm:$0xff] %v5924_v49  ;;  %v5936_v53 = vpack.c.bf16 %v84_v51, %v76_v50  ;;  %v83_v55 = vld [vmem:[%s8175_s2 + $0x1d0] sm:$0xff]  ;;  %v92_v57 = vld [vmem:[%s8175_s2 + $0x218] sm:$0xff]  ;;  %v105_v60 = vld [vmem:[%s8175_s2 + $0x280] sm:$0xff] }
  0x10   :  { %8479 = vst [vmem:[#allocation21_spill] sm:$0xff] %v5945_v56  ;;  %v100_v58 = vld [vmem:[%s8175_s2 + $0x258] sm:$0xff]  ;;  %8480 = vst [vmem:[#allocation22_spill] sm:$0xff] %v5954_v59  ;;  %v113_v61 = vld [vmem:[%s8175_s2 + $0x2c0] sm:$0xff]  ;;  %3522 = vmatpush1.bf16.msra.mxu1 %v5924_v49  ;;  %v5966_v63 = vpack.c.bf16 %v83_v55, %v75_v54 }
  0x11   :  { %8478 = vst [vmem:[#allocation20_spill] sm:$0xff] %v5936_v53  ;;  %v122_v62 = vld [vmem:[%s8175_s2 + $0x308] sm:$0xff]  ;;  %3524 = vmatprep.subr.bf16.mxu1 %v5936_v53  ;;  %v5972_v1 = vpack.c.bf16 %v100_v58, %v92_v57  ;;  %v91_v2 = vld [vmem:[%s8175_s2 + $0x210] sm:$0xff]  ;;  %v108_v6 = vld [vmem:[%s8175_s2 + $0x298] sm:$0xff]  ;;  %v5987_v10 = vpack.c.bf16 %v113_v61, %v105_v60 }
  0x12   :  { %3462 = vmatpush1.bf16.msra.mxu0 %v5907_v43  ;;  %8481 = vst [vmem:[#allocation23_spill] sm:$0xff] %v5966_v63  ;;  %v130_v0 = vld [vmem:[%s8175_s2 + $0x348] sm:$0xff]  ;;  %v99_v5 = vld [vmem:[%s8175_s2 + $0x250] sm:$0xff]  ;;  %v116_v7 = vld [vmem:[%s8175_s2 + $0x2d8] sm:$0xff] }
  0x13   :  { %3464 = vmatprep.subr.bf16.mxu0 %v5918_v47  ;;  %8482 = vst [vmem:[#allocation24_spill] sm:$0xff] %v5972_v1  ;;  %8483 = vst [vmem:[#allocation25_spill] sm:$0xff] %v5987_v10  ;;  %v5990_v11 = vpack.c.bf16 %v130_v0, %v122_v62  ;;  %v121_v12 = vld [vmem:[%s8175_s2 + $0x300] sm:$0xff]  ;;  %v138_v15 = vld [vmem:[%s8175_s2 + $0x388] sm:$0xff]  ;;  %v6002_v16 = vpack.c.bf16 %v99_v5, %v91_v2  ;;  %v6008_v19 = vpack.c.bf16 %v116_v7, %v108_v6 }
  0x14   :  { %v129_v13 = vld [vmem:[%s8175_s2 + $0x340] sm:$0xff]  ;;  %3526 = vmatpush1.bf16.msra.mxu1 %v5966_v63  ;;  %v146_v18 = vld [vmem:[%s8175_s2 + $0x3c8] sm:$0xff]  ;;  %v107_v20 = vld [vmem:[%s8175_s2 + $0x290] sm:$0xff] }
  0x15   :  { %8484 = vst [vmem:[#allocation26_spill] sm:$0xff] %v5990_v11  ;;  %8485 = vst [vmem:[#allocation27_spill] sm:$0xff] %v6002_v16  ;;  %3528 = vmatprep.subr.bf16.mxu1 %v5972_v1  ;;  %v115_v21 = vld [vmem:[%s8175_s2 + $0x2d0] sm:$0xff]  ;;  %v124_v23 = vld [vmem:[%s8175_s2 + $0x318] sm:$0xff]  ;;  %v6023_v27 = vpack.c.bf16 %v129_v13, %v121_v12  ;;  %v6026_v28 = vpack.c.bf16 %v146_v18, %v138_v15 }
  0x16   :  { %3466 = vmatpush1.bf16.msra.mxu0 %v5945_v56  ;;  %8486 = vst [vmem:[#allocation28_spill] sm:$0xff] %v6008_v19  ;;  %v132_v24 = vld [vmem:[%s8175_s2 + $0x358] sm:$0xff]  ;;  %v137_v29 = vld [vmem:[%s8175_s2 + $0x380] sm:$0xff]  ;;  %v154_v32 = vld [vmem:[%s8175_s2 + $0x408] sm:$0xff]  ;;  %v6038_v34 = vpack.c.bf16 %v115_v21, %v107_v20 }
  0x17   :  { %3468 = vmatprep.subr.bf16.mxu0 %v5954_v59  ;;  %8487 = vst [vmem:[#allocation29_spill] sm:$0xff] %v6023_v27  ;;  %8488 = vst [vmem:[#allocation30_spill] sm:$0xff] %v6026_v28  ;;  %v145_v31 = vld [vmem:[%s8175_s2 + $0x3c0] sm:$0xff]  ;;  %v162_v35 = vld [vmem:[%s8175_s2 + $0x448] sm:$0xff]  ;;  %v6044_v36 = vpack.c.bf16 %v132_v24, %v124_v23 }
  0x18   :  { %3530 = vmatpush1.bf16.msra.mxu1 %v6002_v16  ;;  %8489 = vst [vmem:[#allocation31_spill] sm:$0xff] %v6038_v34  ;;  %v123_v38 = vld [vmem:[%s8175_s2 + $0x310] sm:$0xff]  ;;  %v140_v41 = vld [vmem:[%s8175_s2 + $0x398] sm:$0xff]  ;;  %v6059_v44 = vpack.c.bf16 %v145_v31, %v137_v29  ;;  %v6062_v45 = vpack.c.bf16 %v162_v35, %v154_v32  ;;  %v153_v48 = vld [vmem:[%s8175_s2 + $0x400] sm:$0xff] }
  0x19   :  { %3532 = vmatprep.subr.bf16.mxu1 %v6008_v19  ;;  %8490 = vst [vmem:[#allocation32_spill] sm:$0xff] %v6044_v36  ;;  %v131_v40 = vld [vmem:[%s8175_s2 + $0x350] sm:$0xff]  ;;  %v148_v42 = vld [vmem:[%s8175_s2 + $0x3d8] sm:$0xff]  ;;  %v161_v50 = vld [vmem:[%s8175_s2 + $0x440] sm:$0xff] }
  0x1a   :  { %3470 = vmatpush1.bf16.msra.mxu0 %v5987_v10  ;;  %8491 = vst [vmem:[#allocation33_spill] sm:$0xff] %v6059_v44  ;;  %8492 = vst [vmem:[#allocation34_spill] sm:$0xff] %v6062_v45  ;;  %v170_v51 = vld [vmem:[%s8175_s2 + $0x488] sm:$0xff]  ;;  %v6074_v52 = vpack.c.bf16 %v131_v40, %v123_v38  ;;  %v6080_v55 = vpack.c.bf16 %v148_v42, %v140_v41  ;;  %v139_v57 = vld [vmem:[%s8175_s2 + $0x390] sm:$0xff]  ;;  %v6095_v62 = vpack.c.bf16 %v161_v50, %v153_v48 }
  0x1b   :  { %3472 = vmatprep.subr.bf16.mxu0 %v5990_v11  ;;  %v178_v54 = vld [vmem:[%s8175_s2 + $0x4c8] sm:$0xff]  ;;  %v147_v58 = vld [vmem:[%s8175_s2 + $0x3d0] sm:$0xff]  ;;  %v156_v60 = vld [vmem:[%s8175_s2 + $0x418] sm:$0xff] }
  0x1c   :  { %3534 = vmatpush1.bf16.msra.mxu1 %v6038_v34  ;;  %8493 = vst [vmem:[#allocation35_spill] sm:$0xff] %v6074_v52  ;;  %8494 = vst [vmem:[#allocation36_spill] sm:$0xff] %v6080_v55  ;;  %v164_v61 = vld [vmem:[%s8175_s2 + $0x458] sm:$0xff]  ;;  %v6098_v0 = vpack.c.bf16 %v178_v54, %v170_v51  ;;  %v169_v2 = vld [vmem:[%s8175_s2 + $0x480] sm:$0xff]  ;;  %v6110_v7 = vpack.c.bf16 %v147_v58, %v139_v57 }
  0x1d   :  { %3536 = vmatprep.subr.bf16.mxu1 %v6044_v36  ;;  %8495 = vst [vmem:[#allocation37_spill] sm:$0xff] %v6095_v62  ;;  %v177_v5 = vld [vmem:[%s8175_s2 + $0x4c0] sm:$0xff]  ;;  %v186_v6 = vld [vmem:[%s8175_s2 + $0x508] sm:$0xff]  ;;  %v6116_v13 = vpack.c.bf16 %v164_v61, %v156_v60  ;;  %v155_v15 = vld [vmem:[%s8175_s2 + $0x410] sm:$0xff] }
  0x1e   :  { %3474 = vmatpush1.bf16.msra.mxu0 %v6023_v27  ;;  %8496 = vst [vmem:[#allocation38_spill] sm:$0xff] %v6098_v0  ;;  %8497 = vst [vmem:[#allocation39_spill] sm:$0xff] %v6110_v7  ;;  %v194_v12 = vld [vmem:[%s8175_s2 + $0x548] sm:$0xff]  ;;  %v163_v18 = vld [vmem:[%s8175_s2 + $0x450] sm:$0xff]  ;;  %v6131_v23 = vpack.c.bf16 %v177_v5, %v169_v2 }
  0x1f   :  { %3476 = vmatprep.subr.bf16.mxu0 %v6026_v28  ;;  %8498 = vst [vmem:[#allocation40_spill] sm:$0xff] %v6116_v13  ;;  %v172_v20 = vld [vmem:[%s8175_s2 + $0x498] sm:$0xff]  ;;  %v6134_v24 = vpack.c.bf16 %v194_v12, %v186_v6  ;;  %v185_v29 = vld [vmem:[%s8175_s2 + $0x500] sm:$0xff]  ;;  %v202_v32 = vld [vmem:[%s8175_s2 + $0x588] sm:$0xff]  ;;  %v6146_v35 = vpack.c.bf16 %v163_v18, %v155_v15 }
  0x20   :  { %3538 = vmatpush1.bf16.msra.mxu1 %v6074_v52  ;;  %v180_v21 = vld [vmem:[%s8175_s2 + $0x4d8] sm:$0xff]  ;;  %8499 = vst [vmem:[#allocation41_spill] sm:$0xff] %v6131_v23  ;;  %v193_v31 = vld [vmem:[%s8175_s2 + $0x540] sm:$0xff]  ;;  %v210_v38 = vld [vmem:[%s8175_s2 + $0x5c8] sm:$0xff] }
  0x21   :  { %3540 = vmatprep.subr.bf16.mxu1 %v6080_v55  ;;  %8500 = vst [vmem:[#allocation42_spill] sm:$0xff] %v6134_v24  ;;  %8501 = vst [vmem:[#allocation43_spill] sm:$0xff] %v6146_v35  ;;  %v6152_v40 = vpack.c.bf16 %v180_v21, %v172_v20  ;;  %v171_v41 = vld [vmem:[%s8175_s2 + $0x490] sm:$0xff]  ;;  %v188_v48 = vld [vmem:[%s8175_s2 + $0x518] sm:$0xff]  ;;  %v6167_v51 = vpack.c.bf16 %v193_v31, %v185_v29  ;;  %v6170_v54 = vpack.c.bf16 %v210_v38, %v202_v32 }
  0x22   :  { %3478 = vmatpush1.bf16.msra.mxu0 %v6059_v44  ;;  %v179_v42 = vld [vmem:[%s8175_s2 + $0x4d0] sm:$0xff]  ;;  %v196_v50 = vld [vmem:[%s8175_s2 + $0x558] sm:$0xff]  ;;  %v201_v57 = vld [vmem:[%s8175_s2 + $0x580] sm:$0xff] }
  0x23   :  { %3480 = vmatprep.subr.bf16.mxu0 %v6062_v45  ;;  %8502 = vst [vmem:[#allocation44_spill] sm:$0xff] %v6152_v40  ;;  %8503 = vst [vmem:[#allocation45_spill] sm:$0xff] %v6167_v51  ;;  %v209_v58 = vld [vmem:[%s8175_s2 + $0x5c0] sm:$0xff]  ;;  %v218_v60 = vld [vmem:[%s8175_s2 + $0x608] sm:$0xff]  ;;  %v6182_v61 = vpack.c.bf16 %v179_v42, %v171_v41  ;;  %v6188_v5 = vpack.c.bf16 %v196_v50, %v188_v48 }
  0x24   :  { %3542 = vmatpush1.bf16.msra.mxu1 %v6110_v7  ;;  %8504 = vst [vmem:[#allocation46_spill] sm:$0xff] %v6170_v54  ;;  %v226_v2 = vld [vmem:[%s8175_s2 + $0x648] sm:$0xff]  ;;  %v187_v6 = vld [vmem:[%s8175_s2 + $0x510] sm:$0xff]  ;;  %v204_v15 = vld [vmem:[%s8175_s2 + $0x598] sm:$0xff]  ;;  %v6203_v20 = vpack.c.bf16 %v209_v58, %v201_v57 }
  0x25   :  { %3544 = vmatprep.subr.bf16.mxu1 %v6116_v13  ;;  %8505 = vst [vmem:[#allocation47_spill] sm:$0xff] %v6182_v61  ;;  %8506 = vst [vmem:[#allocation48_spill] sm:$0xff] %v6188_v5  ;;  %v195_v12 = vld [vmem:[%s8175_s2 + $0x550] sm:$0xff]  ;;  %v212_v18 = vld [vmem:[%s8175_s2 + $0x5d8] sm:$0xff]  ;;  %v6206_v21 = vpack.c.bf16 %v226_v2, %v218_v60 }
  0x26   :  { %3482 = vmatpush1.bf16.msra.mxu0 %v6095_v62  ;;  %8507 = vst [vmem:[#allocation49_spill] sm:$0xff] %v6203_v20  ;;  %v217_v29 = vld [vmem:[%s8175_s2 + $0x600] sm:$0xff]  ;;  %v234_v32 = vld [vmem:[%s8175_s2 + $0x688] sm:$0xff]  ;;  %v6218_v38 = vpack.c.bf16 %v195_v12, %v187_v6  ;;  %v6224_v42 = vpack.c.bf16 %v212_v18, %v204_v15  ;;  %v203_v48 = vld [vmem:[%s8175_s2 + $0x590] sm:$0xff] }
  0x27   :  { %3484 = vmatprep.subr.bf16.mxu0 %v6098_v0  ;;  %8508 = vst [vmem:[#allocation50_spill] sm:$0xff] %v6206_v21  ;;  %v225_v31 = vld [vmem:[%s8175_s2 + $0x640] sm:$0xff]  ;;  %v242_v41 = vld [vmem:[%s8175_s2 + $0x6c8] sm:$0xff]  ;;  %v211_v50 = vld [vmem:[%s8175_s2 + $0x5d0] sm:$0xff] }
  0x28   :  { %3546 = vmatpush1.bf16.msra.mxu1 %v6146_v35  ;;  %8509 = vst [vmem:[#allocation51_spill] sm:$0xff] %v6218_v38  ;;  %8510 = vst [vmem:[#allocation52_spill] sm:$0xff] %v6224_v42  ;;  %v220_v57 = vld [vmem:[%s8175_s2 + $0x618] sm:$0xff]  ;;  %v6239_v60 = vpack.c.bf16 %v225_v31, %v217_v29  ;;  %v6242_v2 = vpack.c.bf16 %v242_v41, %v234_v32  ;;  %v233_v6 = vld [vmem:[%s8175_s2 + $0x680] sm:$0xff]  ;;  %v6254_v18 = vpack.c.bf16 %v211_v50, %v203_v48 }
  0x29   :  { %3548 = vmatprep.subr.bf16.mxu1 %v6152_v40  ;;  %v228_v58 = vld [vmem:[%s8175_s2 + $0x658] sm:$0xff]  ;;  %v241_v12 = vld [vmem:[%s8175_s2 + $0x6c0] sm:$0xff]  ;;  %v250_v15 = vld [vmem:[%s8175_s2 + $0x708] sm:$0xff] }
  0x2a   :  { %3486 = vmatpush1.bf16.msra.mxu0 %v6131_v23  ;;  %8511 = vst [vmem:[#allocation53_spill] sm:$0xff] %v6239_v60  ;;  %8512 = vst [vmem:[#allocation54_spill] sm:$0xff] %v6242_v2  ;;  %v258_v29 = vld [vmem:[%s8175_s2 + $0x748] sm:$0xff]  ;;  %v6260_v31 = vpack.c.bf16 %v228_v58, %v220_v57  ;;  %v219_v32 = vld [vmem:[%s8175_s2 + $0x610] sm:$0xff]  ;;  %v6275_v57 = vpack.c.bf16 %v241_v12, %v233_v6 }
  0x2b   :  { %3488 = vmatprep.subr.bf16.mxu0 %v6134_v24  ;;  %8513 = vst [vmem:[#allocation55_spill] sm:$0xff] %v6254_v18  ;;  %v227_v41 = vld [vmem:[%s8175_s2 + $0x650] sm:$0xff]  ;;  %v236_v48 = vld [vmem:[%s8175_s2 + $0x698] sm:$0xff]  ;;  %v6278_v58 = vpack.c.bf16 %v258_v29, %v250_v15  ;;  %v249_v39 = vld [vmem:[%s8175_s2 + $0x700] sm:$0xff] }
  0x2c   :  { %3550 = vmatpush1.bf16.msra.mxu1 %v6182_v61  ;;  %8514 = vst [vmem:[#allocation56_spill] sm:$0xff] %v6260_v31  ;;  %v244_v50 = vld [vmem:[%s8175_s2 + $0x6d8] sm:$0xff]  ;;  %8515 = vst [vmem:[#allocation57_spill] sm:$0xff] %v6275_v57  ;;  %v257_v3 = vld [vmem:[%s8175_s2 + $0x740] sm:$0xff]  ;;  %v6290_v6 = vpack.c.bf16 %v227_v41, %v219_v32 }
  0x2d   :  { %3552 = vmatprep.subr.bf16.mxu1 %v6188_v5  ;;  %8516 = vst [vmem:[#allocation58_spill] sm:$0xff] %v6278_v58  ;;  %v274_v12 = vld [vmem:[%s8175_s2 + $0x7c8] sm:$0xff]  ;;  %v6296_v15 = vpack.c.bf16 %v244_v50, %v236_v48  ;;  %v235_v29 = vld [vmem:[%s8175_s2 + $0x690] sm:$0xff]  ;;  %v252_v32 = vld [vmem:[%s8175_s2 + $0x718] sm:$0xff]  ;;  %v6311_v48 = vpack.c.bf16 %v257_v3, %v249_v39 }
  0x2e   :  { %3490 = vmatpush1.bf16.msra.mxu0 %v6167_v51  ;;  %8517 = vst [vmem:[#allocation59_spill] sm:$0xff] %v6290_v6  ;;  %v260_v41 = vld [vmem:[%s8175_s2 + $0x758] sm:$0xff]  ;;  %v38_v39 = vld [vmem:[%s8175_s2 + $0x68] sm:$0xff]  ;;  %v165_v5 = vld [vmem:[%s8175_s2 + $0x460] sm:$0xff] }
  0x2f   :  { %3492 = vmatprep.subr.bf16.mxu0 %v6170_v54  ;;  %8518 = vst [vmem:[#allocation60_spill] sm:$0xff] %v6296_v15  ;;  %8519 = vst [vmem:[#allocation61_spill] sm:$0xff] %v6311_v48 }
  0x30   :  { %3554 = vmatpush1.bf16.msra.mxu1 %v6218_v38  ;;  %v141_v38 = vld [vmem:[%s8175_s2 + $0x3a0] sm:$0xff] }
  0x31   :  { %3556 = vmatprep.subr.bf16.mxu1 %v6224_v42  ;;  %v69_v42 = vld [vmem:[%s8175_s2 + $0x160] sm:$0xff] }
  0x32   :  { %3494 = vmatpush1.bf16.msra.mxu0 %v6203_v20  ;;  %v149_v20 = vld [vmem:[%s8175_s2 + $0x3e0] sm:$0xff] }
  0x33   :  { %3496 = vmatprep.subr.bf16.mxu0 %v6206_v21 }
  0x34   :  { %3558 = vmatpush1.bf16.msra.mxu1 %v6254_v18  ;;  %v273_v18 = vld [vmem:[%s8175_s2 + $0x7c0] sm:$0xff] }
  0x35   :  { %3560 = vmatprep.subr.bf16.mxu1 %v6260_v31  ;;  %v265_v31 = vld [vmem:[%s8175_s2 + $0x780] sm:$0xff] }
  0x36   :  { %3498 = vmatpush1.bf16.msra.mxu0 %v6239_v60  ;;  %v266_v60 = vld [vmem:[%s8175_s2 + $0x788] sm:$0xff] }
  0x37   :  { %3500 = vmatprep.subr.bf16.mxu0 %v6242_v2  ;;  %v243_v2 = vld [vmem:[%s8175_s2 + $0x6d0] sm:$0xff]  ;;  %v6314_v50 = vpack.c.bf16 %v274_v12, %v266_v60  ;;  %v6332_v60 = vpack.c.bf16 %v260_v41, %v252_v32  ;;  %v6347_v32 = vpack.c.bf16 %v273_v18, %v265_v31  ;;  %v54_v31 = vld [vmem:[%s8175_s2 + $0xe8] sm:$0xff] }
  0x38   :  { %3562 = vmatpush1.bf16.msra.mxu1 %v6290_v6  ;;  %v6326_v3 = vpack.c.bf16 %v243_v2, %v235_v29  ;;  %v251_v12 = vld [vmem:[%s8175_s2 + $0x710] sm:$0xff]  ;;  %v268_v2 = vld [vmem:[%s8175_s2 + $0x798] sm:$0xff]  ;;  %v37_v6 = vld [vmem:[%s8175_s2 + $0x60] sm:$0xff] }
  0x39   :  { %8520 = vst [vmem:[#allocation62_spill] sm:$0xff] %v6314_v50  ;;  %3564 = vmatprep.subr.bf16.mxu1 %v6296_v15  ;;  %8522 = vst [vmem:[#allocation64_spill] sm:$0xff] %v6332_v60  ;;  %v276_v29 = vld [vmem:[%s8175_s2 + $0x7d8] sm:$0xff]  ;;  %v29_v15 = vld [vmem:[%s8175_s2 + $0x20] sm:$0xff] }
  0x3a   :  { %3502 = vmatpush1.bf16.msra.mxu0 %v6275_v57  ;;  %v30_v57 = vld [vmem:[%s8175_s2 + $0x28] sm:$0xff]  ;;  %8521 = vst [vmem:[#allocation63_spill] sm:$0xff] %v6326_v3  ;;  %8523 = vst [vmem:[#allocation65_spill] sm:$0xff] %v6347_v32 }
  0x3b   :  { %3504 = vmatprep.subr.bf16.mxu0 %v6278_v58  ;;  %v259_v58 = vld [vmem:[%s8175_s2 + $0x750] sm:$0xff]  ;;  %v6350_v41 = vpack.c.bf16 %v38_v39, %v30_v57  ;;  %v6368_v57 = vpack.c.bf16 %v276_v29, %v268_v2  ;;  %v6383_v2 = vpack.c.bf16 %v37_v6, %v29_v15  ;;  %v70_v15 = vld [vmem:[%s8175_s2 + $0x168] sm:$0xff] }
  0x3c   :  { %3566 = vmatpush1.bf16.msra.mxu1 %v6326_v3  ;;  %v6362_v18 = vpack.c.bf16 %v259_v58, %v251_v12  ;;  %v267_v39 = vld [vmem:[%s8175_s2 + $0x790] sm:$0xff]  ;;  %v32_v58 = vld [vmem:[%s8175_s2 + $0x38] sm:$0xff]  ;;  %v53_v3 = vld [vmem:[%s8175_s2 + $0xe0] sm:$0xff] }
  0x3d   :  { %8524 = vst [vmem:[#allocation66_spill] sm:$0xff] %v6350_v41  ;;  %3568 = vmatprep.subr.bf16.mxu1 %v6332_v60  ;;  %8526 = vst [vmem:[#allocation68_spill] sm:$0xff] %v6368_v57  ;;  %v40_v12 = vld [vmem:[%s8175_s2 + $0x78] sm:$0xff]  ;;  %v45_v60 = vld [vmem:[%s8175_s2 + $0xa0] sm:$0xff] }
  0x3e   :  { %3506 = vmatpush1.bf16.msra.mxu0 %v6311_v48  ;;  %v46_v48 = vld [vmem:[%s8175_s2 + $0xa8] sm:$0xff]  ;;  %8525 = vst [vmem:[#allocation67_spill] sm:$0xff] %v6362_v18  ;;  %8527 = vst [vmem:[#allocation69_spill] sm:$0xff] %v6383_v2 }
  0x3f   :  { %3508 = vmatprep.subr.bf16.mxu0 %v6314_v50  ;;  %v275_v50 = vld [vmem:[%s8175_s2 + $0x7d0] sm:$0xff]  ;;  %v6386_v29 = vpack.c.bf16 %v54_v31, %v46_v48  ;;  %v6404_v48 = vpack.c.bf16 %v40_v12, %v32_v58  ;;  %v6420_v58 = vpack.c.bf16 %v53_v3, %v45_v60  ;;  %v78_v3 = vld [vmem:[%s8175_s2 + $0x1a8] sm:$0xff] }
  0x40   :  { %3570 = vmatpush1.bf16.msra.mxu1 %v6362_v18  ;;  %v6398_v6 = vpack.c.bf16 %v275_v50, %v267_v39  ;;  %v31_v31 = vld [vmem:[%s8175_s2 + $0x30] sm:$0xff]  ;;  %v8531_v18 = vmov 0.0   ;;  %v48_v50 = vld [vmem:[%s8175_s2 + $0xb8] sm:$0xff] }
  0x41   :  { %8528 = vst [vmem:[#allocation70_spill] sm:$0xff] %v6386_v29  ;;  %3572 = vmatprep.subr.bf16.mxu1 %v6368_v57  ;;  %8530 = vst [vmem:[#allocation72_spill] sm:$0xff] %v6404_v48  ;;  %v56_v39 = vld [vmem:[%s8175_s2 + $0xf8] sm:$0xff]  ;;  %v61_v57 = vld [vmem:[%s8175_s2 + $0x120] sm:$0xff] }
  0x42   :  { %3510 = vmatpush1.bf16.msra.mxu0 %v6347_v32  ;;  %v62_v32 = vld [vmem:[%s8175_s2 + $0x128] sm:$0xff]  ;;  %8529 = vst [vmem:[#allocation71_spill] sm:$0xff] %v6398_v6  ;;  %8532 = vst [vmem:[#allocation73_spill] sm:$0xff] %v6420_v58 }
  0x43   :  { %3576 = vmatprep.subr.bf16.mxu0 %v6350_v41  ;;  %v39_v41 = vld [vmem:[%s8175_s2 + $0x70] sm:$0xff]  ;;  %v6424_v12 = vpack.c.bf16 %v70_v15, %v62_v32  ;;  %v86_v32 = vld [vmem:[%s8175_s2 + $0x1e8] sm:$0xff]  ;;  %v6442_v15 = vpack.c.bf16 %v56_v39, %v48_v50  ;;  %v6457_v50 = vpack.c.bf16 %v69_v42, %v61_v57 }
  0x44   :  { %3574 = vmatpush1.bf16.msra.mxu1 %v6398_v6  ;;  %v6436_v60 = vpack.c.bf16 %v39_v41, %v31_v31  ;;  %v64_v41 = vld [vmem:[%s8175_s2 + $0x138] sm:$0xff]  ;;  %v6461_v39 = vpack.c.bf16 %v86_v32, %v78_v3  ;;  %v85_v6 = vld [vmem:[%s8175_s2 + $0x1e0] sm:$0xff]  ;;  %v94_v42 = vld [vmem:[%s8175_s2 + $0x228] sm:$0xff] }
  0x45   :  { %364 = vmatmul.mubr.f32.vlgmr.msra.gmra.mrb[0].mxu0 %v8531_v18  ;;  %8533 = vst [vmem:[#allocation74_spill] sm:$0xff] %v6424_v12  ;;  %3640 = vmatprep.subr.bf16.mxu1 %v6404_v48  ;;  %8535 = vst [vmem:[#allocation76_spill] sm:$0xff] %v6442_v15  ;;  %v72_v31 = vld [vmem:[%s8175_s2 + $0x178] sm:$0xff]  ;;  %v77_v48 = vld [vmem:[%s8175_s2 + $0x1a0] sm:$0xff] }
  0x46   :  { %3578 = vmatpush1.bf16.msra.mxu0 %v6383_v2  ;;  %505 = vmatprep.mubr.f32.mxu0 %v8531_v18  ;;  %8534 = vst [vmem:[#allocation75_spill] sm:$0xff] %v6436_v60  ;;  %v55_v2 = vld [vmem:[%s8175_s2 + $0xf0] sm:$0xff]  ;;  %8536 = vst [vmem:[#allocation77_spill] sm:$0xff] %v6457_v50  ;;  %v102_v3 = vld [vmem:[%s8175_s2 + $0x268] sm:$0xff]  ;;  %v6479_v32 = vpack.c.bf16 %v72_v31, %v64_v41  ;;  %v6495_v41 = vpack.c.bf16 %v85_v6, %v77_v48 }
  0x47   :  { %3580 = vmatprep.subr.bf16.mxu0 %v6386_v29  ;;  %v47_v29 = vld [vmem:[%s8175_s2 + $0xb0] sm:$0xff]  ;;  %435 = vmatmul.mubr.f32.vlgmr.msra.gmra.mrb[0].mxu1 %v8531_v18  ;;  %8537 = vst [vmem:[#allocation78_spill] sm:$0xff] %v6461_v39  ;;  %v6498_v31 = vpack.c.bf16 %v102_v3, %v94_v42  ;;  %v118_v48 = vld [vmem:[%s8175_s2 + $0x2e8] sm:$0xff] }
  0x48   :  { %3642 = vmatpush1.bf16.msra.mxu1 %v6436_v60  ;;  %v6473_v57 = vpack.c.bf16 %v55_v2, %v47_v29  ;;  %8539 = vst [vmem:[#allocation80_spill] sm:$0xff] %v6479_v32  ;;  %576 = vmatprep.mubr.f32.mxu1 %v8531_v18  ;;  %v80_v2 = vld [vmem:[%s8175_s2 + $0x1b8] sm:$0xff]  ;;  %8540 = vst [vmem:[#allocation81_spill] sm:$0xff] %v6495_v41  ;;  %v101_v60 = vld [vmem:[%s8175_s2 + $0x260] sm:$0xff] }
  0x49   :  { %3644 = vmatprep.subr.bf16.mxu1 %v6442_v15  ;;  %v88_v29 = vld [vmem:[%s8175_s2 + $0x1f8] sm:$0xff]  ;;  %8541 = vst [vmem:[#allocation82_spill] sm:$0xff] %v6498_v31  ;;  %v93_v15 = vld [vmem:[%s8175_s2 + $0x220] sm:$0xff]  ;;  %v79_v3 = vld [vmem:[%s8175_s2 + $0x1b0] sm:$0xff] }
  0x4a   :  { %3582 = vmatpush1.bf16.msra.mxu0 %v6420_v58  ;;  %8538 = vst [vmem:[#allocation79_spill] sm:$0xff] %v6473_v57  ;;  %v71_v58 = vld [vmem:[%s8175_s2 + $0x170] sm:$0xff]  ;;  %v6516_v42 = vpack.c.bf16 %v88_v29, %v80_v2  ;;  %v6531_v2 = vpack.c.bf16 %v101_v60, %v93_v15  ;;  %v134_v15 = vld [vmem:[%s8175_s2 + $0x368] sm:$0xff] }
  0x4b   :  { %3584 = vmatprep.subr.bf16.mxu0 %v6424_v12  ;;  %v63_v12 = vld [vmem:[%s8175_s2 + $0x130] sm:$0xff] }
  0x4c   :  { %3646 = vmatpush1.bf16.msra.mxu1 %v6473_v57  ;;  %v6510_v6 = vpack.c.bf16 %v71_v58, %v63_v12  ;;  %8543 = vst [vmem:[#allocation84_spill] sm:$0xff] %v6516_v42  ;;  %v96_v58 = vld [vmem:[%s8175_s2 + $0x238] sm:$0xff]  ;;  %8544 = vst [vmem:[#allocation85_spill] sm:$0xff] %v6531_v2  ;;  %v117_v57 = vld [vmem:[%s8175_s2 + $0x2e0] sm:$0xff] }
  0x4d   :  { %3648 = vmatprep.subr.bf16.mxu1 %v6479_v32  ;;  %v104_v12 = vld [vmem:[%s8175_s2 + $0x278] sm:$0xff]  ;;  %v109_v32 = vld [vmem:[%s8175_s2 + $0x2a0] sm:$0xff] }
  0x4e   :  { %3586 = vmatpush1.bf16.msra.mxu0 %v6457_v50  ;;  %v110_v50 = vld [vmem:[%s8175_s2 + $0x2a8] sm:$0xff]  ;;  %8542 = vst [vmem:[#allocation83_spill] sm:$0xff] %v6510_v6 }
  0x4f   :  { %3588 = vmatprep.subr.bf16.mxu0 %v6461_v39  ;;  %v87_v39 = vld [vmem:[%s8175_s2 + $0x1f0] sm:$0xff]  ;;  %v6534_v29 = vpack.c.bf16 %v118_v48, %v110_v50  ;;  %v6552_v50 = vpack.c.bf16 %v104_v12, %v96_v58  ;;  %v6567_v58 = vpack.c.bf16 %v117_v57, %v109_v32  ;;  %v125_v12 = vld [vmem:[%s8175_s2 + $0x320] sm:$0xff] }
  0x50   :  { %3650 = vmatpush1.bf16.msra.mxu1 %v6510_v6  ;;  %v6546_v60 = vpack.c.bf16 %v87_v39, %v79_v3  ;;  %v95_v48 = vld [vmem:[%s8175_s2 + $0x230] sm:$0xff]  ;;  %v112_v39 = vld [vmem:[%s8175_s2 + $0x2b8] sm:$0xff]  ;;  %v133_v6 = vld [vmem:[%s8175_s2 + $0x360] sm:$0xff] }
  0x51   :  { %8545 = vst [vmem:[#allocation86_spill] sm:$0xff] %v6534_v29  ;;  %3652 = vmatprep.subr.bf16.mxu1 %v6516_v42  ;;  %8547 = vst [vmem:[#allocation88_spill] sm:$0xff] %v6552_v50  ;;  %v120_v3 = vld [vmem:[%s8175_s2 + $0x2f8] sm:$0xff]  ;;  %v6587_v32 = vld [vmem:[%s8176_s3] sm:$0xff] }
  0x52   :  { %3590 = vmatpush1.bf16.msra.mxu0 %v6495_v41  ;;  %v126_v41 = vld [vmem:[%s8175_s2 + $0x328] sm:$0xff]  ;;  %8546 = vst [vmem:[#allocation87_spill] sm:$0xff] %v6546_v60  ;;  %8548 = vst [vmem:[#allocation89_spill] sm:$0xff] %v6567_v58  ;;  %vm3354_vm0 = vcmp.gt.s32.totalorder %v6587_v32, 7  ;;  %vm3353_vm1 = vcmp.gt.s32.totalorder %v6587_v32, 0  ;;  %vm3378_vm2 = vcmp.gt.s32.totalorder %v6587_v32, 5 }
  0x53   :  { %3592 = vmatprep.subr.bf16.mxu0 %v6498_v31  ;;  %v103_v31 = vld [vmem:[%s8175_s2 + $0x270] sm:$0xff]  ;;  %v6573_v42 = vpack.c.bf16 %v134_v15, %v126_v41  ;;  %v150_v41 = vld [vmem:[%s8175_s2 + $0x3e8] sm:$0xff]  ;;  %v6593_v15 = vpack.c.bf16 %v120_v3, %v112_v39  ;;  %v136_v39 = vld [vmem:[%s8175_s2 + $0x378] sm:$0xff]  ;;  %v8552_v3 = vmov 0   ;;  %vm3390_vm3 = vcmp.gt.s32.totalorder %v6587_v32, 4 }
  0x54   :  { %3654 = vmatpush1.bf16.msra.mxu1 %v6546_v60  ;;  %v6582_v57 = vpack.c.bf16 %v103_v31, %v95_v48  ;;  %v119_v31 = vld [vmem:[%s8175_s2 + $0x2f0] sm:$0xff]  ;;  %v128_v48 = vld [vmem:[%s8175_s2 + $0x338] sm:$0xff]  ;;  %v6613_v60 = vpack.c.bf16 %v133_v6, %v125_v12  ;;  %v158_v6 = vld [vmem:[%s8175_s2 + $0x428] sm:$0xff]  ;;  %vm3389_vm4 = vcmp.gt.s32.totalorder %v6587_v32, 3  ;;  %vm3377_vm5 = vcmp.gt.s32.totalorder %v6587_v32, 2 }
  0x55   :  { %8549 = vst [vmem:[#allocation90_spill] sm:$0xff] %v6573_v42  ;;  %3656 = vmatprep.subr.bf16.mxu1 %v6552_v50  ;;  %8551 = vst [vmem:[#allocation92_spill] sm:$0xff] %v6593_v15  ;;  %v6610_v50 = vsel %vm3354_vm0, 1, %v8552_v3  ;;  %vm3365_vm6 = vcmp.gt.s32.totalorder %v6587_v32, 1  ;;  %vm3366_vm7 = vcmp.gt.s32.totalorder %v6587_v32, 6  ;;  %v294_v32 = vld [vmem:[%s8178_s1 + $0x8] sm:$0xff] }
  0x56   :  { %3594 = vmatpush1.bf16.msra.mxu0 %v6531_v2  ;;  %v142_v2 = vld [vmem:[%s8175_s2 + $0x3a8] sm:$0xff]  ;;  %8550 = vst [vmem:[#allocation91_spill] sm:$0xff] %v6582_v57  ;;  %8553 = vst [vmem:[#allocation93_spill] sm:$0xff] %v6613_v60  ;;  %653 = vperm.xlu0 %5497, %v6610_v50  }
  0x57   :  { %3596 = vmatprep.subr.bf16.mxu0 %v6534_v29  ;;  %v111_v29 = vld [vmem:[%s8175_s2 + $0x2b0] sm:$0xff]  ;;  %v6617_v21 = vpack.c.bf16 %v150_v41, %v142_v2  ;;  %v166_v2 = vld [vmem:[%s8175_s2 + $0x468] sm:$0xff]  ;;  %v6638_v41 = vpack.c.bf16 %v136_v39, %v128_v48  ;;  %v6654_v48 = vpack.c.bf16 %v149_v20, %v141_v38 }
  0x58   :  { %3658 = vmatpush1.bf16.msra.mxu1 %v6582_v57  ;;  %v6629_v12 = vpack.c.bf16 %v119_v31, %v111_v29  ;;  %v135_v29 = vld [vmem:[%s8175_s2 + $0x370] sm:$0xff]  ;;  %v144_v31 = vld [vmem:[%s8175_s2 + $0x3b8] sm:$0xff]  ;;  %v6658_v39 = vpack.c.bf16 %v166_v2, %v158_v6  ;;  %v157_v57 = vld [vmem:[%s8175_s2 + $0x420] sm:$0xff] }
  0x59   :  { %8554 = vst [vmem:[#allocation94_spill] sm:$0xff] %v6617_v21  ;;  %3660 = vmatprep.subr.bf16.mxu1 %v6593_v15  ;;  %8557 = vst [vmem:[#allocation97_spill] sm:$0xff] %v6638_v41  ;;  %v152_v15 = vld [vmem:[%s8175_s2 + $0x3f8] sm:$0xff]  ;;  %v174_v20 = vld [vmem:[%s8175_s2 + $0x4a8] sm:$0xff] }
  0x5a   :  { %3598 = vmatpush1.bf16.msra.mxu0 %v6567_v58  ;;  %8555 = vst [vmem:[#allocation95_spill] sm:$0xff] %v6629_v12  ;;  %v127_v58 = vld [vmem:[%s8175_s2 + $0x330] sm:$0xff]  ;;  %8558 = vst [vmem:[#allocation98_spill] sm:$0xff] %v6654_v48  ;;  %v182_v6 = vld [vmem:[%s8175_s2 + $0x4e8] sm:$0xff]  ;;  %v6679_v2 = vpack.c.bf16 %v152_v15, %v144_v31  ;;  %v6695_v15 = vpack.c.bf16 %v165_v5, %v157_v57 }
  0x5b   :  { %3600 = vmatprep.subr.bf16.mxu0 %v6573_v42  ;;  %v6632_v42 = vsel %vm3353_vm1, 1, %v8552_v3  ;;  %8559 = vst [vmem:[#allocation99_spill] sm:$0xff] %v6658_v39  ;;  %v6670_v38 = vpack.c.bf16 %v135_v29, %v127_v58  ;;  %v151_v58 = vld [vmem:[%s8175_s2 + $0x3f0] sm:$0xff]  ;;  %v160_v29 = vld [vmem:[%s8175_s2 + $0x438] sm:$0xff]  ;;  %v6699_v31 = vpack.c.bf16 %v182_v6, %v174_v20  ;;  %v190_v5 = vld [vmem:[%s8175_s2 + $0x528] sm:$0xff] }
  0x5c   :  { %8556 = vst [vmem:[#allocation96_spill] sm:$0xff] %v6632_v42  ;;  %646 = vperm.xlu0 %5497, %v6632_v42   ;;  %3662 = vmatpush1.bf16.msra.mxu1 %v6629_v12  ;;  %8562 = vst [vmem:[#allocation102_spill] sm:$0xff] %v6679_v2  ;;  %v173_v12 = vld [vmem:[%s8175_s2 + $0x4a0] sm:$0xff]  ;;  %v198_v20 = vld [vmem:[%s8175_s2 + $0x568] sm:$0xff] }
  0x5d   :  { %8560 = vst [vmem:[#allocation100_spill] sm:$0xff] %v6670_v38  ;;  %3664 = vmatprep.subr.bf16.mxu1 %v6638_v41  ;;  %v168_v41 = vld [vmem:[%s8175_s2 + $0x478] sm:$0xff]  ;;  %8563 = vst [vmem:[#allocation103_spill] sm:$0xff] %v6695_v15  ;;  %v181_v42 = vld [vmem:[%s8175_s2 + $0x4e0] sm:$0xff] }
  0x5e   :  { %3602 = vmatpush1.bf16.msra.mxu0 %v6613_v60  ;;  %v143_v60 = vld [vmem:[%s8175_s2 + $0x3b0] sm:$0xff]  ;;  %8564 = vst [vmem:[#allocation104_spill] sm:$0xff] %v6699_v31  ;;  %v6720_v6 = vpack.c.bf16 %v168_v41, %v160_v29  ;;  %v6736_v41 = vpack.c.bf16 %v181_v42, %v173_v12  ;;  %v6740_v29 = vpack.c.bf16 %v198_v20, %v190_v5  ;;  %v206_v42 = vld [vmem:[%s8175_s2 + $0x5a8] sm:$0xff] }
  0x5f   :  { %3604 = vmatprep.subr.bf16.mxu0 %v6617_v21  ;;  %v6673_v21 = vsel %vm3378_vm2, 1, %v8552_v3  ;;  %v6711_v57 = vpack.c.bf16 %v151_v58, %v143_v60  ;;  %v167_v60 = vld [vmem:[%s8175_s2 + $0x470] sm:$0xff]  ;;  %v176_v58 = vld [vmem:[%s8175_s2 + $0x4b8] sm:$0xff]  ;;  %v214_v5 = vld [vmem:[%s8175_s2 + $0x5e8] sm:$0xff] }
  0x60   :  { %8561 = vst [vmem:[#allocation101_spill] sm:$0xff] %v6673_v21  ;;  %1417 = vperm.xlu0 %5497, %v6673_v21   ;;  %3666 = vmatpush1.bf16.msra.mxu1 %v6670_v38  ;;  %8567 = vst [vmem:[#allocation107_spill] sm:$0xff] %v6720_v6  ;;  %v189_v38 = vld [vmem:[%s8175_s2 + $0x520] sm:$0xff] }
  0x61   :  { %8565 = vst [vmem:[#allocation105_spill] sm:$0xff] %v6711_v57  ;;  %3668 = vmatprep.subr.bf16.mxu1 %v6679_v2  ;;  %v184_v2 = vld [vmem:[%s8175_s2 + $0x4f8] sm:$0xff]  ;;  %8568 = vst [vmem:[#allocation108_spill] sm:$0xff] %v6736_v41  ;;  %v197_v21 = vld [vmem:[%s8175_s2 + $0x560] sm:$0xff] }
  0x62   :  { %3606 = vmatpush1.bf16.msra.mxu0 %v6654_v48  ;;  %v159_v48 = vld [vmem:[%s8175_s2 + $0x430] sm:$0xff]  ;;  %8569 = vst [vmem:[#allocation109_spill] sm:$0xff] %v6740_v29  ;;  %v6761_v20 = vpack.c.bf16 %v184_v2, %v176_v58  ;;  %v6777_v2 = vpack.c.bf16 %v197_v21, %v189_v38  ;;  %v6781_v58 = vpack.c.bf16 %v214_v5, %v206_v42  ;;  %v222_v21 = vld [vmem:[%s8175_s2 + $0x628] sm:$0xff] }
  0x63   :  { %3608 = vmatprep.subr.bf16.mxu0 %v6658_v39  ;;  %v6714_v39 = vsel %vm3390_vm3, 1, %v8552_v3  ;;  %v6752_v12 = vpack.c.bf16 %v167_v60, %v159_v48  ;;  %v183_v48 = vld [vmem:[%s8175_s2 + $0x4f0] sm:$0xff]  ;;  %v192_v60 = vld [vmem:[%s8175_s2 + $0x538] sm:$0xff]  ;;  %v230_v42 = vld [vmem:[%s8175_s2 + $0x668] sm:$0xff] }
  0x64   :  { %8566 = vst [vmem:[#allocation106_spill] sm:$0xff] %v6714_v39  ;;  %1799 = vperm.xlu0 %5497, %v6714_v39   ;;  %3670 = vmatpush1.bf16.msra.mxu1 %v6711_v57  ;;  %8572 = vst [vmem:[#allocation112_spill] sm:$0xff] %v6761_v20  ;;  %v205_v57 = vld [vmem:[%s8175_s2 + $0x5a0] sm:$0xff] }
  0x65   :  { %8570 = vst [vmem:[#allocation110_spill] sm:$0xff] %v6752_v12  ;;  %3672 = vmatprep.subr.bf16.mxu1 %v6720_v6  ;;  %v200_v6 = vld [vmem:[%s8175_s2 + $0x578] sm:$0xff]  ;;  %8573 = vst [vmem:[#allocation113_spill] sm:$0xff] %v6777_v2  ;;  %v213_v39 = vld [vmem:[%s8175_s2 + $0x5e0] sm:$0xff] }
  0x66   :  { %3610 = vmatpush1.bf16.msra.mxu0 %v6695_v15  ;;  %v175_v15 = vld [vmem:[%s8175_s2 + $0x4b0] sm:$0xff]  ;;  %8574 = vst [vmem:[#allocation114_spill] sm:$0xff] %v6781_v58  ;;  %v6802_v5 = vpack.c.bf16 %v200_v6, %v192_v60  ;;  %v6818_v6 = vpack.c.bf16 %v213_v39, %v205_v57  ;;  %v6822_v60 = vpack.c.bf16 %v230_v42, %v222_v21  ;;  %v238_v39 = vld [vmem:[%s8175_s2 + $0x6a8] sm:$0xff] }
  0x67   :  { %3612 = vmatprep.subr.bf16.mxu0 %v6699_v31  ;;  %v6755_v31 = vsel %vm3389_vm4, 1, %v8552_v3  ;;  %v6793_v38 = vpack.c.bf16 %v183_v48, %v175_v15  ;;  %v199_v15 = vld [vmem:[%s8175_s2 + $0x570] sm:$0xff]  ;;  %v208_v48 = vld [vmem:[%s8175_s2 + $0x5b8] sm:$0xff]  ;;  %v246_v21 = vld [vmem:[%s8175_s2 + $0x6e8] sm:$0xff] }
  0x68   :  { %8571 = vst [vmem:[#allocation111_spill] sm:$0xff] %v6755_v31  ;;  %2181 = vperm.xlu0 %5497, %v6755_v31   ;;  %3674 = vmatpush1.bf16.msra.mxu1 %v6752_v12  ;;  %8577 = vst [vmem:[#allocation117_spill] sm:$0xff] %v6802_v5  ;;  %v221_v12 = vld [vmem:[%s8175_s2 + $0x620] sm:$0xff] }
  0x69   :  { %8575 = vst [vmem:[#allocation115_spill] sm:$0xff] %v6793_v38  ;;  %3676 = vmatprep.subr.bf16.mxu1 %v6761_v20  ;;  %v216_v20 = vld [vmem:[%s8175_s2 + $0x5f8] sm:$0xff]  ;;  %8578 = vst [vmem:[#allocation118_spill] sm:$0xff] %v6818_v6  ;;  %v229_v31 = vld [vmem:[%s8175_s2 + $0x660] sm:$0xff] }
  0x6a   :  { %3614 = vmatpush1.bf16.msra.mxu0 %v6736_v41  ;;  %v191_v41 = vld [vmem:[%s8175_s2 + $0x530] sm:$0xff]  ;;  %8579 = vst [vmem:[#allocation119_spill] sm:$0xff] %v6822_v60  ;;  %v6843_v42 = vpack.c.bf16 %v216_v20, %v208_v48  ;;  %v6858_v20 = vpack.c.bf16 %v229_v31, %v221_v12  ;;  %v6862_v48 = vpack.c.bf16 %v246_v21, %v238_v39  ;;  %v254_v31 = vld [vmem:[%s8175_s2 + $0x728] sm:$0xff] }
  0x6b   :  { %3616 = vmatprep.subr.bf16.mxu0 %v6740_v29  ;;  %v6796_v29 = vsel %vm3377_vm5, 1, %v8552_v3  ;;  %v6834_v57 = vpack.c.bf16 %v199_v15, %v191_v41  ;;  %v215_v41 = vld [vmem:[%s8175_s2 + $0x5f0] sm:$0xff]  ;;  %v224_v15 = vld [vmem:[%s8175_s2 + $0x638] sm:$0xff]  ;;  %v262_v39 = vld [vmem:[%s8175_s2 + $0x768] sm:$0xff] }
  0x6c   :  { %8576 = vst [vmem:[#allocation116_spill] sm:$0xff] %v6796_v29  ;;  %2563 = vperm.xlu0 %5497, %v6796_v29   ;;  %3678 = vmatpush1.bf16.msra.mxu1 %v6793_v38  ;;  %8581 = vst [vmem:[#allocation121_spill] sm:$0xff] %v6843_v42  ;;  %v232_v38 = vld [vmem:[%s8175_s2 + $0x678] sm:$0xff]  ;;  %v245_v29 = vld [vmem:[%s8175_s2 + $0x6e0] sm:$0xff] }
  0x6d   :  { %8580 = vst [vmem:[#allocation120_spill] sm:$0xff] %v6834_v57  ;;  %3680 = vmatprep.subr.bf16.mxu1 %v6802_v5  ;;  %8582 = vst [vmem:[#allocation122_spill] sm:$0xff] %v6858_v20  ;;  %v237_v5 = vld [vmem:[%s8175_s2 + $0x6a0] sm:$0xff]  ;;  %v6880_v21 = vpack.c.bf16 %v232_v38, %v224_v15  ;;  %v6899_v15 = vpack.c.bf16 %v262_v39, %v254_v31  ;;  %v239_v39 = vld [vmem:[%s8175_s2 + $0x6b0] sm:$0xff] }
  0x6e   :  { %3618 = vmatpush1.bf16.msra.mxu0 %v6777_v2  ;;  %v207_v2 = vld [vmem:[%s8175_s2 + $0x5b0] sm:$0xff]  ;;  %8583 = vst [vmem:[#allocation123_spill] sm:$0xff] %v6862_v48  ;;  %v6895_v38 = vpack.c.bf16 %v245_v29, %v237_v5  ;;  %v270_v29 = vld [vmem:[%s8175_s2 + $0x7a8] sm:$0xff] }
  0x6f   :  { %3620 = vmatprep.subr.bf16.mxu0 %v6781_v58  ;;  %v6837_v58 = vsel %vm3365_vm6, 1, %v8552_v3  ;;  %v6874_v12 = vpack.c.bf16 %v215_v41, %v207_v2  ;;  %8585 = vst [vmem:[#allocation125_spill] sm:$0xff] %v6880_v21  ;;  %v240_v2 = vld [vmem:[%s8175_s2 + $0x6b8] sm:$0xff]  ;;  %8587 = vst [vmem:[#allocation127_spill] sm:$0xff] %v6899_v15 }
  0x70   :  { %2945 = vperm.xlu0 %5497, %v6837_v58   ;;  %3682 = vmatpush1.bf16.msra.mxu1 %v6834_v57  ;;  %v248_v41 = vld [vmem:[%s8175_s2 + $0x6f8] sm:$0xff]  ;;  %8586 = vst [vmem:[#allocation126_spill] sm:$0xff] %v6895_v38  ;;  %v261_v57 = vld [vmem:[%s8175_s2 + $0x760] sm:$0xff] }
  0x71   :  { %8584 = vst [vmem:[#allocation124_spill] sm:$0xff] %v6874_v12  ;;  %3684 = vmatprep.subr.bf16.mxu1 %v6843_v42  ;;  %v253_v42 = vld [vmem:[%s8175_s2 + $0x720] sm:$0xff]  ;;  %v6917_v31 = vpack.c.bf16 %v248_v41, %v240_v2 }
  0x72   :  { %3622 = vmatpush1.bf16.msra.mxu0 %v6818_v6  ;;  %v231_v6 = vld [vmem:[%s8175_s2 + $0x670] sm:$0xff]  ;;  %v6932_v2 = vpack.c.bf16 %v261_v57, %v253_v42 }
  0x73   :  { %3624 = vmatprep.subr.bf16.mxu0 %v6822_v60  ;;  %v223_v60 = vld [vmem:[%s8175_s2 + $0x630] sm:$0xff]  ;;  %8589 = vst [vmem:[#allocation129_spill] sm:$0xff] %v6917_v31 }
  0x74   :  { %3320 = vperm.xlu0 %5497, %v6610_v50   ;;  %3686 = vmatpush1.bf16.msra.mxu1 %v6874_v12  ;;  %v6911_v5 = vpack.c.bf16 %v231_v6, %v223_v60  ;;  %v278_v50 = vld [vmem:[%s8175_s2 + $0x7e8] sm:$0xff]  ;;  %v256_v6 = vld [vmem:[%s8175_s2 + $0x738] sm:$0xff]  ;;  %8590 = vst [vmem:[#allocation130_spill] sm:$0xff] %v6932_v2  ;;  %v255_v42 = vld [vmem:[%s8175_s2 + $0x730] sm:$0xff] }
  0x75   :  { %3688 = vmatprep.subr.bf16.mxu1 %v6880_v21  ;;  %v264_v60 = vld [vmem:[%s8175_s2 + $0x778] sm:$0xff]  ;;  %v6935_v41 = vpack.c.bf16 %v278_v50, %v270_v29  ;;  %v277_v21 = vld [vmem:[%s8175_s2 + $0x7e0] sm:$0xff]  ;;  %v263_v29 = vld [vmem:[%s8175_s2 + $0x770] sm:$0xff] }
  0x76   :  { %3626 = vmatpush1.bf16.msra.mxu0 %v6858_v20  ;;  %8588 = vst [vmem:[#allocation128_spill] sm:$0xff] %v6911_v5  ;;  %v269_v20 = vld [vmem:[%s8175_s2 + $0x7a0] sm:$0xff]  ;;  %v6947_v57 = vpack.c.bf16 %v264_v60, %v256_v6  ;;  %v272_v50 = vld [vmem:[%s8175_s2 + $0x7b8] sm:$0xff]  ;;  %v6966_v6 = vpack.c.bf16 %v263_v29, %v255_v42 }
  0x77   :  { %3628 = vmatprep.subr.bf16.mxu0 %v6862_v48  ;;  %v247_v48 = vld [vmem:[%s8175_s2 + $0x6f0] sm:$0xff]  ;;  %8591 = vst [vmem:[#allocation131_spill] sm:$0xff] %v6935_v41  ;;  %v8602_v42 = vld [vmem:[#allocation52_spill] sm:$0xff]  ;;  %v8603_v29 = vld [vmem:[#allocation53_spill] sm:$0xff] }
  0x78   :  { %3690 = vmatpush1.bf16.msra.mxu1 %v6911_v5  ;;  %v6944_v12 = vpack.c.bf16 %v247_v48, %v239_v39  ;;  %8593 = vst [vmem:[#allocation133_spill] sm:$0xff] %v6947_v57  ;;  %v280_v48 = vld [vmem:[%s8175_s2 + $0x7f8] sm:$0xff]  ;;  %v6962_v39 = vpack.c.bf16 %v277_v21, %v269_v20  ;;  %8595 = vst [vmem:[#allocation135_spill] sm:$0xff] %v6966_v6  ;;  %v8599_v21 = vld [vmem:[#allocation49_spill] sm:$0xff] }
  0x79   :  { %3692 = vmatprep.subr.bf16.mxu1 %v6917_v31  ;;  %v6969_v60 = vpack.c.bf16 %v280_v48, %v272_v50  ;;  %v8604_v50 = vld [vmem:[#allocation55_spill] sm:$0xff]  ;;  %v8605_v48 = vld [vmem:[#allocation54_spill] sm:$0xff] }
  0x7a   :  { %3630 = vmatpush1.bf16.msra.mxu0 %v6895_v38  ;;  %8592 = vst [vmem:[#allocation132_spill] sm:$0xff] %v6944_v12  ;;  %8594 = vst [vmem:[#allocation134_spill] sm:$0xff] %v6962_v39 }
  0x7b   :  { %3632 = vmatprep.subr.bf16.mxu0 %v6899_v15  ;;  %8596 = vst [vmem:[#allocation136_spill] sm:$0xff] %v6969_v60  ;;  %v271_v15 = vld [vmem:[%s8175_s2 + $0x7b0] sm:$0xff] }
  0x7c   :  { %3694 = vmatpush1.bf16.msra.mxu1 %v6944_v12 }
  0x7d   :  { %3696 = vmatprep.subr.bf16.mxu1 %v6947_v57 }
  0x7e   :  { %3634 = vmatpush1.bf16.msra.mxu0 %v6932_v2  ;;  %v279_v2 = vld [vmem:[%s8175_s2 + $0x7f0] sm:$0xff] }
  0x7f   :  { %3636 = vmatprep.subr.bf16.mxu0 %v6935_v41  ;;  %v6979_v20 = vpack.c.bf16 %v279_v2, %v271_v15  ;;  %v8600_v15 = vld [vmem:[#allocation51_spill] sm:$0xff]  ;;  %v8601_v2 = vld [vmem:[#allocation50_spill] sm:$0xff] }
  0x80   :  { %3698 = vmatpush1.bf16.msra.mxu1 %v6966_v6 }
  0x81   :  { %8597 = vst [vmem:[#allocation137_spill] sm:$0xff] %v6979_v20  ;;  %3700 = vmatprep.subr.bf16.mxu1 %v6969_v60 }
  0x82   :  { %3638 = vmatpush1.bf16.msra.mxu0 %v6962_v39 }
  0x83   :  { %3704 = vmatprep.subr.bf16.mxu0 %v5793_v4 }
  0x84   :  { %3702 = vmatpush1.bf16.msra.mxu1 %v6979_v20 }
  0x85   :  { %506 = vmatmul.mubr.f32.vlgmr.msra.gmra.mrb[2].mxu0 %v8531_v18  ;;  %3768 = vmatprep.subr.bf16.mxu1 %v5845_v22 }
  0x86   :  { %3706 = vmatpush1.bf16.msra.mxu0 %v5804_v8 }
  0x87   :  { %3708 = vmatprep.subr.bf16.mxu0 %v5806_v9  ;;  %577 = vmatmul.mubr.f32.vlgmr.msra.gmra.mrb[2].mxu1 %v8531_v18  ;;  %v8598_v18 = vld [vmem:[#allocation48_spill] sm:$0xff] }
  0x88   :  { %3770 = vmatpush1.bf16.msra.mxu1 %v5853_v25 }
  0x89   :  { %3772 = vmatprep.subr.bf16.mxu1 %v5878_v33 }
  0x8a   :  { %3710 = vmatpush1.bf16.msra.mxu0 %v5822_v14 }
  0x8b   :  { %3712 = vmatprep.subr.bf16.mxu0 %v5831_v17 }
  0x8c   :  { %3774 = vmatpush1.bf16.msra.mxu1 %v5889_v37 }
  0x8d   :  { %3776 = vmatprep.subr.bf16.mxu1 %v5915_v46 }
  0x8e   :  { %3714 = vmatpush1.bf16.msra.mxu0 %v5856_v26 }
  0x8f   :  { %3716 = vmatprep.subr.bf16.mxu0 %v5869_v30 }
  0x90   :  { %3778 = vmatpush1.bf16.msra.mxu1 %v5924_v49 }
  0x91   :  { %3780 = vmatprep.subr.bf16.mxu1 %v5936_v53 }
  0x92   :  { %3718 = vmatpush1.bf16.msra.mxu0 %v5907_v43 }
  0x93   :  { %3720 = vmatprep.subr.bf16.mxu0 %v5918_v47 }
  0x94   :  { %3782 = vmatpush1.bf16.msra.mxu1 %v5966_v63 }
  0x95   :  { %3784 = vmatprep.subr.bf16.mxu1 %v5972_v1 }
  0x96   :  { %3722 = vmatpush1.bf16.msra.mxu0 %v5945_v56 }
  0x97   :  { %3724 = vmatprep.subr.bf16.mxu0 %v5954_v59 }
  0x98   :  { %3786 = vmatpush1.bf16.msra.mxu1 %v6002_v16 }
  0x99   :  { %3788 = vmatprep.subr.bf16.mxu1 %v6008_v19 }
  0x9a   :  { %3726 = vmatpush1.bf16.msra.mxu0 %v5987_v10 }
  0x9b   :  { %3728 = vmatprep.subr.bf16.mxu0 %v5990_v11 }
  0x9c   :  { %3790 = vmatpush1.bf16.msra.mxu1 %v6038_v34 }
  0x9d   :  { %3792 = vmatprep.subr.bf16.mxu1 %v6044_v36 }
  0x9e   :  { %3730 = vmatpush1.bf16.msra.mxu0 %v6023_v27 }
  0x9f   :  { %3732 = vmatprep.subr.bf16.mxu0 %v6026_v28 }
  0xa0   :  { %3794 = vmatpush1.bf16.msra.mxu1 %v6074_v52 }
  0xa1   :  { %3796 = vmatprep.subr.bf16.mxu1 %v6080_v55 }
  0xa2   :  { %3734 = vmatpush1.bf16.msra.mxu0 %v6059_v44 }
  0xa3   :  { %3736 = vmatprep.subr.bf16.mxu0 %v6062_v45 }
  0xa4   :  { %3798 = vmatpush1.bf16.msra.mxu1 %v6110_v7 }
  0xa5   :  { %3800 = vmatprep.subr.bf16.mxu1 %v6116_v13 }
  0xa6   :  { %3738 = vmatpush1.bf16.msra.mxu0 %v6095_v62 }
  0xa7   :  { %3740 = vmatprep.subr.bf16.mxu0 %v6098_v0 }
  0xa8   :  { %3802 = vmatpush1.bf16.msra.mxu1 %v6146_v35 }
  0xa9   :  { %3804 = vmatprep.subr.bf16.mxu1 %v6152_v40 }
  0xaa   :  { %3742 = vmatpush1.bf16.msra.mxu0 %v6131_v23 }
  0xab   :  { %3744 = vmatprep.subr.bf16.mxu0 %v6134_v24  ;;  %v8607_v24 = vld [vmem:[#allocation57_spill] sm:$0xff] }
  0xac   :  { %3806 = vmatpush1.bf16.msra.mxu1 %v6182_v61 }
  0xad   :  { %3808 = vmatprep.subr.bf16.mxu1 %v8598_v18  ;;  %v8609_v18 = vld [vmem:[#allocation58_spill] sm:$0xff] }
  0xae   :  { %3746 = vmatpush1.bf16.msra.mxu0 %v6167_v51  ;;  %v8606_v51 = vld [vmem:[#allocation56_spill] sm:$0xff] }
  0xaf   :  { %3748 = vmatprep.subr.bf16.mxu0 %v6170_v54  ;;  %v8608_v54 = vld [vmem:[#allocation59_spill] sm:$0xff] }
  0xb0   :  { %3810 = vmatpush1.bf16.msra.mxu1 %v8600_v15  ;;  %v8611_v15 = vld [vmem:[#allocation61_spill] sm:$0xff] }
  0xb1   :  { %3812 = vmatprep.subr.bf16.mxu1 %v8602_v42  ;;  %v8613_v42 = vld [vmem:[#allocation62_spill] sm:$0xff] }
  0xb2   :  { %3750 = vmatpush1.bf16.msra.mxu0 %v8599_v21  ;;  %v8610_v21 = vld [vmem:[#allocation60_spill] sm:$0xff] }
  0xb3   :  { %3752 = vmatprep.subr.bf16.mxu0 %v8601_v2  ;;  %v8612_v2 = vld [vmem:[#allocation63_spill] sm:$0xff] }
  0xb4   :  { %3814 = vmatpush1.bf16.msra.mxu1 %v8604_v50  ;;  %v8615_v50 = vld [vmem:[#allocation65_spill] sm:$0xff] }
  0xb5   :  { %3816 = vmatprep.subr.bf16.mxu1 %v8606_v51  ;;  %v8617_v51 = vld [vmem:[#allocation66_spill] sm:$0xff] }
  0xb6   :  { %3754 = vmatpush1.bf16.msra.mxu0 %v8603_v29  ;;  %v8614_v29 = vld [vmem:[#allocation64_spill] sm:$0xff] }
  0xb7   :  { %3756 = vmatprep.subr.bf16.mxu0 %v8605_v48  ;;  %v8616_v48 = vld [vmem:[#allocation67_spill] sm:$0xff] }
  0xb8   :  { %3818 = vmatpush1.bf16.msra.mxu1 %v8608_v54  ;;  %v8619_v54 = vld [vmem:[#allocation71_spill] sm:$0xff] }
  0xb9   :  { %3820 = vmatprep.subr.bf16.mxu1 %v8610_v21 }
  0xba   :  { %3758 = vmatpush1.bf16.msra.mxu0 %v8607_v24  ;;  %v8618_v24 = vld [vmem:[#allocation68_spill] sm:$0xff] }
  0xbb   :  { %3760 = vmatprep.subr.bf16.mxu0 %v8609_v18  ;;  %v8620_v18 = vld [vmem:[#allocation72_spill] sm:$0xff] }
  0xbc   :  { %3822 = vmatpush1.bf16.msra.mxu1 %v8612_v2 }
  0xbd   :  { %3824 = vmatprep.subr.bf16.mxu1 %v8614_v29 }
  0xbe   :  { %3762 = vmatpush1.bf16.msra.mxu0 %v8611_v15  ;;  %v287_v15 = vld [vmem:[%s8177_s0] sm:$0xff] }
  0xbf   :  { %3764 = vmatprep.subr.bf16.mxu0 %v8613_v42  ;;  %v289_v2 = vunpack.c.l.bf16 %v287_v15  ;;  %v290_v42 = vunpack.c.h.bf16 %v287_v15 }
  0xc0   :  { %3826 = vmatpush1.bf16.msra.mxu1 %v8616_v48 }
  0xc1   :  { %3828 = vmatprep.subr.bf16.mxu1 %v8618_v24 }
  0xc2   :  { %3766 = vmatpush1.bf16.msra.mxu0 %v8615_v50  ;;  %v288_v50 = vld [vmem:[%s8177_s0 + $0x8] sm:$0xff] }
  0xc3   :  { %3832 = vmatprep.subr.bf16.mxu0 %v8617_v51  ;;  %v292_v24 = vunpack.c.h.bf16 %v288_v50  ;;  %v291_v0 = vunpack.c.l.bf16 %v288_v50 }
  0xc4   :  { %3830 = vmatpush1.bf16.msra.mxu1 %v8619_v54 }
  0xc5   :  { %3896 = vmatprep.subr.bf16.mxu1 %v8620_v18 }
 0x118   :  { %v365_v21 = vpop.f32.mrb[0].mxu0 }
 0x119   :  { %v583_v48 = vadd.f32 %v365_v21, %v289_v2  ;;  %v367_v29 = vpop.f32.mrb[1].mxu0 }
 0x11a   :  { %v584_v51 = vadd.f32 %v367_v29, %v290_v42  ;;  %v436_v54 = vpop.f32.mrb[0].mxu1 }
 0x11b   :  { %v3347_v61 = vmul.f32 -1.442695, %v583_v48  ;;  %v438_v18 = vpop.f32.mrb[1].mxu1  ;;  %v585_v62 = vadd.f32 %v436_v54, %v291_v0  ;;  %v8622_v54 = vld [vmem:[#allocation111_spill] sm:$0xff] }
 0x11c   :  { %v3348_v23 = vmul.f32 -1.442695, %v584_v51  ;;  %v586_v40 = vadd.f32 %v438_v18, %v292_v24 }
 0x11d   :  { %5499 = vpow2.f32 %v3347_v61 }
 0x11e   :  { %5501 = vpow2.f32 %v3348_v23  ;;  %v3349_v35 = vmul.f32 -1.442695, %v586_v40 }
 0x120   :  { %5503 = vpow2.f32 %v3349_v35 }
 0x121   :  { %5505 = vtanh.f32 %v585_v62  ;;  %v293_v62 = vld [vmem:[%s8178_s1] sm:$0xff] }
 0x122   :  { %v296_v40 = vunpack.c.h.bf16 %v293_v62 }
 0x127   :  { %v5500_v15 = vpop.eup %5499 }
 0x128   :  { %v5502_v13 = vpop.eup %5501  ;;  %v590_v45 = vadd.f32 1.0, %v5500_v15 }
 0x129   :  { %v596_v7 = vadd.f32 1.0, %v5502_v13  ;;  %v295_v13 = vunpack.c.l.bf16 %v293_v62 }
 0x12a   :  { %5507 = vrcp.f32 %v590_v45  ;;  %v5504_v21 = vpop.eup %5503  ;;  %v1033_v45 = vsel %vm3366_vm7, 1, %v8552_v3 }
 0x12b   :  { %5509 = vrcp.f32 %v596_v7  ;;  %v5506_v2 = vpop.eup %5505  ;;  %v603_v51 = vadd.f32 1.0, %v5504_v21  ;;  %1035 = vperm.xlu1 %5498, %v1033_v45   ;;  %v8621_v7 = vld [vmem:[#allocation116_spill] sm:$0xff]  ;;  %v8623_v21 = vld [vmem:[#allocation106_spill] sm:$0xff] }
 0x12d   :  { %5511 = vrcp.f32 %v603_v51 }
 0x12f   :  { %1028 = vperm.xlu1 %5498, %v6837_v58  }
 0x133   :  { %1410 = vperm.xlu1 %5498, %v8621_v7   ;;  %v8625_v7 = vld [vmem:[#allocation96_spill] sm:$0xff] }
 0x134   :  { %v5508_v42 = vpop.eup %5507 }
 0x135   :  { %v5510_v61 = vpop.eup %5509  ;;  %v607_v29 = vmul.f32 %v5508_v42, %v5506_v2  ;;  %v298_v2 = vunpack.c.h.bf16 %v294_v32 }
 0x136   :  { %v606_v23 = vmul.f32 0.0, %v5510_v61 }
 0x137   :  { %v5512_v0 = vpop.eup %5511  ;;  %1792 = vperm.xlu1 %5498, %v8622_v54  }
 0x138   :  { %v7057_v48 = vadd.f32 %v607_v29, %v606_v23  ;;  %v8624_v29 = vld [vmem:[#allocation101_spill] sm:$0xff] }
 0x13a   :  { %5513 = vtanh.f32 %v7057_v48 }
 0x13b   :  { %2174 = vperm.xlu1 %5498, %v8623_v21  }
 0x13f   :  { %2556 = vperm.xlu1 %5498, %v8624_v29  }
 0x143   :  { %2938 = vperm.xlu1 %5498, %v1033_v45  }
 0x144   :  { %v5514_v24 = vpop.eup %5513 }
 0x145   :  { %v7060_v35 = vmul.f32 %v5514_v24, %v5512_v0  ;;  %v297_v0 = vunpack.c.l.bf16 %v294_v32  ;;  %v654_v32 = vpop.permute.xlu0 %653 }
 0x146   :  { %vm655_vm8 = vcmp.eq.s32.totalorder %v654_v32, 1  ;;  %v8638_v32 = vld [vmem:[#allocation81_spill] sm:$0xff] }
 0x147   :  { %3327 = vperm.xlu1 %5498, %v8625_v7   ;;  %v8627_v7 = vld [vmem:[#allocation75_spill] sm:$0xff] }
 0x158   :  { %v507_v18 = vpop.f32.mrb[2].mxu0 }
 0x159   :  { %v611_v50 = vadd.f32 %v507_v18, %v295_v13  ;;  %v509_v3 = vpop.f32.mrb[3].mxu0 }
 0x15a   :  { %v612_v15 = vadd.f32 %v509_v3, %v296_v40  ;;  %v578_v51 = vpop.f32.mrb[2].mxu1 }
 0x15b   :  { %v3350_v58 = vmul.f32 -1.442695, %v611_v50  ;;  %v580_v61 = vpop.f32.mrb[3].mxu1  ;;  %v613_v62 = vadd.f32 %v578_v51, %v297_v0 }
 0x15c   :  { %v3351_v42 = vmul.f32 -1.442695, %v612_v15  ;;  %v614_v23 = vadd.f32 %v580_v61, %v298_v2 }
 0x15d   :  { %5515 = vpow2.f32 %v3350_v58 }
 0x15e   :  { %5517 = vpow2.f32 %v3351_v42  ;;  %v3352_v24 = vmul.f32 -1.442695, %v614_v23  ;;  %v7079_v23 = vpop.permute.xlu0 %646 }
 0x15f   :  { %vm648_vm9 = vcmp.eq.s32.totalorder %v7079_v23, 1  ;;  %v8716_v23 = vld [vmem:[#allocation83_spill] sm:$0xff] }
 0x160   :  { %5519 = vpow2.f32 %v3352_v24 }
 0x161   :  { %5521 = vtanh.f32 %v613_v62  ;;  %v8626_v62 = vld [vmem:[#allocation69_spill] sm:$0xff] }
 0x167   :  { %v5516_v13 = vpop.eup %5515 }
 0x168   :  { %v5518_v40 = vpop.eup %5517  ;;  %v618_v54 = vadd.f32 1.0, %v5516_v13  ;;  %v8628_v13 = vld [vmem:[#allocation70_spill] sm:$0xff] }
 0x169   :  { %v624_v18 = vadd.f32 1.0, %v5518_v40  ;;  %v8629_v40 = vld [vmem:[#allocation76_spill] sm:$0xff] }
 0x16a   :  { %5523 = vrcp.f32 %v618_v54  ;;  %v5520_v50 = vpop.eup %5519  ;;  %v8630_v54 = vld [vmem:[#allocation73_spill] sm:$0xff] }
 0x16b   :  { %5525 = vrcp.f32 %v624_v18  ;;  %v5522_v3 = vpop.eup %5521  ;;  %v631_v21 = vadd.f32 1.0, %v5520_v50  ;;  %v8631_v18 = vld [vmem:[#allocation79_spill] sm:$0xff]  ;;  %v8632_v50 = vld [vmem:[#allocation74_spill] sm:$0xff] }
 0x16d   :  { %5527 = vrcp.f32 %v631_v21  ;;  %v8635_v21 = vld [vmem:[#allocation83_spill] sm:$0xff] }
 0x174   :  { %v5524_v15 = vpop.eup %5523 }
 0x175   :  { %v5526_v58 = vpop.eup %5525  ;;  %v635_v2 = vmul.f32 %v5524_v15, %v5522_v3  ;;  %v8633_v3 = vld [vmem:[#allocation80_spill] sm:$0xff]  ;;  %v8634_v15 = vld [vmem:[#allocation77_spill] sm:$0xff] }
 0x176   :  { %v634_v45 = vmul.f32 0.0, %v5526_v58  ;;  %v8636_v58 = vld [vmem:[#allocation78_spill] sm:$0xff] }
 0x177   :  { %v5528_v61 = vpop.eup %5527 }
 0x178   :  { %v636_v42 = vadd.f32 %v635_v2, %v634_v45  ;;  %v8637_v2 = vld [vmem:[#allocation84_spill] sm:$0xff]  ;;  %v8639_v45 = vld [vmem:[#allocation87_spill] sm:$0xff] }
 0x17a   :  { %5529 = vtanh.f32 %v636_v42  ;;  %v7077_v51 = vsel %vm655_vm8, %v636_v42, 0.0  ;;  %v8640_v42 = vld [vmem:[#allocation82_spill] sm:$0xff] }
 0x184   :  { %v5530_v29 = vpop.eup %5529 }
 0x185   :  { %v638_v0 = vmul.f32 %v5530_v29, %v5528_v61  ;;  %v8641_v61 = vld [vmem:[#allocation88_spill] sm:$0xff]  ;;  %v8642_v29 = vld [vmem:[#allocation85_spill] sm:$0xff] }
 0x187   :  { %3439 = vmatprep.mubr.msk.f32.mxu0 %vm655_vm8, %v638_v0  ;;  %3441 = vmatprep.mubr.msk.f32.mxu1 %vm655_vm8, %v638_v0  ;;  %v7085_v24 = vsel %vm655_vm8, %v638_v0, 0.0 }
 0x188   :  { %3440 = vmatmul.mubr.msk.f32.vlgmr.msra.gmra.mrb[4].mxu0 %vm648_vm9, %v7060_v35  ;;  %3442 = vmatmul.mubr.msk.f32.vlgmr.msra.gmra.mrb[4].mxu1 %vm648_vm9, %v7060_v35 }
 0x189   :  { %3834 = vmatpush1.bf16.msra.mxu0 %v8626_v62  ;;  %3898 = vmatpush1.bf16.msra.mxu1 %v8627_v7 }
 0x18a   :  { %3443 = vmatprep.mubr.msk.f32.mxu0 %vm655_vm8, %v638_v0  ;;  %3445 = vmatprep.mubr.msk.f32.mxu1 %vm655_vm8, %v638_v0  ;;  %v8643_v0 = vld [vmem:[#allocation91_spill] sm:$0xff] }
 0x18b   :  { %3836 = vmatprep.subr.bf16.mxu0 %v8628_v13  ;;  %3900 = vmatprep.subr.bf16.mxu1 %v8629_v40 }
 0x18d   :  { %3838 = vmatpush1.bf16.msra.mxu0 %v8630_v54  ;;  %3902 = vmatpush1.bf16.msra.mxu1 %v8631_v18 }
 0x18e   :  { %3840 = vmatprep.subr.bf16.mxu0 %v8632_v50  ;;  %3904 = vmatprep.subr.bf16.mxu1 %v8633_v3  ;;  %v8644_v3 = vld [vmem:[#allocation86_spill] sm:$0xff] }
 0x191   :  { %3842 = vmatpush1.bf16.msra.mxu0 %v8634_v15  ;;  %3906 = vmatpush1.bf16.msra.mxu1 %v8635_v21  ;;  %v8645_v15 = vld [vmem:[#allocation92_spill] sm:$0xff]  ;;  %v8646_v21 = vld [vmem:[#allocation89_spill] sm:$0xff] }
 0x192   :  { %3844 = vmatprep.subr.bf16.mxu0 %v8636_v58  ;;  %3908 = vmatprep.subr.bf16.mxu1 %v8637_v2  ;;  %v8647_v58 = vld [vmem:[#allocation95_spill] sm:$0xff]  ;;  %v8648_v2 = vld [vmem:[#allocation90_spill] sm:$0xff] }
 0x195   :  { %3846 = vmatpush1.bf16.msra.mxu0 %v8638_v32  ;;  %3910 = vmatpush1.bf16.msra.mxu1 %v8639_v45  ;;  %v8649_v32 = vld [vmem:[#allocation97_spill] sm:$0xff] }
 0x196   :  { %3848 = vmatprep.subr.bf16.mxu0 %v8640_v42  ;;  %3912 = vmatprep.subr.bf16.mxu1 %v8641_v61  ;;  %v8650_v45 = vld [vmem:[#allocation93_spill] sm:$0xff]  ;;  %v8651_v42 = vld [vmem:[#allocation100_spill] sm:$0xff]  ;;  %v8652_v61 = vld [vmem:[#allocation94_spill] sm:$0xff] }
 0x199   :  { %3850 = vmatpush1.bf16.msra.mxu0 %v8642_v29  ;;  %3914 = vmatpush1.bf16.msra.mxu1 %v8643_v0  ;;  %v8653_v29 = vld [vmem:[#allocation102_spill] sm:$0xff] }
 0x19a   :  { %3852 = vmatprep.subr.bf16.mxu0 %v8644_v3  ;;  %3916 = vmatprep.subr.bf16.mxu1 %v8645_v15  ;;  %v8654_v0 = vld [vmem:[#allocation98_spill] sm:$0xff]  ;;  %v8655_v3 = vld [vmem:[#allocation105_spill] sm:$0xff]  ;;  %v8656_v15 = vld [vmem:[#allocation99_spill] sm:$0xff] }
 0x19d   :  { %3854 = vmatpush1.bf16.msra.mxu0 %v8646_v21  ;;  %3918 = vmatpush1.bf16.msra.mxu1 %v8647_v58  ;;  %v8657_v21 = vld [vmem:[#allocation107_spill] sm:$0xff] }
 0x19e   :  { %3856 = vmatprep.subr.bf16.mxu0 %v8648_v2  ;;  %3920 = vmatprep.subr.bf16.mxu1 %v8649_v32  ;;  %v8658_v58 = vld [vmem:[#allocation103_spill] sm:$0xff]  ;;  %v8659_v2 = vld [vmem:[#allocation110_spill] sm:$0xff]  ;;  %v8660_v32 = vld [vmem:[#allocation104_spill] sm:$0xff] }
 0x1a1   :  { %3858 = vmatpush1.bf16.msra.mxu0 %v8650_v45  ;;  %3922 = vmatpush1.bf16.msra.mxu1 %v8651_v42  ;;  %v8661_v45 = vld [vmem:[#allocation112_spill] sm:$0xff] }
 0x1a2   :  { %3860 = vmatprep.subr.bf16.mxu0 %v8652_v61  ;;  %3924 = vmatprep.subr.bf16.mxu1 %v8653_v29  ;;  %v8662_v42 = vld [vmem:[#allocation108_spill] sm:$0xff]  ;;  %v8663_v61 = vld [vmem:[#allocation115_spill] sm:$0xff]  ;;  %v8664_v29 = vld [vmem:[#allocation109_spill] sm:$0xff] }
 0x1a5   :  { %3862 = vmatpush1.bf16.msra.mxu0 %v8654_v0  ;;  %3926 = vmatpush1.bf16.msra.mxu1 %v8655_v3  ;;  %v8665_v0 = vld [vmem:[#allocation117_spill] sm:$0xff] }
 0x1a6   :  { %3864 = vmatprep.subr.bf16.mxu0 %v8656_v15  ;;  %3928 = vmatprep.subr.bf16.mxu1 %v8657_v21  ;;  %v8666_v3 = vld [vmem:[#allocation113_spill] sm:$0xff]  ;;  %v8667_v15 = vld [vmem:[#allocation120_spill] sm:$0xff]  ;;  %v8668_v21 = vld [vmem:[#allocation114_spill] sm:$0xff] }
 0x1a9   :  { %3866 = vmatpush1.bf16.msra.mxu0 %v8658_v58  ;;  %3930 = vmatpush1.bf16.msra.mxu1 %v8659_v2  ;;  %v8669_v58 = vld [vmem:[#allocation121_spill] sm:$0xff]  ;;  %v8670_v2 = vld [vmem:[#allocation118_spill] sm:$0xff] }
 0x1aa   :  { %3868 = vmatprep.subr.bf16.mxu0 %v8660_v32  ;;  %3932 = vmatprep.subr.bf16.mxu1 %v8661_v45  ;;  %v8671_v32 = vld [vmem:[#allocation124_spill] sm:$0xff]  ;;  %v8672_v45 = vld [vmem:[#allocation119_spill] sm:$0xff] }
 0x1ad   :  { %3870 = vmatpush1.bf16.msra.mxu0 %v8662_v42  ;;  %3934 = vmatpush1.bf16.msra.mxu1 %v8663_v61  ;;  %v8673_v42 = vld [vmem:[#allocation125_spill] sm:$0xff]  ;;  %v8674_v61 = vld [vmem:[#allocation122_spill] sm:$0xff] }
 0x1ae   :  { %3872 = vmatprep.subr.bf16.mxu0 %v8664_v29  ;;  %3936 = vmatprep.subr.bf16.mxu1 %v8665_v0  ;;  %v8675_v0 = vld [vmem:[#allocation123_spill] sm:$0xff] }
 0x1b1   :  { %3874 = vmatpush1.bf16.msra.mxu0 %v8666_v3  ;;  %3938 = vmatpush1.bf16.msra.mxu1 %v8667_v15 }
 0x1b2   :  { %3876 = vmatprep.subr.bf16.mxu0 %v8668_v21  ;;  %3940 = vmatprep.subr.bf16.mxu1 %v8669_v58  ;;  %v8676_v58 = vld [vmem:[#allocation127_spill] sm:$0xff] }
 0x1b5   :  { %3878 = vmatpush1.bf16.msra.mxu0 %v8670_v2  ;;  %3942 = vmatpush1.bf16.msra.mxu1 %v8671_v32  ;;  %v8677_v32 = vld [vmem:[#allocation130_spill] sm:$0xff] }
 0x1b6   :  { %3880 = vmatprep.subr.bf16.mxu0 %v8672_v45  ;;  %3944 = vmatprep.subr.bf16.mxu1 %v8673_v42 }
 0x1b9   :  { %3882 = vmatpush1.bf16.msra.mxu0 %v8674_v61  ;;  %3946 = vmatpush1.bf16.msra.mxu1 %v6911_v5 }
 0x1ba   :  { %3884 = vmatprep.subr.bf16.mxu0 %v8675_v0  ;;  %3948 = vmatprep.subr.bf16.mxu1 %v6917_v31 }
 0x1bd   :  { %3886 = vmatpush1.bf16.msra.mxu0 %v6895_v38  ;;  %3950 = vmatpush1.bf16.msra.mxu1 %v6944_v12 }
 0x1be   :  { %3888 = vmatprep.subr.bf16.mxu0 %v8676_v58  ;;  %3952 = vmatprep.subr.bf16.mxu1 %v6947_v57 }
 0x1c1   :  { %3890 = vmatpush1.bf16.msra.mxu0 %v8677_v32  ;;  %3954 = vmatpush1.bf16.msra.mxu1 %v6966_v6 }
 0x1c2   :  { %3892 = vmatprep.subr.bf16.mxu0 %v6935_v41  ;;  %3956 = vmatprep.subr.bf16.mxu1 %v6969_v60 }
 0x1c5   :  { %3894 = vmatpush1.bf16.msra.mxu0 %v6962_v39  ;;  %3958 = vmatpush1.bf16.msra.mxu1 %v6979_v20 }
 0x1c6   :  { %3960 = vmatprep.subr.bf16.mxu0 %v5793_v4  ;;  %4024 = vmatprep.subr.bf16.mxu1 %v5845_v22 }
 0x1c8   :  { %3444 = vmatmul.mubr.msk.f32.vlgmr.msra.gmra.mrb[6].mxu0 %vm648_vm9, %v7060_v35  ;;  %3446 = vmatmul.mubr.msk.f32.vlgmr.msra.gmra.mrb[6].mxu1 %vm648_vm9, %v7060_v35 }
 0x1c9   :  { %3962 = vmatpush1.bf16.msra.mxu0 %v5804_v8  ;;  %4026 = vmatpush1.bf16.msra.mxu1 %v5853_v25 }
 0x1ca   :  { %3964 = vmatprep.subr.bf16.mxu0 %v5806_v9  ;;  %4028 = vmatprep.subr.bf16.mxu1 %v5878_v33 }
 0x1cd   :  { %3966 = vmatpush1.bf16.msra.mxu0 %v5822_v14  ;;  %4030 = vmatpush1.bf16.msra.mxu1 %v5889_v37 }
 0x1ce   :  { %3968 = vmatprep.subr.bf16.mxu0 %v5831_v17  ;;  %4032 = vmatprep.subr.bf16.mxu1 %v5915_v46 }
 0x1d1   :  { %3970 = vmatpush1.bf16.msra.mxu0 %v5856_v26  ;;  %4034 = vmatpush1.bf16.msra.mxu1 %v5924_v49 }
 0x1d2   :  { %3972 = vmatprep.subr.bf16.mxu0 %v5869_v30  ;;  %4036 = vmatprep.subr.bf16.mxu1 %v5936_v53 }
 0x1d5   :  { %3974 = vmatpush1.bf16.msra.mxu0 %v5907_v43  ;;  %4038 = vmatpush1.bf16.msra.mxu1 %v5966_v63 }
 0x1d6   :  { %3976 = vmatprep.subr.bf16.mxu0 %v5918_v47  ;;  %4040 = vmatprep.subr.bf16.mxu1 %v5972_v1 }
 0x1d9   :  { %3978 = vmatpush1.bf16.msra.mxu0 %v5945_v56  ;;  %4042 = vmatpush1.bf16.msra.mxu1 %v6002_v16 }
 0x1da   :  { %3980 = vmatprep.subr.bf16.mxu0 %v5954_v59  ;;  %4044 = vmatprep.subr.bf16.mxu1 %v6008_v19  ;;  %v8678_v59 = vld [vmem:[#allocation39_spill] sm:$0xff]  ;;  %v8679_v19 = vld [vmem:[#allocation34_spill] sm:$0xff] }
 0x1dd   :  { %3982 = vmatpush1.bf16.msra.mxu0 %v5987_v10  ;;  %4046 = vmatpush1.bf16.msra.mxu1 %v6038_v34  ;;  %v8680_v10 = vld [vmem:[#allocation40_spill] sm:$0xff]  ;;  %v8681_v34 = vld [vmem:[#allocation37_spill] sm:$0xff] }
 0x1de   :  { %3984 = vmatprep.subr.bf16.mxu0 %v5990_v11  ;;  %4048 = vmatprep.subr.bf16.mxu1 %v6044_v36  ;;  %v8682_v11 = vld [vmem:[#allocation43_spill] sm:$0xff]  ;;  %v8683_v36 = vld [vmem:[#allocation38_spill] sm:$0xff] }
 0x1e1   :  { %3986 = vmatpush1.bf16.msra.mxu0 %v6023_v27  ;;  %4050 = vmatpush1.bf16.msra.mxu1 %v6074_v52  ;;  %v8684_v27 = vld [vmem:[#allocation44_spill] sm:$0xff]  ;;  %v8685_v52 = vld [vmem:[#allocation41_spill] sm:$0xff] }
 0x1e2   :  { %3988 = vmatprep.subr.bf16.mxu0 %v6026_v28  ;;  %4052 = vmatprep.subr.bf16.mxu1 %v6080_v55  ;;  %v8686_v28 = vld [vmem:[#allocation47_spill] sm:$0xff]  ;;  %v8687_v55 = vld [vmem:[#allocation42_spill] sm:$0xff] }
 0x1e5   :  { %3990 = vmatpush1.bf16.msra.mxu0 %v6059_v44  ;;  %4054 = vmatpush1.bf16.msra.mxu1 %v8678_v59  ;;  %v8688_v44 = vld [vmem:[#allocation48_spill] sm:$0xff]  ;;  %v8689_v59 = vld [vmem:[#allocation45_spill] sm:$0xff] }
 0x1e6   :  { %3992 = vmatprep.subr.bf16.mxu0 %v8679_v19  ;;  %4056 = vmatprep.subr.bf16.mxu1 %v8680_v10  ;;  %v8690_v19 = vld [vmem:[#allocation51_spill] sm:$0xff]  ;;  %v8691_v10 = vld [vmem:[#allocation46_spill] sm:$0xff] }
 0x1e9   :  { %3994 = vmatpush1.bf16.msra.mxu0 %v8681_v34  ;;  %4058 = vmatpush1.bf16.msra.mxu1 %v8682_v11  ;;  %v8692_v34 = vld [vmem:[#allocation52_spill] sm:$0xff]  ;;  %v8693_v11 = vld [vmem:[#allocation49_spill] sm:$0xff] }
 0x1ea   :  { %3996 = vmatprep.subr.bf16.mxu0 %v8683_v36  ;;  %4060 = vmatprep.subr.bf16.mxu1 %v8684_v27  ;;  %v8694_v36 = vld [vmem:[#allocation55_spill] sm:$0xff]  ;;  %v8695_v27 = vld [vmem:[#allocation50_spill] sm:$0xff] }
 0x1ed   :  { %3998 = vmatpush1.bf16.msra.mxu0 %v8685_v52  ;;  %4062 = vmatpush1.bf16.msra.mxu1 %v8686_v28  ;;  %v8696_v52 = vld [vmem:[#allocation56_spill] sm:$0xff]  ;;  %v8697_v28 = vld [vmem:[#allocation53_spill] sm:$0xff] }
 0x1ee   :  { %4000 = vmatprep.subr.bf16.mxu0 %v8687_v55  ;;  %4064 = vmatprep.subr.bf16.mxu1 %v8688_v44  ;;  %v8698_v55 = vld [vmem:[#allocation59_spill] sm:$0xff]  ;;  %v8699_v44 = vld [vmem:[#allocation54_spill] sm:$0xff] }
 0x1f1   :  { %4002 = vmatpush1.bf16.msra.mxu0 %v8689_v59  ;;  %4066 = vmatpush1.bf16.msra.mxu1 %v8690_v19  ;;  %v8700_v59 = vld [vmem:[#allocation60_spill] sm:$0xff]  ;;  %v8701_v19 = vld [vmem:[#allocation57_spill] sm:$0xff] }
 0x1f2   :  { %4004 = vmatprep.subr.bf16.mxu0 %v8691_v10  ;;  %4068 = vmatprep.subr.bf16.mxu1 %v8692_v34  ;;  %v8702_v10 = vld [vmem:[#allocation63_spill] sm:$0xff]  ;;  %v8703_v34 = vld [vmem:[#allocation58_spill] sm:$0xff] }
 0x1f5   :  { %4006 = vmatpush1.bf16.msra.mxu0 %v8693_v11  ;;  %4070 = vmatpush1.bf16.msra.mxu1 %v8694_v36  ;;  %v8704_v11 = vld [vmem:[#allocation64_spill] sm:$0xff]  ;;  %v8705_v36 = vld [vmem:[#allocation61_spill] sm:$0xff] }
 0x1f6   :  { %4008 = vmatprep.subr.bf16.mxu0 %v8695_v27  ;;  %4072 = vmatprep.subr.bf16.mxu1 %v8696_v52  ;;  %v8706_v27 = vld [vmem:[#allocation67_spill] sm:$0xff]  ;;  %v8707_v52 = vld [vmem:[#allocation62_spill] sm:$0xff] }
 0x1f9   :  { %4010 = vmatpush1.bf16.msra.mxu0 %v8697_v28  ;;  %4074 = vmatpush1.bf16.msra.mxu1 %v8698_v55  ;;  %v8708_v28 = vld [vmem:[#allocation68_spill] sm:$0xff]  ;;  %v8709_v55 = vld [vmem:[#allocation65_spill] sm:$0xff] }
 0x1fa   :  { %4012 = vmatprep.subr.bf16.mxu0 %v8699_v44  ;;  %4076 = vmatprep.subr.bf16.mxu1 %v8700_v59  ;;  %v8710_v44 = vld [vmem:[#allocation71_spill] sm:$0xff]  ;;  %v8711_v59 = vld [vmem:[#allocation66_spill] sm:$0xff] }
 0x1fd   :  { %4014 = vmatpush1.bf16.msra.mxu0 %v8701_v19  ;;  %4078 = vmatpush1.bf16.msra.mxu1 %v8702_v10  ;;  %v8712_v19 = vld [vmem:[#allocation72_spill] sm:$0xff] }
 0x1fe   :  { %4016 = vmatprep.subr.bf16.mxu0 %v8703_v34  ;;  %4080 = vmatprep.subr.bf16.mxu1 %v8704_v11  ;;  %v3355_v11 = vld [vmem:[%s8177_s0 + $0x10] sm:$0xff] }
 0x1ff   :  { %v670_v34 = vunpack.c.l.bf16 %v3355_v11 }
 0x201   :  { %4018 = vmatpush1.bf16.msra.mxu0 %v8705_v36  ;;  %4082 = vmatpush1.bf16.msra.mxu1 %v8706_v27  ;;  %v671_v36 = vunpack.c.h.bf16 %v3355_v11 }
 0x202   :  { %4020 = vmatprep.subr.bf16.mxu0 %v8707_v52  ;;  %4084 = vmatprep.subr.bf16.mxu1 %v8708_v28  ;;  %v3356_v28 = vld [vmem:[%s8177_s0 + $0x18] sm:$0xff] }
 0x203   :  { %v673_v1 = vunpack.c.h.bf16 %v3356_v28  ;;  %v672_v47 = vunpack.c.l.bf16 %v3356_v28  ;;  %v3357_v28 = vld [vmem:[%s8178_s1 + $0x10] sm:$0xff] }
 0x205   :  { %4022 = vmatpush1.bf16.msra.mxu0 %v8709_v55  ;;  %4086 = vmatpush1.bf16.msra.mxu1 %v8710_v44 }
 0x206   :  { %4088 = vmatprep.subr.bf16.mxu0 %v8711_v59  ;;  %4152 = vmatprep.subr.bf16.mxu1 %v8712_v19 }
 0x25b   :  { %v747_v10 = vpop.f32.mrb[4].mxu0  ;;  %v818_v27 = vpop.f32.mrb[4].mxu1 }
 0x25c   :  { %v965_v16 = vadd.f32 %v747_v10, %v670_v34  ;;  %v749_v55 = vpop.f32.mrb[5].mxu0  ;;  %v820_v52 = vpop.f32.mrb[5].mxu1  ;;  %v967_v43 = vadd.f32 %v818_v27, %v672_v47  ;;  %v658_v47 = vsel %vm648_vm9, %v7057_v48, 0.0 }
 0x25d   :  { %v966_v44 = vadd.f32 %v749_v55, %v671_v36  ;;  %v968_v19 = vadd.f32 %v820_v52, %v673_v1  ;;  %v7235_v34 = vpop.permute.xlu1 %1035  ;;  %v677_v52 = vunpack.c.l.bf16 %v3357_v28 }
 0x25e   :  { %v3359_v56 = vmul.f32 -1.442695, %v965_v16  ;;  %vm1037_vm11 = vcmp.eq.s32.totalorder %v7235_v34, 1  ;;  %v8718_v34 = vld [vmem:[#allocation84_spill] sm:$0xff] }
 0x25f   :  { %v3360_v59 = vmul.f32 -1.442695, %v966_v44  ;;  %v3361_v63 = vmul.f32 -1.442695, %v968_v19 }
 0x260   :  { %5531 = vpow2.f32 %v3359_v56 }
 0x261   :  { %5533 = vpow2.f32 %v3360_v59  ;;  %v1029_v55 = vpop.permute.xlu1 %1028 }
 0x262   :  { %5535 = vpow2.f32 %v3361_v63  ;;  %vm1030_vm10 = vcmp.eq.s32.totalorder %v1029_v55, 1  ;;  %v8719_v55 = vld [vmem:[#allocation81_spill] sm:$0xff] }
 0x263   :  { %5537 = vtanh.f32 %v967_v43 }
 0x26a   :  { %v5532_v11 = vpop.eup %5531 }
 0x26b   :  { %v5534_v53 = vpop.eup %5533  ;;  %v972_v30 = vadd.f32 1.0, %v5532_v11  ;;  %v678_v11 = vunpack.c.h.bf16 %v3357_v28 }
 0x26c   :  { %v978_v10 = vadd.f32 1.0, %v5534_v53  ;;  %v5536_v36 = vpop.eup %5535 }
 0x26d   :  { %5539 = vrcp.f32 %v972_v30  ;;  %v5538_v16 = vpop.eup %5537  ;;  %v985_v59 = vadd.f32 1.0, %v5536_v36 }
 0x26e   :  { %5541 = vrcp.f32 %v978_v10 }
 0x26f   :  { %5543 = vrcp.f32 %v985_v59 }
 0x277   :  { %v5540_v44 = vpop.eup %5539 }
 0x278   :  { %v5542_v56 = vpop.eup %5541  ;;  %v989_v1 = vmul.f32 %v5540_v44, %v5538_v16  ;;  %v3358_v16 = vld [vmem:[%s8178_s1 + $0x18] sm:$0xff] }
 0x279   :  { %v988_v19 = vmul.f32 %v5542_v56, %v658_v47  ;;  %v5544_v43 = vpop.eup %5543 }
 0x27b   :  { %v990_v63 = vadd.f32 %v989_v1, %v988_v19  ;;  %v680_v19 = vunpack.c.h.bf16 %v3358_v16 }
 0x27d   :  { %5545 = vtanh.f32 %v990_v63  ;;  %v7241_v30 = vsel %vm1030_vm10, %v990_v63, %v658_v47 }
 0x27e   :  { %8713 = vst [vmem:[#allocation116_spill] sm:$0xff] %v7241_v30 }
 0x287   :  { %v5546_v53 = vpop.eup %5545 }
 0x288   :  { %v992_v27 = vmul.f32 %v5546_v53, %v5544_v43  ;;  %v679_v43 = vunpack.c.l.bf16 %v3358_v16 }
 0x29b   :  { %v889_v10 = vpop.f32.mrb[6].mxu0  ;;  %v960_v48 = vpop.f32.mrb[6].mxu1 }
 0x29c   :  { %v993_v36 = vadd.f32 %v889_v10, %v677_v52  ;;  %v891_v44 = vpop.f32.mrb[7].mxu0  ;;  %v962_v56 = vpop.f32.mrb[7].mxu1  ;;  %v995_v30 = vadd.f32 %v960_v48, %v679_v43  ;;  %v8723_v43 = vld [vmem:[#allocation85_spill] sm:$0xff] }
 0x29d   :  { %v994_v59 = vadd.f32 %v891_v44, %v678_v11  ;;  %v996_v63 = vadd.f32 %v962_v56, %v680_v19  ;;  %v649_v56 = vsel %vm648_vm9, %v7060_v35, 0.0  ;;  %v8714_v35 = vld [vmem:[#allocation80_spill] sm:$0xff]  ;;  %v8721_v19 = vld [vmem:[#allocation82_spill] sm:$0xff] }
 0x29e   :  { %v3362_v47 = vmul.f32 -1.442695, %v993_v36 }
 0x29f   :  { %v3363_v1 = vmul.f32 -1.442695, %v994_v59  ;;  %v3364_v53 = vmul.f32 -1.442695, %v996_v63  ;;  %v8722_v63 = vld [vmem:[#allocation88_spill] sm:$0xff] }
 0x2a0   :  { %5547 = vpow2.f32 %v3362_v47 }
 0x2a1   :  { %5549 = vpow2.f32 %v3363_v1  ;;  %v7261_v1 = vsel %vm1030_vm10, %v992_v27, %v649_v56  ;;  %v8720_v27 = vld [vmem:[#allocation87_spill] sm:$0xff] }
 0x2a2   :  { %5551 = vpow2.f32 %v3364_v53  ;;  %v8724_v53 = vld [vmem:[#allocation91_spill] sm:$0xff] }
 0x2a3   :  { %5553 = vtanh.f32 %v995_v30  ;;  %v8737_v56 = vld [vmem:[#allocation99_spill] sm:$0xff] }
 0x2aa   :  { %v5548_v28 = vpop.eup %5547 }
 0x2ab   :  { %v5550_v49 = vpop.eup %5549  ;;  %v1000_v26 = vadd.f32 1.0, %v5548_v28  ;;  %v8725_v28 = vld [vmem:[#allocation86_spill] sm:$0xff] }
 0x2ac   :  { %v1006_v52 = vadd.f32 1.0, %v5550_v49  ;;  %v5552_v10 = vpop.eup %5551 }
 0x2ad   :  { %5555 = vrcp.f32 %v1000_v26  ;;  %v5554_v46 = vpop.eup %5553  ;;  %v1013_v59 = vadd.f32 1.0, %v5552_v10  ;;  %v8727_v10 = vld [vmem:[#allocation89_spill] sm:$0xff] }
 0x2ae   :  { %5557 = vrcp.f32 %v1006_v52  ;;  %v8726_v52 = vld [vmem:[#allocation92_spill] sm:$0xff] }
 0x2af   :  { %5559 = vrcp.f32 %v1013_v59  ;;  %v8731_v59 = vld [vmem:[#allocation93_spill] sm:$0xff] }
 0x2b7   :  { %v5556_v11 = vpop.eup %5555 }
 0x2b8   :  { %v5558_v36 = vpop.eup %5557  ;;  %v1017_v44 = vmul.f32 %v5556_v11, %v5554_v46  ;;  %v8728_v11 = vld [vmem:[#allocation95_spill] sm:$0xff] }
 0x2b9   :  { %v1016_v47 = vmul.f32 %v5558_v36, %v7077_v51  ;;  %v5560_v30 = vpop.eup %5559  ;;  %v8729_v36 = vld [vmem:[#allocation90_spill] sm:$0xff] }
 0x2bb   :  { %v1018_v16 = vadd.f32 %v1017_v44, %v1016_v47  ;;  %v8730_v44 = vld [vmem:[#allocation97_spill] sm:$0xff]  ;;  %v8732_v47 = vld [vmem:[#allocation100_spill] sm:$0xff] }
 0x2bd   :  { %5561 = vtanh.f32 %v1018_v16  ;;  %v7252_v48 = vsel %vm1037_vm11, %v1018_v16, %v7077_v51  ;;  %v8715_v51 = vld [vmem:[#allocation77_spill] sm:$0xff]  ;;  %v8733_v16 = vld [vmem:[#allocation94_spill] sm:$0xff] }
 0x2c7   :  { %v5562_v49 = vpop.eup %5561 }
 0x2c8   :  { %v1020_v26 = vmul.f32 %v5562_v49, %v5560_v30  ;;  %v8734_v30 = vld [vmem:[#allocation102_spill] sm:$0xff] }
 0x2c9   :  { %v8735_v49 = vld [vmem:[#allocation98_spill] sm:$0xff] }
 0x2ca   :  { %v7258_v46 = vsel %vm1037_vm11, %v1020_v26, %v7085_v24  ;;  %v8717_v24 = vld [vmem:[#allocation78_spill] sm:$0xff]  ;;  %v8736_v26 = vld [vmem:[#allocation105_spill] sm:$0xff] }
 0x2cb   :  { %1127 = vmatprep.mubr.f32.mxu0 %v7258_v46  ;;  %1198 = vmatprep.mubr.f32.mxu1 %v7258_v46 }
 0x2cc   :  { %1128 = vmatmul.mubr.f32.vlgmr.msra.gmra.mrb[8].mxu0 %v7261_v1  ;;  %1199 = vmatmul.mubr.f32.vlgmr.msra.gmra.mrb[8].mxu1 %v7261_v1 }
 0x2cd   :  { %4090 = vmatpush1.bf16.msra.mxu0 %v8626_v62  ;;  %4154 = vmatpush1.bf16.msra.mxu1 %v8627_v7 }
 0x2ce   :  { %1269 = vmatprep.mubr.f32.mxu0 %v7258_v46  ;;  %1340 = vmatprep.mubr.f32.mxu1 %v7258_v46 }
 0x2cf   :  { %4092 = vmatprep.subr.bf16.mxu0 %v8628_v13  ;;  %4156 = vmatprep.subr.bf16.mxu1 %v8629_v40 }
 0x2d1   :  { %4094 = vmatpush1.bf16.msra.mxu0 %v8630_v54  ;;  %4158 = vmatpush1.bf16.msra.mxu1 %v8631_v18 }
 0x2d2   :  { %4096 = vmatprep.subr.bf16.mxu0 %v8632_v50  ;;  %4160 = vmatprep.subr.bf16.mxu1 %v8714_v35 }
 0x2d5   :  { %4098 = vmatpush1.bf16.msra.mxu0 %v8715_v51  ;;  %4162 = vmatpush1.bf16.msra.mxu1 %v8716_v23 }
 0x2d6   :  { %4100 = vmatprep.subr.bf16.mxu0 %v8717_v24  ;;  %4164 = vmatprep.subr.bf16.mxu1 %v8718_v34 }
 0x2d9   :  { %4102 = vmatpush1.bf16.msra.mxu0 %v8719_v55  ;;  %4166 = vmatpush1.bf16.msra.mxu1 %v8720_v27 }
 0x2da   :  { %4104 = vmatprep.subr.bf16.mxu0 %v8721_v19  ;;  %4168 = vmatprep.subr.bf16.mxu1 %v8722_v63 }
 0x2dd   :  { %4106 = vmatpush1.bf16.msra.mxu0 %v8723_v43  ;;  %4170 = vmatpush1.bf16.msra.mxu1 %v8724_v53 }
 0x2de   :  { %4108 = vmatprep.subr.bf16.mxu0 %v8725_v28  ;;  %4172 = vmatprep.subr.bf16.mxu1 %v8726_v52 }
 0x2e1   :  { %4110 = vmatpush1.bf16.msra.mxu0 %v8727_v10  ;;  %4174 = vmatpush1.bf16.msra.mxu1 %v8728_v11  ;;  %v8738_v10 = vld [vmem:[#allocation107_spill] sm:$0xff] }
 0x2e2   :  { %4112 = vmatprep.subr.bf16.mxu0 %v8729_v36  ;;  %4176 = vmatprep.subr.bf16.mxu1 %v8730_v44  ;;  %v8739_v11 = vld [vmem:[#allocation103_spill] sm:$0xff]  ;;  %v8740_v36 = vld [vmem:[#allocation110_spill] sm:$0xff]  ;;  %v8741_v44 = vld [vmem:[#allocation104_spill] sm:$0xff] }
 0x2e5   :  { %4114 = vmatpush1.bf16.msra.mxu0 %v8731_v59  ;;  %4178 = vmatpush1.bf16.msra.mxu1 %v8732_v47  ;;  %v8742_v59 = vld [vmem:[#allocation112_spill] sm:$0xff] }
 0x2e6   :  { %4116 = vmatprep.subr.bf16.mxu0 %v8733_v16  ;;  %4180 = vmatprep.subr.bf16.mxu1 %v8734_v30  ;;  %v8743_v47 = vld [vmem:[#allocation108_spill] sm:$0xff]  ;;  %v8744_v16 = vld [vmem:[#allocation115_spill] sm:$0xff] }
 0x2e9   :  { %4118 = vmatpush1.bf16.msra.mxu0 %v8735_v49  ;;  %4182 = vmatpush1.bf16.msra.mxu1 %v8736_v26  ;;  %v8745_v49 = vld [vmem:[#allocation117_spill] sm:$0xff] }
 0x2ea   :  { %4120 = vmatprep.subr.bf16.mxu0 %v8737_v56  ;;  %4184 = vmatprep.subr.bf16.mxu1 %v8738_v10 }
 0x2ed   :  { %4122 = vmatpush1.bf16.msra.mxu0 %v8739_v11  ;;  %4186 = vmatpush1.bf16.msra.mxu1 %v8740_v36  ;;  %v8746_v11 = vld [vmem:[#allocation121_spill] sm:$0xff] }
 0x2ee   :  { %4124 = vmatprep.subr.bf16.mxu0 %v8741_v44  ;;  %4188 = vmatprep.subr.bf16.mxu1 %v8742_v59  ;;  %v8747_v44 = vld [vmem:[#allocation124_spill] sm:$0xff] }
 0x2f1   :  { %4126 = vmatpush1.bf16.msra.mxu0 %v8743_v47  ;;  %4190 = vmatpush1.bf16.msra.mxu1 %v8744_v16 }
 0x2f2   :  { %4128 = vmatprep.subr.bf16.mxu0 %v8664_v29  ;;  %4192 = vmatprep.subr.bf16.mxu1 %v8745_v49 }
 0x2f5   :  { %4130 = vmatpush1.bf16.msra.mxu0 %v8666_v3  ;;  %4194 = vmatpush1.bf16.msra.mxu1 %v8667_v15 }
 0x2f6   :  { %4132 = vmatprep.subr.bf16.mxu0 %v8668_v21  ;;  %4196 = vmatprep.subr.bf16.mxu1 %v8746_v11 }
 0x2f9   :  { %4134 = vmatpush1.bf16.msra.mxu0 %v8670_v2  ;;  %4198 = vmatpush1.bf16.msra.mxu1 %v8747_v44 }
 0x2fa   :  { %4136 = vmatprep.subr.bf16.mxu0 %v8672_v45  ;;  %4200 = vmatprep.subr.bf16.mxu1 %v8673_v42 }
 0x2fd   :  { %4138 = vmatpush1.bf16.msra.mxu0 %v8674_v61  ;;  %4202 = vmatpush1.bf16.msra.mxu1 %v6911_v5 }
 0x2fe   :  { %4140 = vmatprep.subr.bf16.mxu0 %v8675_v0  ;;  %4204 = vmatprep.subr.bf16.mxu1 %v6917_v31 }
 0x301   :  { %4142 = vmatpush1.bf16.msra.mxu0 %v6895_v38  ;;  %4206 = vmatpush1.bf16.msra.mxu1 %v6944_v12 }
 0x302   :  { %4144 = vmatprep.subr.bf16.mxu0 %v8676_v58  ;;  %4208 = vmatprep.subr.bf16.mxu1 %v6947_v57 }
 0x305   :  { %4146 = vmatpush1.bf16.msra.mxu0 %v8677_v32  ;;  %4210 = vmatpush1.bf16.msra.mxu1 %v6966_v6 }
 0x306   :  { %4148 = vmatprep.subr.bf16.mxu0 %v6935_v41  ;;  %4212 = vmatprep.subr.bf16.mxu1 %v6969_v60 }
 0x309   :  { %4150 = vmatpush1.bf16.msra.mxu0 %v6962_v39  ;;  %4214 = vmatpush1.bf16.msra.mxu1 %v6979_v20  ;;  %v8750_v20 = vld [vmem:[#allocation19_spill] sm:$0xff]  ;;  %v8751_v39 = vld [vmem:[#allocation13_spill] sm:$0xff] }
 0x30a   :  { %4216 = vmatprep.subr.bf16.mxu0 %v5793_v4  ;;  %4280 = vmatprep.subr.bf16.mxu1 %v5845_v22  ;;  %v8748_v4 = vld [vmem:[#allocation17_spill] sm:$0xff]  ;;  %v8749_v22 = vld [vmem:[#allocation12_spill] sm:$0xff] }
 0x30c   :  { %1270 = vmatmul.mubr.f32.vlgmr.msra.gmra.mrb[10].mxu0 %v7261_v1  ;;  %1341 = vmatmul.mubr.f32.vlgmr.msra.gmra.mrb[10].mxu1 %v7261_v1 }
 0x30d   :  { %4218 = vmatpush1.bf16.msra.mxu0 %v5804_v8  ;;  %4282 = vmatpush1.bf16.msra.mxu1 %v5853_v25  ;;  %v8752_v8 = vld [vmem:[#allocation20_spill] sm:$0xff] }
 0x30e   :  { %4220 = vmatprep.subr.bf16.mxu0 %v5806_v9  ;;  %4284 = vmatprep.subr.bf16.mxu1 %v5878_v33  ;;  %v8753_v25 = vld [vmem:[#allocation16_spill] sm:$0xff]  ;;  %v8754_v9 = vld [vmem:[#allocation23_spill] sm:$0xff]  ;;  %v8755_v33 = vld [vmem:[#allocation18_spill] sm:$0xff] }
 0x311   :  { %4222 = vmatpush1.bf16.msra.mxu0 %v5822_v14  ;;  %4286 = vmatpush1.bf16.msra.mxu1 %v5889_v37  ;;  %v8756_v14 = vld [vmem:[#allocation24_spill] sm:$0xff]  ;;  %v8757_v37 = vld [vmem:[#allocation21_spill] sm:$0xff] }
 0x312   :  { %4224 = vmatprep.subr.bf16.mxu0 %v5831_v17  ;;  %4288 = vmatprep.subr.bf16.mxu1 %v8748_v4  ;;  %v8758_v17 = vld [vmem:[#allocation27_spill] sm:$0xff]  ;;  %v8759_v4 = vld [vmem:[#allocation22_spill] sm:$0xff] }
 0x315   :  { %4226 = vmatpush1.bf16.msra.mxu0 %v8749_v22  ;;  %4290 = vmatpush1.bf16.msra.mxu1 %v8750_v20  ;;  %v8760_v22 = vld [vmem:[#allocation28_spill] sm:$0xff]  ;;  %v8761_v20 = vld [vmem:[#allocation25_spill] sm:$0xff] }
 0x316   :  { %4228 = vmatprep.subr.bf16.mxu0 %v8751_v39  ;;  %4292 = vmatprep.subr.bf16.mxu1 %v8752_v8  ;;  %v8762_v39 = vld [vmem:[#allocation31_spill] sm:$0xff]  ;;  %v8763_v8 = vld [vmem:[#allocation26_spill] sm:$0xff] }
 0x319   :  { %4230 = vmatpush1.bf16.msra.mxu0 %v8753_v25  ;;  %4294 = vmatpush1.bf16.msra.mxu1 %v8754_v9  ;;  %v8764_v25 = vld [vmem:[#allocation32_spill] sm:$0xff]  ;;  %v8765_v9 = vld [vmem:[#allocation29_spill] sm:$0xff] }
 0x31a   :  { %4232 = vmatprep.subr.bf16.mxu0 %v8755_v33  ;;  %4296 = vmatprep.subr.bf16.mxu1 %v8756_v14  ;;  %v8766_v33 = vld [vmem:[#allocation35_spill] sm:$0xff]  ;;  %v8767_v14 = vld [vmem:[#allocation30_spill] sm:$0xff] }
 0x31d   :  { %4234 = vmatpush1.bf16.msra.mxu0 %v8757_v37  ;;  %4298 = vmatpush1.bf16.msra.mxu1 %v8758_v17  ;;  %v8768_v37 = vld [vmem:[#allocation36_spill] sm:$0xff]  ;;  %v8769_v17 = vld [vmem:[#allocation33_spill] sm:$0xff] }
 0x31e   :  { %4236 = vmatprep.subr.bf16.mxu0 %v8759_v4  ;;  %4300 = vmatprep.subr.bf16.mxu1 %v8760_v22  ;;  %v8770_v4 = vld [vmem:[#allocation39_spill] sm:$0xff]  ;;  %v8771_v22 = vld [vmem:[#allocation34_spill] sm:$0xff] }
 0x321   :  { %4238 = vmatpush1.bf16.msra.mxu0 %v8761_v20  ;;  %4302 = vmatpush1.bf16.msra.mxu1 %v8762_v39  ;;  %v8772_v20 = vld [vmem:[#allocation40_spill] sm:$0xff]  ;;  %v8773_v39 = vld [vmem:[#allocation37_spill] sm:$0xff] }
 0x322   :  { %4240 = vmatprep.subr.bf16.mxu0 %v8763_v8  ;;  %4304 = vmatprep.subr.bf16.mxu1 %v8764_v25  ;;  %v8774_v8 = vld [vmem:[#allocation43_spill] sm:$0xff]  ;;  %v8775_v25 = vld [vmem:[#allocation38_spill] sm:$0xff] }
 0x325   :  { %4242 = vmatpush1.bf16.msra.mxu0 %v8765_v9  ;;  %4306 = vmatpush1.bf16.msra.mxu1 %v8766_v33  ;;  %v8776_v9 = vld [vmem:[#allocation44_spill] sm:$0xff]  ;;  %v8777_v33 = vld [vmem:[#allocation41_spill] sm:$0xff] }
 0x326   :  { %4244 = vmatprep.subr.bf16.mxu0 %v8767_v14  ;;  %4308 = vmatprep.subr.bf16.mxu1 %v8768_v37  ;;  %v8778_v14 = vld [vmem:[#allocation47_spill] sm:$0xff]  ;;  %v8779_v37 = vld [vmem:[#allocation42_spill] sm:$0xff] }
 0x329   :  { %4246 = vmatpush1.bf16.msra.mxu0 %v8769_v17  ;;  %4310 = vmatpush1.bf16.msra.mxu1 %v8770_v4  ;;  %v8780_v17 = vld [vmem:[#allocation48_spill] sm:$0xff]  ;;  %v8781_v4 = vld [vmem:[#allocation45_spill] sm:$0xff] }
 0x32a   :  { %4248 = vmatprep.subr.bf16.mxu0 %v8771_v22  ;;  %4312 = vmatprep.subr.bf16.mxu1 %v8772_v20  ;;  %v8782_v22 = vld [vmem:[#allocation51_spill] sm:$0xff]  ;;  %v8783_v20 = vld [vmem:[#allocation46_spill] sm:$0xff] }
 0x32d   :  { %4250 = vmatpush1.bf16.msra.mxu0 %v8773_v39  ;;  %4314 = vmatpush1.bf16.msra.mxu1 %v8774_v8  ;;  %v8784_v39 = vld [vmem:[#allocation52_spill] sm:$0xff]  ;;  %v8785_v8 = vld [vmem:[#allocation49_spill] sm:$0xff] }
 0x32e   :  { %4252 = vmatprep.subr.bf16.mxu0 %v8775_v25  ;;  %4316 = vmatprep.subr.bf16.mxu1 %v8776_v9  ;;  %v8786_v25 = vld [vmem:[#allocation55_spill] sm:$0xff]  ;;  %v8787_v9 = vld [vmem:[#allocation50_spill] sm:$0xff] }
 0x331   :  { %4254 = vmatpush1.bf16.msra.mxu0 %v8777_v33  ;;  %4318 = vmatpush1.bf16.msra.mxu1 %v8778_v14  ;;  %v8788_v33 = vld [vmem:[#allocation56_spill] sm:$0xff]  ;;  %v8789_v14 = vld [vmem:[#allocation53_spill] sm:$0xff] }
 0x332   :  { %4256 = vmatprep.subr.bf16.mxu0 %v8779_v37  ;;  %4320 = vmatprep.subr.bf16.mxu1 %v8780_v17  ;;  %v8790_v37 = vld [vmem:[#allocation59_spill] sm:$0xff]  ;;  %v8791_v17 = vld [vmem:[#allocation54_spill] sm:$0xff] }
 0x335   :  { %4258 = vmatpush1.bf16.msra.mxu0 %v8781_v4  ;;  %4322 = vmatpush1.bf16.msra.mxu1 %v8782_v22  ;;  %v8792_v4 = vld [vmem:[#allocation60_spill] sm:$0xff]  ;;  %v8793_v22 = vld [vmem:[#allocation57_spill] sm:$0xff] }
 0x336   :  { %4260 = vmatprep.subr.bf16.mxu0 %v8783_v20  ;;  %4324 = vmatprep.subr.bf16.mxu1 %v8784_v39  ;;  %v8794_v20 = vld [vmem:[#allocation63_spill] sm:$0xff]  ;;  %v8795_v39 = vld [vmem:[#allocation58_spill] sm:$0xff] }
 0x339   :  { %4262 = vmatpush1.bf16.msra.mxu0 %v8785_v8  ;;  %4326 = vmatpush1.bf16.msra.mxu1 %v8786_v25  ;;  %v8796_v8 = vld [vmem:[#allocation64_spill] sm:$0xff]  ;;  %v8797_v25 = vld [vmem:[#allocation61_spill] sm:$0xff] }
 0x33a   :  { %4264 = vmatprep.subr.bf16.mxu0 %v8787_v9  ;;  %4328 = vmatprep.subr.bf16.mxu1 %v8788_v33  ;;  %v8798_v9 = vld [vmem:[#allocation67_spill] sm:$0xff]  ;;  %v8799_v33 = vld [vmem:[#allocation62_spill] sm:$0xff] }
 0x33d   :  { %4266 = vmatpush1.bf16.msra.mxu0 %v8789_v14  ;;  %4330 = vmatpush1.bf16.msra.mxu1 %v8790_v37  ;;  %v8800_v14 = vld [vmem:[#allocation68_spill] sm:$0xff]  ;;  %v8801_v37 = vld [vmem:[#allocation65_spill] sm:$0xff] }
 0x33e   :  { %4268 = vmatprep.subr.bf16.mxu0 %v8791_v17  ;;  %4332 = vmatprep.subr.bf16.mxu1 %v8792_v4  ;;  %v8802_v17 = vld [vmem:[#allocation71_spill] sm:$0xff]  ;;  %v8803_v4 = vld [vmem:[#allocation66_spill] sm:$0xff] }
 0x341   :  { %4270 = vmatpush1.bf16.msra.mxu0 %v8793_v22  ;;  %4334 = vmatpush1.bf16.msra.mxu1 %v8794_v20  ;;  %v8804_v22 = vld [vmem:[#allocation72_spill] sm:$0xff] }
 0x342   :  { %4272 = vmatprep.subr.bf16.mxu0 %v8795_v39  ;;  %4336 = vmatprep.subr.bf16.mxu1 %v8796_v8  ;;  %v3367_v8 = vld [vmem:[%s8177_s0 + $0x20] sm:$0xff] }
 0x343   :  { %v1052_v39 = vunpack.c.l.bf16 %v3367_v8 }
 0x345   :  { %4274 = vmatpush1.bf16.msra.mxu0 %v8797_v25  ;;  %4338 = vmatpush1.bf16.msra.mxu1 %v8798_v9  ;;  %v1053_v25 = vunpack.c.h.bf16 %v3367_v8 }
 0x346   :  { %4276 = vmatprep.subr.bf16.mxu0 %v8799_v33  ;;  %4340 = vmatprep.subr.bf16.mxu1 %v8800_v14  ;;  %v3368_v14 = vld [vmem:[%s8177_s0 + $0x28] sm:$0xff] }
 0x347   :  { %v1055_v6 = vunpack.c.h.bf16 %v3368_v14  ;;  %v1054_v32 = vunpack.c.l.bf16 %v3368_v14 }
 0x349   :  { %4278 = vmatpush1.bf16.msra.mxu0 %v8801_v37  ;;  %4342 = vmatpush1.bf16.msra.mxu1 %v8802_v17 }
 0x34a   :  { %4344 = vmatprep.subr.bf16.mxu0 %v8803_v4  ;;  %4408 = vmatprep.subr.bf16.mxu1 %v8804_v22 }
 0x39f   :  { %v1129_v20 = vpop.f32.mrb[8].mxu0  ;;  %v1200_v9 = vpop.f32.mrb[8].mxu1 }
 0x3a0   :  { %v1347_v60 = vadd.f32 %v1129_v20, %v1052_v39  ;;  %v1131_v37 = vpop.f32.mrb[9].mxu0  ;;  %v1202_v33 = vpop.f32.mrb[9].mxu1  ;;  %v1349_v58 = vadd.f32 %v1200_v9, %v1054_v32 }
 0x3a1   :  { %v1348_v17 = vadd.f32 %v1131_v37, %v1053_v25  ;;  %v1350_v22 = vadd.f32 %v1202_v33, %v1055_v6  ;;  %v1411_v33 = vpop.permute.xlu1 %1410 }
 0x3a2   :  { %v3371_v41 = vmul.f32 -1.442695, %v1347_v60  ;;  %vm1412_vm12 = vcmp.eq.s32.totalorder %v1411_v33, 1  ;;  %v8810_v33 = vld [vmem:[#allocation97_spill] sm:$0xff] }
 0x3a3   :  { %v3372_v4 = vmul.f32 -1.442695, %v1348_v17  ;;  %v3373_v57 = vmul.f32 -1.442695, %v1350_v22 }
 0x3a4   :  { %5563 = vpow2.f32 %v3371_v41  ;;  %v8805_v41 = vld [vmem:[#allocation116_spill] sm:$0xff] }
 0x3a5   :  { %5565 = vpow2.f32 %v3372_v4 }
 0x3a6   :  { %5567 = vpow2.f32 %v3373_v57  ;;  %v3369_v57 = vld [vmem:[%s8178_s1 + $0x20] sm:$0xff] }
 0x3a7   :  { %5569 = vtanh.f32 %v1349_v58  ;;  %v1060_v6 = vunpack.c.h.bf16 %v3369_v57 }
 0x3ae   :  { %v5564_v8 = vpop.eup %5563 }
 0x3af   :  { %v5566_v12 = vpop.eup %5565  ;;  %v1354_v38 = vadd.f32 1.0, %v5564_v8 }
 0x3b0   :  { %v1360_v39 = vadd.f32 1.0, %v5566_v12  ;;  %v5568_v20 = vpop.eup %5567 }
 0x3b1   :  { %5571 = vrcp.f32 %v1354_v38  ;;  %v5570_v31 = vpop.eup %5569  ;;  %v1367_v60 = vadd.f32 1.0, %v5568_v20 }
 0x3b2   :  { %5573 = vrcp.f32 %v1360_v39  ;;  %v3370_v39 = vld [vmem:[%s8178_s1 + $0x28] sm:$0xff] }
 0x3b3   :  { %5575 = vrcp.f32 %v1367_v60 }
 0x3bb   :  { %v5572_v25 = vpop.eup %5571 }
 0x3bc   :  { %v5574_v37 = vpop.eup %5573  ;;  %v1371_v17 = vmul.f32 %v5572_v25, %v5570_v31  ;;  %v1059_v31 = vunpack.c.l.bf16 %v3369_v57 }
 0x3bd   :  { %v1370_v4 = vmul.f32 %v5574_v37, %v8805_v41  ;;  %v5576_v22 = vpop.eup %5575 }
 0x3bf   :  { %v1372_v14 = vadd.f32 %v1371_v17, %v1370_v4 }
 0x3c1   :  { %5577 = vtanh.f32 %v1372_v14  ;;  %v7408_v9 = vsel %vm1412_vm12, %v1372_v14, %v8805_v41  ;;  %v1062_v41 = vunpack.c.h.bf16 %v3370_v39  ;;  %v1061_v14 = vunpack.c.l.bf16 %v3370_v39 }
 0x3c2   :  { %8806 = vst [vmem:[#allocation111_spill] sm:$0xff] %v7408_v9 }
 0x3cb   :  { %v5578_v12 = vpop.eup %5577 }
 0x3cc   :  { %v1374_v38 = vmul.f32 %v5578_v12, %v5576_v22 }
 0x3df   :  { %v1271_v58 = vpop.f32.mrb[10].mxu0  ;;  %v1342_v32 = vpop.f32.mrb[10].mxu1 }
 0x3e0   :  { %v1375_v8 = vadd.f32 %v1271_v58, %v1059_v31  ;;  %v1273_v20 = vpop.f32.mrb[11].mxu0  ;;  %v1344_v25 = vpop.f32.mrb[11].mxu1  ;;  %v1377_v12 = vadd.f32 %v1342_v32, %v1061_v14  ;;  %v8813_v14 = vld [vmem:[#allocation94_spill] sm:$0xff] }
 0x3e1   :  { %v1376_v37 = vadd.f32 %v1273_v20, %v1060_v6  ;;  %v1378_v4 = vadd.f32 %v1344_v25, %v1062_v41  ;;  %v1418_v25 = vpop.permute.xlu0 %1417 }
 0x3e2   :  { %v3374_v17 = vmul.f32 -1.442695, %v1375_v8  ;;  %vm1419_vm13 = vcmp.eq.s32.totalorder %v1418_v25, 1  ;;  %v8824_v25 = vld [vmem:[#allocation130_spill] sm:$0xff] }
 0x3e3   :  { %v3375_v60 = vmul.f32 -1.442695, %v1376_v37  ;;  %v3376_v22 = vmul.f32 -1.442695, %v1378_v4  ;;  %v8812_v4 = vld [vmem:[#allocation100_spill] sm:$0xff] }
 0x3e4   :  { %5579 = vpow2.f32 %v3374_v17 }
 0x3e5   :  { %5581 = vpow2.f32 %v3375_v60 }
 0x3e6   :  { %5583 = vpow2.f32 %v3376_v22  ;;  %v8814_v22 = vld [vmem:[#allocation98_spill] sm:$0xff] }
 0x3e7   :  { %5585 = vtanh.f32 %v1377_v12  ;;  %v8815_v12 = vld [vmem:[#allocation103_spill] sm:$0xff] }
 0x3ee   :  { %v5580_v57 = vpop.eup %5579 }
 0x3ef   :  { %v5582_v9 = vpop.eup %5581  ;;  %v1382_v0 = vadd.f32 1.0, %v5580_v57  ;;  %v8816_v57 = vld [vmem:[#allocation104_spill] sm:$0xff] }
 0x3f0   :  { %v1388_v31 = vadd.f32 1.0, %v5582_v9  ;;  %v5584_v58 = vpop.eup %5583 }
 0x3f1   :  { %5587 = vrcp.f32 %v1382_v0  ;;  %v5586_v5 = vpop.eup %5585  ;;  %v1395_v37 = vadd.f32 1.0, %v5584_v58  ;;  %v8818_v58 = vld [vmem:[#allocation123_spill] sm:$0xff] }
 0x3f2   :  { %5589 = vrcp.f32 %v1388_v31  ;;  %v8817_v31 = vld [vmem:[#allocation128_spill] sm:$0xff] }
 0x3f3   :  { %5591 = vrcp.f32 %v1395_v37  ;;  %v8822_v37 = vld [vmem:[#allocation127_spill] sm:$0xff] }
 0x3fb   :  { %v5588_v6 = vpop.eup %5587 }
 0x3fc   :  { %v5590_v8 = vpop.eup %5589  ;;  %v1399_v20 = vmul.f32 %v5588_v6, %v5586_v5  ;;  %v7427_v5 = vsel %vm1412_vm12, %v1374_v38, %v7261_v1  ;;  %v8809_v1 = vld [vmem:[#allocation90_spill] sm:$0xff]  ;;  %v8811_v38 = vld [vmem:[#allocation93_spill] sm:$0xff] }
 0x3fd   :  { %v1398_v17 = vmul.f32 %v5590_v8, %v7252_v48  ;;  %v5592_v60 = vpop.eup %5591  ;;  %v8819_v6 = vld [vmem:[#allocation129_spill] sm:$0xff]  ;;  %v8820_v8 = vld [vmem:[#allocation126_spill] sm:$0xff] }
 0x3ff   :  { %v1400_v39 = vadd.f32 %v1399_v20, %v1398_v17  ;;  %v8821_v20 = vld [vmem:[#allocation132_spill] sm:$0xff]  ;;  %v8823_v17 = vld [vmem:[#allocation133_spill] sm:$0xff] }
 0x401   :  { %5593 = vtanh.f32 %v1400_v39  ;;  %v7418_v32 = vsel %vm1419_vm13, %v1400_v39, %v7252_v48  ;;  %v8807_v48 = vld [vmem:[#allocation89_spill] sm:$0xff]  ;;  %v8825_v39 = vld [vmem:[#allocation135_spill] sm:$0xff] }
 0x40b   :  { %v5594_v9 = vpop.eup %5593 }
 0x40c   :  { %v1402_v0 = vmul.f32 %v5594_v9, %v5592_v60  ;;  %v8826_v60 = vld [vmem:[#allocation131_spill] sm:$0xff]  ;;  %v8827_v9 = vld [vmem:[#allocation136_spill] sm:$0xff] }
 0x40e   :  { %v7421_v41 = vsel %vm1419_vm13, %v1402_v0, %v7258_v46  ;;  %v8808_v46 = vld [vmem:[#allocation95_spill] sm:$0xff]  ;;  %v8828_v0 = vld [vmem:[#allocation134_spill] sm:$0xff] }
 0x40f   :  { %1509 = vmatprep.mubr.f32.mxu0 %v7421_v41  ;;  %1580 = vmatprep.mubr.f32.mxu1 %v7421_v41 }
 0x410   :  { %1510 = vmatmul.mubr.f32.vlgmr.msra.gmra.mrb[12].mxu0 %v7427_v5  ;;  %1581 = vmatmul.mubr.f32.vlgmr.msra.gmra.mrb[12].mxu1 %v7427_v5 }
 0x411   :  { %4346 = vmatpush1.bf16.msra.mxu0 %v8626_v62  ;;  %4410 = vmatpush1.bf16.msra.mxu1 %v8627_v7 }
 0x412   :  { %1651 = vmatprep.mubr.f32.mxu0 %v7421_v41  ;;  %1722 = vmatprep.mubr.f32.mxu1 %v7421_v41 }
 0x413   :  { %4348 = vmatprep.subr.bf16.mxu0 %v8628_v13  ;;  %4412 = vmatprep.subr.bf16.mxu1 %v8629_v40 }
 0x415   :  { %4350 = vmatpush1.bf16.msra.mxu0 %v8630_v54  ;;  %4414 = vmatpush1.bf16.msra.mxu1 %v8631_v18 }
 0x416   :  { %4352 = vmatprep.subr.bf16.mxu0 %v8632_v50  ;;  %4416 = vmatprep.subr.bf16.mxu1 %v8714_v35 }
 0x419   :  { %4354 = vmatpush1.bf16.msra.mxu0 %v8715_v51  ;;  %4418 = vmatpush1.bf16.msra.mxu1 %v8716_v23 }
 0x41a   :  { %4356 = vmatprep.subr.bf16.mxu0 %v8717_v24  ;;  %4420 = vmatprep.subr.bf16.mxu1 %v8718_v34 }
 0x41d   :  { %4358 = vmatpush1.bf16.msra.mxu0 %v8719_v55  ;;  %4422 = vmatpush1.bf16.msra.mxu1 %v8720_v27 }
 0x41e   :  { %4360 = vmatprep.subr.bf16.mxu0 %v8721_v19  ;;  %4424 = vmatprep.subr.bf16.mxu1 %v8722_v63 }
 0x421   :  { %4362 = vmatpush1.bf16.msra.mxu0 %v8723_v43  ;;  %4426 = vmatpush1.bf16.msra.mxu1 %v8724_v53 }
 0x422   :  { %4364 = vmatprep.subr.bf16.mxu0 %v8725_v28  ;;  %4428 = vmatprep.subr.bf16.mxu1 %v8726_v52 }
 0x425   :  { %4366 = vmatpush1.bf16.msra.mxu0 %v8807_v48  ;;  %4430 = vmatpush1.bf16.msra.mxu1 %v8808_v46 }
 0x426   :  { %4368 = vmatprep.subr.bf16.mxu0 %v8809_v1  ;;  %4432 = vmatprep.subr.bf16.mxu1 %v8810_v33 }
 0x429   :  { %4370 = vmatpush1.bf16.msra.mxu0 %v8811_v38  ;;  %4434 = vmatpush1.bf16.msra.mxu1 %v8812_v4 }
 0x42a   :  { %4372 = vmatprep.subr.bf16.mxu0 %v8813_v14  ;;  %4436 = vmatprep.subr.bf16.mxu1 %v8734_v30 }
 0x42d   :  { %4374 = vmatpush1.bf16.msra.mxu0 %v8814_v22  ;;  %4438 = vmatpush1.bf16.msra.mxu1 %v8736_v26 }
 0x42e   :  { %4376 = vmatprep.subr.bf16.mxu0 %v8737_v56  ;;  %4440 = vmatprep.subr.bf16.mxu1 %v8738_v10 }
 0x431   :  { %4378 = vmatpush1.bf16.msra.mxu0 %v8815_v12  ;;  %4442 = vmatpush1.bf16.msra.mxu1 %v8740_v36 }
 0x432   :  { %4380 = vmatprep.subr.bf16.mxu0 %v8816_v57  ;;  %4444 = vmatprep.subr.bf16.mxu1 %v8742_v59 }
 0x435   :  { %4382 = vmatpush1.bf16.msra.mxu0 %v8743_v47  ;;  %4446 = vmatpush1.bf16.msra.mxu1 %v8744_v16 }
 0x436   :  { %4384 = vmatprep.subr.bf16.mxu0 %v8664_v29  ;;  %4448 = vmatprep.subr.bf16.mxu1 %v8745_v49 }
 0x439   :  { %4386 = vmatpush1.bf16.msra.mxu0 %v8666_v3  ;;  %4450 = vmatpush1.bf16.msra.mxu1 %v8667_v15 }
 0x43a   :  { %4388 = vmatprep.subr.bf16.mxu0 %v8668_v21  ;;  %4452 = vmatprep.subr.bf16.mxu1 %v8746_v11 }
 0x43d   :  { %4390 = vmatpush1.bf16.msra.mxu0 %v8670_v2  ;;  %4454 = vmatpush1.bf16.msra.mxu1 %v8747_v44 }
 0x43e   :  { %4392 = vmatprep.subr.bf16.mxu0 %v8672_v45  ;;  %4456 = vmatprep.subr.bf16.mxu1 %v8673_v42 }
 0x441   :  { %4394 = vmatpush1.bf16.msra.mxu0 %v8674_v61  ;;  %4458 = vmatpush1.bf16.msra.mxu1 %v8817_v31 }
 0x442   :  { %4396 = vmatprep.subr.bf16.mxu0 %v8818_v58  ;;  %4460 = vmatprep.subr.bf16.mxu1 %v8819_v6  ;;  %v8829_v58 = vld [vmem:[#allocation137_spill] sm:$0xff] }
 0x443   :  { %v8830_v6 = vld [vmem:[#allocation5_spill] sm:$0xff] }
 0x445   :  { %4398 = vmatpush1.bf16.msra.mxu0 %v8820_v8  ;;  %4462 = vmatpush1.bf16.msra.mxu1 %v8821_v20  ;;  %v8831_v8 = vld [vmem:[#allocation10_spill] sm:$0xff]  ;;  %v8842_v20 = vld [vmem:[#allocation13_spill] sm:$0xff] }
 0x446   :  { %4400 = vmatprep.subr.bf16.mxu0 %v8822_v37  ;;  %4464 = vmatprep.subr.bf16.mxu1 %v8823_v17  ;;  %v8832_v17 = vld [vmem:[#allocation6_spill] sm:$0xff]  ;;  %v8841_v37 = vld [vmem:[#allocation19_spill] sm:$0xff] }
 0x449   :  { %4402 = vmatpush1.bf16.msra.mxu0 %v8824_v25  ;;  %4466 = vmatpush1.bf16.msra.mxu1 %v8825_v39  ;;  %v8833_v25 = vld [vmem:[#allocation11_spill] sm:$0xff] }
 0x44a   :  { %4404 = vmatprep.subr.bf16.mxu0 %v8826_v60  ;;  %4468 = vmatprep.subr.bf16.mxu1 %v8827_v9  ;;  %v8834_v39 = vld [vmem:[#allocation7_spill] sm:$0xff]  ;;  %v8835_v60 = vld [vmem:[#allocation14_spill] sm:$0xff]  ;;  %v8836_v9 = vld [vmem:[#allocation8_spill] sm:$0xff] }
 0x44d   :  { %4406 = vmatpush1.bf16.msra.mxu0 %v8828_v0  ;;  %4470 = vmatpush1.bf16.msra.mxu1 %v8829_v58  ;;  %v8837_v0 = vld [vmem:[#allocation15_spill] sm:$0xff]  ;;  %v8838_v58 = vld [vmem:[#allocation9_spill] sm:$0xff] }
 0x44e   :  { %4472 = vmatprep.subr.bf16.mxu0 %v8830_v6  ;;  %4536 = vmatprep.subr.bf16.mxu1 %v8831_v8  ;;  %v8839_v6 = vld [vmem:[#allocation17_spill] sm:$0xff]  ;;  %v8840_v8 = vld [vmem:[#allocation12_spill] sm:$0xff] }
 0x450   :  { %1652 = vmatmul.mubr.f32.vlgmr.msra.gmra.mrb[14].mxu0 %v7427_v5  ;;  %1723 = vmatmul.mubr.f32.vlgmr.msra.gmra.mrb[14].mxu1 %v7427_v5 }
 0x451   :  { %4474 = vmatpush1.bf16.msra.mxu0 %v8832_v17  ;;  %4538 = vmatpush1.bf16.msra.mxu1 %v8833_v25  ;;  %v8843_v17 = vld [vmem:[#allocation20_spill] sm:$0xff] }
 0x452   :  { %4476 = vmatprep.subr.bf16.mxu0 %v8834_v39  ;;  %4540 = vmatprep.subr.bf16.mxu1 %v8835_v60  ;;  %v8844_v25 = vld [vmem:[#allocation16_spill] sm:$0xff]  ;;  %v8845_v39 = vld [vmem:[#allocation23_spill] sm:$0xff]  ;;  %v8846_v60 = vld [vmem:[#allocation18_spill] sm:$0xff] }
 0x455   :  { %4478 = vmatpush1.bf16.msra.mxu0 %v8836_v9  ;;  %4542 = vmatpush1.bf16.msra.mxu1 %v8837_v0  ;;  %v8847_v9 = vld [vmem:[#allocation24_spill] sm:$0xff]  ;;  %v8848_v0 = vld [vmem:[#allocation21_spill] sm:$0xff] }
 0x456   :  { %4480 = vmatprep.subr.bf16.mxu0 %v8838_v58  ;;  %4544 = vmatprep.subr.bf16.mxu1 %v8839_v6  ;;  %v8849_v58 = vld [vmem:[#allocation27_spill] sm:$0xff]  ;;  %v8850_v6 = vld [vmem:[#allocation22_spill] sm:$0xff] }
 0x459   :  { %4482 = vmatpush1.bf16.msra.mxu0 %v8840_v8  ;;  %4546 = vmatpush1.bf16.msra.mxu1 %v8841_v37  ;;  %v8851_v8 = vld [vmem:[#allocation28_spill] sm:$0xff]  ;;  %v8852_v37 = vld [vmem:[#allocation25_spill] sm:$0xff] }
 0x45a   :  { %4484 = vmatprep.subr.bf16.mxu0 %v8842_v20  ;;  %4548 = vmatprep.subr.bf16.mxu1 %v8843_v17  ;;  %v8853_v20 = vld [vmem:[#allocation31_spill] sm:$0xff]  ;;  %v8854_v17 = vld [vmem:[#allocation26_spill] sm:$0xff] }
 0x45d   :  { %4486 = vmatpush1.bf16.msra.mxu0 %v8844_v25  ;;  %4550 = vmatpush1.bf16.msra.mxu1 %v8845_v39  ;;  %v8855_v25 = vld [vmem:[#allocation32_spill] sm:$0xff]  ;;  %v8856_v39 = vld [vmem:[#allocation29_spill] sm:$0xff] }
 0x45e   :  { %4488 = vmatprep.subr.bf16.mxu0 %v8846_v60  ;;  %4552 = vmatprep.subr.bf16.mxu1 %v8847_v9  ;;  %v8857_v60 = vld [vmem:[#allocation35_spill] sm:$0xff]  ;;  %v8858_v9 = vld [vmem:[#allocation30_spill] sm:$0xff] }
 0x461   :  { %4490 = vmatpush1.bf16.msra.mxu0 %v8848_v0  ;;  %4554 = vmatpush1.bf16.msra.mxu1 %v8849_v58  ;;  %v8859_v0 = vld [vmem:[#allocation36_spill] sm:$0xff]  ;;  %v8860_v58 = vld [vmem:[#allocation33_spill] sm:$0xff] }
 0x462   :  { %4492 = vmatprep.subr.bf16.mxu0 %v8850_v6  ;;  %4556 = vmatprep.subr.bf16.mxu1 %v8851_v8  ;;  %v8861_v6 = vld [vmem:[#allocation39_spill] sm:$0xff]  ;;  %v8862_v8 = vld [vmem:[#allocation34_spill] sm:$0xff] }
 0x465   :  { %4494 = vmatpush1.bf16.msra.mxu0 %v8852_v37  ;;  %4558 = vmatpush1.bf16.msra.mxu1 %v8853_v20  ;;  %v8863_v37 = vld [vmem:[#allocation40_spill] sm:$0xff]  ;;  %v8864_v20 = vld [vmem:[#allocation37_spill] sm:$0xff] }
 0x466   :  { %4496 = vmatprep.subr.bf16.mxu0 %v8854_v17  ;;  %4560 = vmatprep.subr.bf16.mxu1 %v8855_v25  ;;  %v8865_v17 = vld [vmem:[#allocation43_spill] sm:$0xff]  ;;  %v8866_v25 = vld [vmem:[#allocation38_spill] sm:$0xff] }
 0x469   :  { %4498 = vmatpush1.bf16.msra.mxu0 %v8856_v39  ;;  %4562 = vmatpush1.bf16.msra.mxu1 %v8857_v60  ;;  %v8867_v39 = vld [vmem:[#allocation44_spill] sm:$0xff]  ;;  %v8868_v60 = vld [vmem:[#allocation41_spill] sm:$0xff] }
 0x46a   :  { %4500 = vmatprep.subr.bf16.mxu0 %v8858_v9  ;;  %4564 = vmatprep.subr.bf16.mxu1 %v8859_v0  ;;  %v8869_v9 = vld [vmem:[#allocation47_spill] sm:$0xff]  ;;  %v8870_v0 = vld [vmem:[#allocation42_spill] sm:$0xff] }
 0x46d   :  { %4502 = vmatpush1.bf16.msra.mxu0 %v8860_v58  ;;  %4566 = vmatpush1.bf16.msra.mxu1 %v8861_v6  ;;  %v8871_v58 = vld [vmem:[#allocation48_spill] sm:$0xff]  ;;  %v8872_v6 = vld [vmem:[#allocation45_spill] sm:$0xff] }
 0x46e   :  { %4504 = vmatprep.subr.bf16.mxu0 %v8862_v8  ;;  %4568 = vmatprep.subr.bf16.mxu1 %v8863_v37  ;;  %v8873_v8 = vld [vmem:[#allocation51_spill] sm:$0xff]  ;;  %v8874_v37 = vld [vmem:[#allocation46_spill] sm:$0xff] }
 0x471   :  { %4506 = vmatpush1.bf16.msra.mxu0 %v8864_v20  ;;  %4570 = vmatpush1.bf16.msra.mxu1 %v8865_v17  ;;  %v8875_v20 = vld [vmem:[#allocation52_spill] sm:$0xff]  ;;  %v8876_v17 = vld [vmem:[#allocation49_spill] sm:$0xff] }
 0x472   :  { %4508 = vmatprep.subr.bf16.mxu0 %v8866_v25  ;;  %4572 = vmatprep.subr.bf16.mxu1 %v8867_v39  ;;  %v8877_v25 = vld [vmem:[#allocation55_spill] sm:$0xff]  ;;  %v8878_v39 = vld [vmem:[#allocation50_spill] sm:$0xff] }
 0x475   :  { %4510 = vmatpush1.bf16.msra.mxu0 %v8868_v60  ;;  %4574 = vmatpush1.bf16.msra.mxu1 %v8869_v9  ;;  %v8879_v60 = vld [vmem:[#allocation56_spill] sm:$0xff]  ;;  %v8880_v9 = vld [vmem:[#allocation53_spill] sm:$0xff] }
 0x476   :  { %4512 = vmatprep.subr.bf16.mxu0 %v8870_v0  ;;  %4576 = vmatprep.subr.bf16.mxu1 %v8871_v58  ;;  %v8881_v0 = vld [vmem:[#allocation59_spill] sm:$0xff]  ;;  %v8882_v58 = vld [vmem:[#allocation54_spill] sm:$0xff] }
 0x479   :  { %4514 = vmatpush1.bf16.msra.mxu0 %v8872_v6  ;;  %4578 = vmatpush1.bf16.msra.mxu1 %v8873_v8  ;;  %v8883_v6 = vld [vmem:[#allocation60_spill] sm:$0xff]  ;;  %v8884_v8 = vld [vmem:[#allocation57_spill] sm:$0xff] }
 0x47a   :  { %4516 = vmatprep.subr.bf16.mxu0 %v8874_v37  ;;  %4580 = vmatprep.subr.bf16.mxu1 %v8875_v20  ;;  %v8885_v37 = vld [vmem:[#allocation63_spill] sm:$0xff]  ;;  %v8886_v20 = vld [vmem:[#allocation58_spill] sm:$0xff] }
 0x47d   :  { %4518 = vmatpush1.bf16.msra.mxu0 %v8876_v17  ;;  %4582 = vmatpush1.bf16.msra.mxu1 %v8877_v25  ;;  %v8887_v17 = vld [vmem:[#allocation64_spill] sm:$0xff]  ;;  %v8888_v25 = vld [vmem:[#allocation61_spill] sm:$0xff] }
 0x47e   :  { %4520 = vmatprep.subr.bf16.mxu0 %v8878_v39  ;;  %4584 = vmatprep.subr.bf16.mxu1 %v8879_v60  ;;  %v8889_v39 = vld [vmem:[#allocation67_spill] sm:$0xff]  ;;  %v8890_v60 = vld [vmem:[#allocation62_spill] sm:$0xff] }
 0x481   :  { %4522 = vmatpush1.bf16.msra.mxu0 %v8880_v9  ;;  %4586 = vmatpush1.bf16.msra.mxu1 %v8881_v0  ;;  %v8891_v9 = vld [vmem:[#allocation68_spill] sm:$0xff]  ;;  %v8892_v0 = vld [vmem:[#allocation65_spill] sm:$0xff] }
 0x482   :  { %4524 = vmatprep.subr.bf16.mxu0 %v8882_v58  ;;  %4588 = vmatprep.subr.bf16.mxu1 %v8883_v6  ;;  %v8893_v58 = vld [vmem:[#allocation71_spill] sm:$0xff]  ;;  %v8894_v6 = vld [vmem:[#allocation66_spill] sm:$0xff] }
 0x485   :  { %4526 = vmatpush1.bf16.msra.mxu0 %v8884_v8  ;;  %4590 = vmatpush1.bf16.msra.mxu1 %v8885_v37  ;;  %v8895_v8 = vld [vmem:[#allocation72_spill] sm:$0xff] }
 0x486   :  { %4528 = vmatprep.subr.bf16.mxu0 %v8886_v20  ;;  %4592 = vmatprep.subr.bf16.mxu1 %v8887_v17  ;;  %v3379_v17 = vld [vmem:[%s8177_s0 + $0x30] sm:$0xff] }
 0x487   :  { %v1434_v20 = vunpack.c.l.bf16 %v3379_v17 }
 0x489   :  { %4530 = vmatpush1.bf16.msra.mxu0 %v8888_v25  ;;  %4594 = vmatpush1.bf16.msra.mxu1 %v8889_v39  ;;  %v1435_v25 = vunpack.c.h.bf16 %v3379_v17 }
 0x48a   :  { %4532 = vmatprep.subr.bf16.mxu0 %v8890_v60  ;;  %4596 = vmatprep.subr.bf16.mxu1 %v8891_v9  ;;  %v3380_v9 = vld [vmem:[%s8177_s0 + $0x38] sm:$0xff] }
 0x48b   :  { %v1437_v42 = vunpack.c.h.bf16 %v3380_v9  ;;  %v1436_v45 = vunpack.c.l.bf16 %v3380_v9 }
 0x48d   :  { %4534 = vmatpush1.bf16.msra.mxu0 %v8892_v0  ;;  %4598 = vmatpush1.bf16.msra.mxu1 %v8893_v58 }
 0x48e   :  { %4600 = vmatprep.subr.bf16.mxu0 %v8894_v6  ;;  %4664 = vmatprep.subr.bf16.mxu1 %v8895_v8 }
 0x4e3   :  { %v1511_v37 = vpop.f32.mrb[12].mxu0  ;;  %v1582_v39 = vpop.f32.mrb[12].mxu1 }
 0x4e4   :  { %v1729_v31 = vadd.f32 %v1511_v37, %v1434_v20  ;;  %v1513_v0 = vpop.f32.mrb[13].mxu0  ;;  %v1584_v60 = vpop.f32.mrb[13].mxu1  ;;  %v1731_v2 = vadd.f32 %v1582_v39, %v1436_v45 }
 0x4e5   :  { %v1730_v58 = vadd.f32 %v1513_v0, %v1435_v25  ;;  %v1732_v8 = vadd.f32 %v1584_v60, %v1437_v42  ;;  %v1793_v42 = vpop.permute.xlu1 %1792 }
 0x4e6   :  { %v3383_v61 = vmul.f32 -1.442695, %v1729_v31  ;;  %vm1794_vm14 = vcmp.eq.s32.totalorder %v1793_v42, 1  ;;  %v8901_v42 = vld [vmem:[#allocation114_spill] sm:$0xff] }
 0x4e7   :  { %v3384_v6 = vmul.f32 -1.442695, %v1730_v58  ;;  %v3385_v44 = vmul.f32 -1.442695, %v1732_v8 }
 0x4e8   :  { %5595 = vpow2.f32 %v3383_v61  ;;  %v8896_v61 = vld [vmem:[#allocation111_spill] sm:$0xff] }
 0x4e9   :  { %5597 = vpow2.f32 %v3384_v6 }
 0x4ea   :  { %5599 = vpow2.f32 %v3385_v44  ;;  %v3381_v44 = vld [vmem:[%s8178_s1 + $0x30] sm:$0xff] }
 0x4eb   :  { %5601 = vtanh.f32 %v1731_v2  ;;  %v1442_v8 = vunpack.c.h.bf16 %v3381_v44 }
 0x4f2   :  { %v5596_v17 = vpop.eup %5595 }
 0x4f3   :  { %v5598_v11 = vpop.eup %5597  ;;  %v1736_v21 = vadd.f32 1.0, %v5596_v17 }
 0x4f4   :  { %v1742_v20 = vadd.f32 1.0, %v5598_v11  ;;  %v5600_v37 = vpop.eup %5599 }
 0x4f5   :  { %5603 = vrcp.f32 %v1736_v21  ;;  %v5602_v15 = vpop.eup %5601  ;;  %v1749_v0 = vadd.f32 1.0, %v5600_v37 }
 0x4f6   :  { %5605 = vrcp.f32 %v1742_v20  ;;  %v3382_v20 = vld [vmem:[%s8178_s1 + $0x38] sm:$0xff] }
 0x4f7   :  { %5607 = vrcp.f32 %v1749_v0 }
 0x4ff   :  { %v5604_v25 = vpop.eup %5603 }
 0x500   :  { %v5606_v31 = vpop.eup %5605  ;;  %v1753_v58 = vmul.f32 %v5604_v25, %v5602_v15  ;;  %v1441_v15 = vunpack.c.l.bf16 %v3381_v44 }
 0x501   :  { %v1752_v6 = vmul.f32 %v5606_v31, %v8896_v61  ;;  %v5608_v2 = vpop.eup %5607 }
 0x503   :  { %v1754_v60 = vadd.f32 %v1753_v58, %v1752_v6 }
 0x505   :  { %5609 = vtanh.f32 %v1754_v60  ;;  %v7572_v45 = vsel %vm1794_vm14, %v1754_v60, %v8896_v61  ;;  %v1444_v61 = vunpack.c.h.bf16 %v3382_v20  ;;  %v1443_v60 = vunpack.c.l.bf16 %v3382_v20 }
 0x506   :  { %8897 = vst [vmem:[#allocation106_spill] sm:$0xff] %v7572_v45 }
 0x50f   :  { %v5610_v21 = vpop.eup %5609 }
 0x510   :  { %v1756_v11 = vmul.f32 %v5610_v21, %v5608_v2 }
 0x523   :  { %v1653_v39 = vpop.f32.mrb[14].mxu0  ;;  %v1724_v9 = vpop.f32.mrb[14].mxu1 }
 0x524   :  { %v1757_v17 = vadd.f32 %v1653_v39, %v1441_v15  ;;  %v1655_v37 = vpop.f32.mrb[15].mxu0  ;;  %v1726_v25 = vpop.f32.mrb[15].mxu1  ;;  %v1759_v21 = vadd.f32 %v1724_v9, %v1443_v60  ;;  %v8904_v60 = vld [vmem:[#allocation124_spill] sm:$0xff] }
 0x525   :  { %v1758_v31 = vadd.f32 %v1655_v37, %v1442_v8  ;;  %v1760_v6 = vadd.f32 %v1726_v25, %v1444_v61  ;;  %v1800_v25 = vpop.permute.xlu0 %1799 }
 0x526   :  { %v3386_v58 = vmul.f32 -1.442695, %v1757_v17  ;;  %vm1801_vm15 = vcmp.eq.s32.totalorder %v1800_v25, 1  ;;  %v8915_v25 = vld [vmem:[#allocation130_spill] sm:$0xff] }
 0x527   :  { %v3387_v0 = vmul.f32 -1.442695, %v1758_v31  ;;  %v3388_v2 = vmul.f32 -1.442695, %v1760_v6  ;;  %v8903_v6 = vld [vmem:[#allocation118_spill] sm:$0xff] }
 0x528   :  { %5611 = vpow2.f32 %v3386_v58 }
 0x529   :  { %5613 = vpow2.f32 %v3387_v0 }
 0x52a   :  { %5615 = vpow2.f32 %v3388_v2  ;;  %v8905_v2 = vld [vmem:[#allocation119_spill] sm:$0xff] }
 0x52b   :  { %5617 = vtanh.f32 %v1759_v21  ;;  %v8906_v21 = vld [vmem:[#allocation125_spill] sm:$0xff] }
 0x532   :  { %v5612_v44 = vpop.eup %5611 }
 0x533   :  { %v5614_v45 = vpop.eup %5613  ;;  %v1764_v3 = vadd.f32 1.0, %v5612_v44  ;;  %v8907_v44 = vld [vmem:[#allocation122_spill] sm:$0xff] }
 0x534   :  { %v1770_v15 = vadd.f32 1.0, %v5614_v45  ;;  %v5616_v39 = vpop.eup %5615 }
 0x535   :  { %5619 = vrcp.f32 %v1764_v3  ;;  %v5618_v49 = vpop.eup %5617  ;;  %v1777_v31 = vadd.f32 1.0, %v5616_v39  ;;  %v8909_v39 = vld [vmem:[#allocation123_spill] sm:$0xff] }
 0x536   :  { %5621 = vrcp.f32 %v1770_v15  ;;  %v8908_v15 = vld [vmem:[#allocation128_spill] sm:$0xff] }
 0x537   :  { %5623 = vrcp.f32 %v1777_v31  ;;  %v8913_v31 = vld [vmem:[#allocation127_spill] sm:$0xff] }
 0x53f   :  { %v5620_v8 = vpop.eup %5619 }
 0x540   :  { %v5622_v17 = vpop.eup %5621  ;;  %v1781_v37 = vmul.f32 %v5620_v8, %v5618_v49  ;;  %v7591_v49 = vsel %vm1794_vm14, %v1756_v11, %v7427_v5  ;;  %v8900_v5 = vld [vmem:[#allocation120_spill] sm:$0xff]  ;;  %v8902_v11 = vld [vmem:[#allocation121_spill] sm:$0xff] }
 0x541   :  { %v1780_v58 = vmul.f32 %v5622_v17, %v7418_v32  ;;  %v5624_v0 = vpop.eup %5623  ;;  %v8910_v8 = vld [vmem:[#allocation129_spill] sm:$0xff]  ;;  %v8911_v17 = vld [vmem:[#allocation126_spill] sm:$0xff] }
 0x543   :  { %v1782_v20 = vadd.f32 %v1781_v37, %v1780_v58  ;;  %v8912_v37 = vld [vmem:[#allocation132_spill] sm:$0xff]  ;;  %v8914_v58 = vld [vmem:[#allocation133_spill] sm:$0xff] }
 0x545   :  { %5625 = vtanh.f32 %v1782_v20  ;;  %v7582_v9 = vsel %vm1801_vm15, %v1782_v20, %v7418_v32  ;;  %v8898_v32 = vld [vmem:[#allocation117_spill] sm:$0xff]  ;;  %v8916_v20 = vld [vmem:[#allocation135_spill] sm:$0xff] }
 0x54f   :  { %v5626_v45 = vpop.eup %5625 }
 0x550   :  { %v1784_v3 = vmul.f32 %v5626_v45, %v5624_v0  ;;  %v8917_v0 = vld [vmem:[#allocation131_spill] sm:$0xff]  ;;  %v8918_v45 = vld [vmem:[#allocation136_spill] sm:$0xff] }
 0x552   :  { %v7585_v61 = vsel %vm1801_vm15, %v1784_v3, %v7421_v41  ;;  %v8899_v41 = vld [vmem:[#allocation113_spill] sm:$0xff]  ;;  %v8919_v3 = vld [vmem:[#allocation134_spill] sm:$0xff] }
 0x553   :  { %1891 = vmatprep.mubr.f32.mxu0 %v7585_v61  ;;  %1962 = vmatprep.mubr.f32.mxu1 %v7585_v61 }
 0x554   :  { %1892 = vmatmul.mubr.f32.vlgmr.msra.gmra.mrb[16].mxu0 %v7591_v49  ;;  %1963 = vmatmul.mubr.f32.vlgmr.msra.gmra.mrb[16].mxu1 %v7591_v49 }
 0x555   :  { %4602 = vmatpush1.bf16.msra.mxu0 %v8626_v62  ;;  %4666 = vmatpush1.bf16.msra.mxu1 %v8627_v7 }
 0x556   :  { %2033 = vmatprep.mubr.f32.mxu0 %v7585_v61  ;;  %2104 = vmatprep.mubr.f32.mxu1 %v7585_v61 }
 0x557   :  { %4604 = vmatprep.subr.bf16.mxu0 %v8628_v13  ;;  %4668 = vmatprep.subr.bf16.mxu1 %v8629_v40 }
 0x559   :  { %4606 = vmatpush1.bf16.msra.mxu0 %v8630_v54  ;;  %4670 = vmatpush1.bf16.msra.mxu1 %v8631_v18 }
 0x55a   :  { %4608 = vmatprep.subr.bf16.mxu0 %v8632_v50  ;;  %4672 = vmatprep.subr.bf16.mxu1 %v8714_v35 }
 0x55d   :  { %4610 = vmatpush1.bf16.msra.mxu0 %v8715_v51  ;;  %4674 = vmatpush1.bf16.msra.mxu1 %v8716_v23 }
 0x55e   :  { %4612 = vmatprep.subr.bf16.mxu0 %v8717_v24  ;;  %4676 = vmatprep.subr.bf16.mxu1 %v8718_v34 }
 0x561   :  { %4614 = vmatpush1.bf16.msra.mxu0 %v8719_v55  ;;  %4678 = vmatpush1.bf16.msra.mxu1 %v8720_v27 }
 0x562   :  { %4616 = vmatprep.subr.bf16.mxu0 %v8721_v19  ;;  %4680 = vmatprep.subr.bf16.mxu1 %v8722_v63 }
 0x565   :  { %4618 = vmatpush1.bf16.msra.mxu0 %v8723_v43  ;;  %4682 = vmatpush1.bf16.msra.mxu1 %v8724_v53 }
 0x566   :  { %4620 = vmatprep.subr.bf16.mxu0 %v8725_v28  ;;  %4684 = vmatprep.subr.bf16.mxu1 %v8726_v52 }
 0x569   :  { %4622 = vmatpush1.bf16.msra.mxu0 %v8807_v48  ;;  %4686 = vmatpush1.bf16.msra.mxu1 %v8808_v46 }
 0x56a   :  { %4624 = vmatprep.subr.bf16.mxu0 %v8809_v1  ;;  %4688 = vmatprep.subr.bf16.mxu1 %v8810_v33 }
 0x56d   :  { %4626 = vmatpush1.bf16.msra.mxu0 %v8811_v38  ;;  %4690 = vmatpush1.bf16.msra.mxu1 %v8812_v4 }
 0x56e   :  { %4628 = vmatprep.subr.bf16.mxu0 %v8813_v14  ;;  %4692 = vmatprep.subr.bf16.mxu1 %v8734_v30 }
 0x571   :  { %4630 = vmatpush1.bf16.msra.mxu0 %v8814_v22  ;;  %4694 = vmatpush1.bf16.msra.mxu1 %v8736_v26 }
 0x572   :  { %4632 = vmatprep.subr.bf16.mxu0 %v8737_v56  ;;  %4696 = vmatprep.subr.bf16.mxu1 %v8738_v10 }
 0x575   :  { %4634 = vmatpush1.bf16.msra.mxu0 %v8815_v12  ;;  %4698 = vmatpush1.bf16.msra.mxu1 %v8740_v36 }
 0x576   :  { %4636 = vmatprep.subr.bf16.mxu0 %v8816_v57  ;;  %4700 = vmatprep.subr.bf16.mxu1 %v8742_v59 }
 0x579   :  { %4638 = vmatpush1.bf16.msra.mxu0 %v8743_v47  ;;  %4702 = vmatpush1.bf16.msra.mxu1 %v8744_v16 }
 0x57a   :  { %4640 = vmatprep.subr.bf16.mxu0 %v8664_v29  ;;  %4704 = vmatprep.subr.bf16.mxu1 %v8898_v32 }
 0x57d   :  { %4642 = vmatpush1.bf16.msra.mxu0 %v8899_v41  ;;  %4706 = vmatpush1.bf16.msra.mxu1 %v8900_v5 }
 0x57e   :  { %4644 = vmatprep.subr.bf16.mxu0 %v8901_v42  ;;  %4708 = vmatprep.subr.bf16.mxu1 %v8902_v11 }
 0x581   :  { %4646 = vmatpush1.bf16.msra.mxu0 %v8903_v6  ;;  %4710 = vmatpush1.bf16.msra.mxu1 %v8904_v60 }
 0x582   :  { %4648 = vmatprep.subr.bf16.mxu0 %v8905_v2  ;;  %4712 = vmatprep.subr.bf16.mxu1 %v8906_v21 }
 0x585   :  { %4650 = vmatpush1.bf16.msra.mxu0 %v8907_v44  ;;  %4714 = vmatpush1.bf16.msra.mxu1 %v8908_v15 }
 0x586   :  { %4652 = vmatprep.subr.bf16.mxu0 %v8909_v39  ;;  %4716 = vmatprep.subr.bf16.mxu1 %v8910_v8  ;;  %v8920_v39 = vld [vmem:[#allocation137_spill] sm:$0xff] }
 0x587   :  { %v8921_v8 = vld [vmem:[#allocation5_spill] sm:$0xff] }
 0x589   :  { %4654 = vmatpush1.bf16.msra.mxu0 %v8911_v17  ;;  %4718 = vmatpush1.bf16.msra.mxu1 %v8912_v37  ;;  %v8922_v17 = vld [vmem:[#allocation10_spill] sm:$0xff]  ;;  %v8933_v37 = vld [vmem:[#allocation13_spill] sm:$0xff] }
 0x58a   :  { %4656 = vmatprep.subr.bf16.mxu0 %v8913_v31  ;;  %4720 = vmatprep.subr.bf16.mxu1 %v8914_v58  ;;  %v8923_v58 = vld [vmem:[#allocation6_spill] sm:$0xff]  ;;  %v8932_v31 = vld [vmem:[#allocation19_spill] sm:$0xff] }
 0x58d   :  { %4658 = vmatpush1.bf16.msra.mxu0 %v8915_v25  ;;  %4722 = vmatpush1.bf16.msra.mxu1 %v8916_v20  ;;  %v8924_v25 = vld [vmem:[#allocation11_spill] sm:$0xff] }
 0x58e   :  { %4660 = vmatprep.subr.bf16.mxu0 %v8917_v0  ;;  %4724 = vmatprep.subr.bf16.mxu1 %v8918_v45  ;;  %v8925_v20 = vld [vmem:[#allocation7_spill] sm:$0xff]  ;;  %v8926_v0 = vld [vmem:[#allocation14_spill] sm:$0xff]  ;;  %v8927_v45 = vld [vmem:[#allocation8_spill] sm:$0xff] }
 0x591   :  { %4662 = vmatpush1.bf16.msra.mxu0 %v8919_v3  ;;  %4726 = vmatpush1.bf16.msra.mxu1 %v8920_v39  ;;  %v8928_v3 = vld [vmem:[#allocation15_spill] sm:$0xff]  ;;  %v8929_v39 = vld [vmem:[#allocation9_spill] sm:$0xff] }
 0x592   :  { %4728 = vmatprep.subr.bf16.mxu0 %v8921_v8  ;;  %4792 = vmatprep.subr.bf16.mxu1 %v8922_v17  ;;  %v8930_v8 = vld [vmem:[#allocation17_spill] sm:$0xff]  ;;  %v8931_v17 = vld [vmem:[#allocation12_spill] sm:$0xff] }
 0x594   :  { %2034 = vmatmul.mubr.f32.vlgmr.msra.gmra.mrb[18].mxu0 %v7591_v49  ;;  %2105 = vmatmul.mubr.f32.vlgmr.msra.gmra.mrb[18].mxu1 %v7591_v49 }
 0x595   :  { %4730 = vmatpush1.bf16.msra.mxu0 %v8923_v58  ;;  %4794 = vmatpush1.bf16.msra.mxu1 %v8924_v25  ;;  %v8934_v58 = vld [vmem:[#allocation20_spill] sm:$0xff] }
 0x596   :  { %4732 = vmatprep.subr.bf16.mxu0 %v8925_v20  ;;  %4796 = vmatprep.subr.bf16.mxu1 %v8926_v0  ;;  %v8935_v25 = vld [vmem:[#allocation16_spill] sm:$0xff]  ;;  %v8936_v20 = vld [vmem:[#allocation23_spill] sm:$0xff]  ;;  %v8937_v0 = vld [vmem:[#allocation18_spill] sm:$0xff] }
 0x599   :  { %4734 = vmatpush1.bf16.msra.mxu0 %v8927_v45  ;;  %4798 = vmatpush1.bf16.msra.mxu1 %v8928_v3  ;;  %v8938_v45 = vld [vmem:[#allocation24_spill] sm:$0xff]  ;;  %v8939_v3 = vld [vmem:[#allocation21_spill] sm:$0xff] }
 0x59a   :  { %4736 = vmatprep.subr.bf16.mxu0 %v8929_v39  ;;  %4800 = vmatprep.subr.bf16.mxu1 %v8930_v8  ;;  %v8940_v39 = vld [vmem:[#allocation27_spill] sm:$0xff]  ;;  %v8941_v8 = vld [vmem:[#allocation22_spill] sm:$0xff] }
 0x59d   :  { %4738 = vmatpush1.bf16.msra.mxu0 %v8931_v17  ;;  %4802 = vmatpush1.bf16.msra.mxu1 %v8932_v31  ;;  %v8942_v17 = vld [vmem:[#allocation28_spill] sm:$0xff]  ;;  %v8943_v31 = vld [vmem:[#allocation25_spill] sm:$0xff] }
 0x59e   :  { %4740 = vmatprep.subr.bf16.mxu0 %v8933_v37  ;;  %4804 = vmatprep.subr.bf16.mxu1 %v8934_v58  ;;  %v8944_v37 = vld [vmem:[#allocation31_spill] sm:$0xff]  ;;  %v8945_v58 = vld [vmem:[#allocation26_spill] sm:$0xff] }
 0x5a1   :  { %4742 = vmatpush1.bf16.msra.mxu0 %v8935_v25  ;;  %4806 = vmatpush1.bf16.msra.mxu1 %v8936_v20  ;;  %v8946_v25 = vld [vmem:[#allocation32_spill] sm:$0xff]  ;;  %v8947_v20 = vld [vmem:[#allocation29_spill] sm:$0xff] }
 0x5a2   :  { %4744 = vmatprep.subr.bf16.mxu0 %v8937_v0  ;;  %4808 = vmatprep.subr.bf16.mxu1 %v8938_v45  ;;  %v8948_v0 = vld [vmem:[#allocation35_spill] sm:$0xff]  ;;  %v8949_v45 = vld [vmem:[#allocation30_spill] sm:$0xff] }
 0x5a5   :  { %4746 = vmatpush1.bf16.msra.mxu0 %v8939_v3  ;;  %4810 = vmatpush1.bf16.msra.mxu1 %v8940_v39  ;;  %v8950_v3 = vld [vmem:[#allocation36_spill] sm:$0xff]  ;;  %v8951_v39 = vld [vmem:[#allocation33_spill] sm:$0xff] }
 0x5a6   :  { %4748 = vmatprep.subr.bf16.mxu0 %v8941_v8  ;;  %4812 = vmatprep.subr.bf16.mxu1 %v8942_v17  ;;  %v8952_v8 = vld [vmem:[#allocation39_spill] sm:$0xff]  ;;  %v8953_v17 = vld [vmem:[#allocation34_spill] sm:$0xff] }
 0x5a9   :  { %4750 = vmatpush1.bf16.msra.mxu0 %v8943_v31  ;;  %4814 = vmatpush1.bf16.msra.mxu1 %v8944_v37  ;;  %v8954_v31 = vld [vmem:[#allocation40_spill] sm:$0xff]  ;;  %v8955_v37 = vld [vmem:[#allocation37_spill] sm:$0xff] }
 0x5aa   :  { %4752 = vmatprep.subr.bf16.mxu0 %v8945_v58  ;;  %4816 = vmatprep.subr.bf16.mxu1 %v8946_v25  ;;  %v8956_v58 = vld [vmem:[#allocation43_spill] sm:$0xff]  ;;  %v8957_v25 = vld [vmem:[#allocation38_spill] sm:$0xff] }
 0x5ad   :  { %4754 = vmatpush1.bf16.msra.mxu0 %v8947_v20  ;;  %4818 = vmatpush1.bf16.msra.mxu1 %v8948_v0  ;;  %v8958_v20 = vld [vmem:[#allocation44_spill] sm:$0xff]  ;;  %v8959_v0 = vld [vmem:[#allocation41_spill] sm:$0xff] }
 0x5ae   :  { %4756 = vmatprep.subr.bf16.mxu0 %v8949_v45  ;;  %4820 = vmatprep.subr.bf16.mxu1 %v8950_v3  ;;  %v8960_v45 = vld [vmem:[#allocation47_spill] sm:$0xff]  ;;  %v8961_v3 = vld [vmem:[#allocation42_spill] sm:$0xff] }
 0x5b1   :  { %4758 = vmatpush1.bf16.msra.mxu0 %v8951_v39  ;;  %4822 = vmatpush1.bf16.msra.mxu1 %v8952_v8  ;;  %v8962_v39 = vld [vmem:[#allocation48_spill] sm:$0xff]  ;;  %v8963_v8 = vld [vmem:[#allocation45_spill] sm:$0xff] }
 0x5b2   :  { %4760 = vmatprep.subr.bf16.mxu0 %v8953_v17  ;;  %4824 = vmatprep.subr.bf16.mxu1 %v8954_v31  ;;  %v8964_v17 = vld [vmem:[#allocation51_spill] sm:$0xff]  ;;  %v8965_v31 = vld [vmem:[#allocation46_spill] sm:$0xff] }
 0x5b5   :  { %4762 = vmatpush1.bf16.msra.mxu0 %v8955_v37  ;;  %4826 = vmatpush1.bf16.msra.mxu1 %v8956_v58  ;;  %v8966_v37 = vld [vmem:[#allocation52_spill] sm:$0xff]  ;;  %v8967_v58 = vld [vmem:[#allocation49_spill] sm:$0xff] }
 0x5b6   :  { %4764 = vmatprep.subr.bf16.mxu0 %v8957_v25  ;;  %4828 = vmatprep.subr.bf16.mxu1 %v8958_v20  ;;  %v8968_v25 = vld [vmem:[#allocation55_spill] sm:$0xff]  ;;  %v8969_v20 = vld [vmem:[#allocation50_spill] sm:$0xff] }
 0x5b9   :  { %4766 = vmatpush1.bf16.msra.mxu0 %v8959_v0  ;;  %4830 = vmatpush1.bf16.msra.mxu1 %v8960_v45  ;;  %v8970_v0 = vld [vmem:[#allocation56_spill] sm:$0xff]  ;;  %v8971_v45 = vld [vmem:[#allocation53_spill] sm:$0xff] }
 0x5ba   :  { %4768 = vmatprep.subr.bf16.mxu0 %v8961_v3  ;;  %4832 = vmatprep.subr.bf16.mxu1 %v8962_v39  ;;  %v8972_v3 = vld [vmem:[#allocation59_spill] sm:$0xff]  ;;  %v8973_v39 = vld [vmem:[#allocation54_spill] sm:$0xff] }
 0x5bd   :  { %4770 = vmatpush1.bf16.msra.mxu0 %v8963_v8  ;;  %4834 = vmatpush1.bf16.msra.mxu1 %v8964_v17  ;;  %v8974_v8 = vld [vmem:[#allocation60_spill] sm:$0xff]  ;;  %v8975_v17 = vld [vmem:[#allocation57_spill] sm:$0xff] }
 0x5be   :  { %4772 = vmatprep.subr.bf16.mxu0 %v8965_v31  ;;  %4836 = vmatprep.subr.bf16.mxu1 %v8966_v37  ;;  %v8976_v31 = vld [vmem:[#allocation63_spill] sm:$0xff]  ;;  %v8977_v37 = vld [vmem:[#allocation58_spill] sm:$0xff] }
 0x5c1   :  { %4774 = vmatpush1.bf16.msra.mxu0 %v8967_v58  ;;  %4838 = vmatpush1.bf16.msra.mxu1 %v8968_v25  ;;  %v8978_v58 = vld [vmem:[#allocation64_spill] sm:$0xff]  ;;  %v8979_v25 = vld [vmem:[#allocation61_spill] sm:$0xff] }
 0x5c2   :  { %4776 = vmatprep.subr.bf16.mxu0 %v8969_v20  ;;  %4840 = vmatprep.subr.bf16.mxu1 %v8970_v0  ;;  %v8980_v20 = vld [vmem:[#allocation67_spill] sm:$0xff]  ;;  %v8981_v0 = vld [vmem:[#allocation62_spill] sm:$0xff] }
 0x5c5   :  { %4778 = vmatpush1.bf16.msra.mxu0 %v8971_v45  ;;  %4842 = vmatpush1.bf16.msra.mxu1 %v8972_v3  ;;  %v8982_v45 = vld [vmem:[#allocation68_spill] sm:$0xff]  ;;  %v8983_v3 = vld [vmem:[#allocation65_spill] sm:$0xff] }
 0x5c6   :  { %4780 = vmatprep.subr.bf16.mxu0 %v8973_v39  ;;  %4844 = vmatprep.subr.bf16.mxu1 %v8974_v8  ;;  %v8984_v39 = vld [vmem:[#allocation71_spill] sm:$0xff]  ;;  %v8985_v8 = vld [vmem:[#allocation66_spill] sm:$0xff] }
 0x5c9   :  { %4782 = vmatpush1.bf16.msra.mxu0 %v8975_v17  ;;  %4846 = vmatpush1.bf16.msra.mxu1 %v8976_v31  ;;  %v8986_v17 = vld [vmem:[#allocation72_spill] sm:$0xff] }
 0x5ca   :  { %4784 = vmatprep.subr.bf16.mxu0 %v8977_v37  ;;  %4848 = vmatprep.subr.bf16.mxu1 %v8978_v58  ;;  %v3391_v58 = vld [vmem:[%s8177_s0 + $0x40] sm:$0xff] }
 0x5cb   :  { %v1816_v37 = vunpack.c.l.bf16 %v3391_v58 }
 0x5cd   :  { %4786 = vmatpush1.bf16.msra.mxu0 %v8979_v25  ;;  %4850 = vmatpush1.bf16.msra.mxu1 %v8980_v20  ;;  %v1817_v25 = vunpack.c.h.bf16 %v3391_v58 }
 0x5ce   :  { %4788 = vmatprep.subr.bf16.mxu0 %v8981_v0  ;;  %4852 = vmatprep.subr.bf16.mxu1 %v8982_v45  ;;  %v3392_v45 = vld [vmem:[%s8177_s0 + $0x48] sm:$0xff] }
 0x5cf   :  { %v1819_v21 = vunpack.c.h.bf16 %v3392_v45  ;;  %v1818_v2 = vunpack.c.l.bf16 %v3392_v45 }
 0x5d1   :  { %4790 = vmatpush1.bf16.msra.mxu0 %v8983_v3  ;;  %4854 = vmatpush1.bf16.msra.mxu1 %v8984_v39 }
 0x5d2   :  { %4856 = vmatprep.subr.bf16.mxu0 %v8985_v8  ;;  %4920 = vmatprep.subr.bf16.mxu1 %v8986_v17 }
 0x627   :  { %v1893_v31 = vpop.f32.mrb[16].mxu0  ;;  %v1964_v20 = vpop.f32.mrb[16].mxu1 }
 0x628   :  { %v2111_v15 = vadd.f32 %v1893_v31, %v1816_v37  ;;  %v1895_v3 = vpop.f32.mrb[17].mxu0  ;;  %v1966_v0 = vpop.f32.mrb[17].mxu1  ;;  %v2113_v6 = vadd.f32 %v1964_v20, %v1818_v2  ;;  %v3393_v2 = vld [vmem:[%s8178_s1 + $0x40] sm:$0xff] }
 0x629   :  { %v2112_v39 = vadd.f32 %v1895_v3, %v1817_v25  ;;  %v2114_v17 = vadd.f32 %v1966_v0, %v1819_v21  ;;  %v2175_v21 = vpop.permute.xlu1 %2174 }
 0x62a   :  { %v3395_v44 = vmul.f32 -1.442695, %v2111_v15  ;;  %vm2176_vm0 = vcmp.eq.s32.totalorder %v2175_v21, 1  ;;  %v8992_v21 = vld [vmem:[#allocation114_spill] sm:$0xff] }
 0x62b   :  { %v3396_v8 = vmul.f32 -1.442695, %v2112_v39  ;;  %v3397_v60 = vmul.f32 -1.442695, %v2114_v17  ;;  %v1824_v17 = vunpack.c.h.bf16 %v3393_v2 }
 0x62c   :  { %5627 = vpow2.f32 %v3395_v44  ;;  %v8987_v44 = vld [vmem:[#allocation106_spill] sm:$0xff] }
 0x62d   :  { %5629 = vpow2.f32 %v3396_v8 }
 0x62e   :  { %5631 = vpow2.f32 %v3397_v60 }
 0x62f   :  { %5633 = vtanh.f32 %v2113_v6 }
 0x636   :  { %v5628_v58 = vpop.eup %5627 }
 0x637   :  { %v5630_v11 = vpop.eup %5629  ;;  %v2118_v42 = vadd.f32 1.0, %v5628_v58 }
 0x638   :  { %v2124_v37 = vadd.f32 1.0, %v5630_v11  ;;  %v5632_v31 = vpop.eup %5631 }
 0x639   :  { %5635 = vrcp.f32 %v2118_v42  ;;  %v5634_v5 = vpop.eup %5633  ;;  %v2131_v3 = vadd.f32 1.0, %v5632_v31 }
 0x63a   :  { %5637 = vrcp.f32 %v2124_v37  ;;  %v3394_v37 = vld [vmem:[%s8178_s1 + $0x48] sm:$0xff] }
 0x63b   :  { %5639 = vrcp.f32 %v2131_v3 }
 0x643   :  { %v5636_v25 = vpop.eup %5635 }
 0x644   :  { %v5638_v15 = vpop.eup %5637  ;;  %v2135_v39 = vmul.f32 %v5636_v25, %v5634_v5  ;;  %v1823_v5 = vunpack.c.l.bf16 %v3393_v2 }
 0x645   :  { %v2134_v8 = vmul.f32 %v5638_v15, %v8987_v44  ;;  %v5640_v11 = vpop.eup %5639 }
 0x647   :  { %v2136_v0 = vadd.f32 %v2135_v39, %v2134_v8 }
 0x649   :  { %5641 = vtanh.f32 %v2136_v0  ;;  %v7736_v60 = vsel %vm2176_vm0, %v2136_v0, %v8987_v44  ;;  %v1826_v44 = vunpack.c.h.bf16 %v3394_v37  ;;  %v1825_v0 = vunpack.c.l.bf16 %v3394_v37 }
 0x64a   :  { %8988 = vst [vmem:[#allocation101_spill] sm:$0xff] %v7736_v60 }
 0x653   :  { %v5642_v42 = vpop.eup %5641 }
 0x654   :  { %v2138_v6 = vmul.f32 %v5642_v42, %v5640_v11 }
 0x667   :  { %v2035_v20 = vpop.f32.mrb[18].mxu0  ;;  %v2106_v45 = vpop.f32.mrb[18].mxu1 }
 0x668   :  { %v2139_v58 = vadd.f32 %v2035_v20, %v1823_v5  ;;  %v2037_v31 = vpop.f32.mrb[19].mxu0  ;;  %v2108_v25 = vpop.f32.mrb[19].mxu1  ;;  %v2141_v42 = vadd.f32 %v2106_v45, %v1825_v0  ;;  %v8995_v0 = vld [vmem:[#allocation124_spill] sm:$0xff] }
 0x669   :  { %v2140_v15 = vadd.f32 %v2037_v31, %v1824_v17  ;;  %v2142_v8 = vadd.f32 %v2108_v25, %v1826_v44  ;;  %v2182_v25 = vpop.permute.xlu0 %2181 }
 0x66a   :  { %v3398_v39 = vmul.f32 -1.442695, %v2139_v58  ;;  %vm2183_vm1 = vcmp.eq.s32.totalorder %v2182_v25, 1  ;;  %v9006_v25 = vld [vmem:[#allocation130_spill] sm:$0xff] }
 0x66b   :  { %v3399_v3 = vmul.f32 -1.442695, %v2140_v15  ;;  %v3400_v11 = vmul.f32 -1.442695, %v2142_v8  ;;  %v8994_v8 = vld [vmem:[#allocation118_spill] sm:$0xff] }
 0x66c   :  { %5643 = vpow2.f32 %v3398_v39 }
 0x66d   :  { %5645 = vpow2.f32 %v3399_v3 }
 0x66e   :  { %5647 = vpow2.f32 %v3400_v11  ;;  %v8996_v11 = vld [vmem:[#allocation119_spill] sm:$0xff] }
 0x66f   :  { %5649 = vtanh.f32 %v2141_v42  ;;  %v8997_v42 = vld [vmem:[#allocation125_spill] sm:$0xff] }
 0x676   :  { %v5644_v2 = vpop.eup %5643 }
 0x677   :  { %v5646_v60 = vpop.eup %5645  ;;  %v2146_v41 = vadd.f32 1.0, %v5644_v2  ;;  %v8998_v2 = vld [vmem:[#allocation122_spill] sm:$0xff] }
 0x678   :  { %v2152_v5 = vadd.f32 1.0, %v5646_v60  ;;  %v5648_v20 = vpop.eup %5647 }
 0x679   :  { %5651 = vrcp.f32 %v2146_v41  ;;  %v5650_v32 = vpop.eup %5649  ;;  %v2159_v15 = vadd.f32 1.0, %v5648_v20  ;;  %v9000_v20 = vld [vmem:[#allocation123_spill] sm:$0xff] }
 0x67a   :  { %5653 = vrcp.f32 %v2152_v5  ;;  %v8999_v5 = vld [vmem:[#allocation128_spill] sm:$0xff] }
 0x67b   :  { %5655 = vrcp.f32 %v2159_v15  ;;  %v9004_v15 = vld [vmem:[#allocation127_spill] sm:$0xff] }
 0x683   :  { %v5652_v17 = vpop.eup %5651 }
 0x684   :  { %v5654_v58 = vpop.eup %5653  ;;  %v2163_v31 = vmul.f32 %v5652_v17, %v5650_v32  ;;  %v7755_v32 = vsel %vm2176_vm0, %v2138_v6, %v7591_v49  ;;  %v8991_v49 = vld [vmem:[#allocation120_spill] sm:$0xff]  ;;  %v8993_v6 = vld [vmem:[#allocation121_spill] sm:$0xff] }
 0x685   :  { %v2162_v39 = vmul.f32 %v5654_v58, %v7582_v9  ;;  %v5656_v3 = vpop.eup %5655  ;;  %v9001_v17 = vld [vmem:[#allocation129_spill] sm:$0xff]  ;;  %v9002_v58 = vld [vmem:[#allocation126_spill] sm:$0xff] }
 0x687   :  { %v2164_v37 = vadd.f32 %v2163_v31, %v2162_v39  ;;  %v9003_v31 = vld [vmem:[#allocation132_spill] sm:$0xff]  ;;  %v9005_v39 = vld [vmem:[#allocation133_spill] sm:$0xff] }
 0x689   :  { %5657 = vtanh.f32 %v2164_v37  ;;  %v7746_v45 = vsel %vm2183_vm1, %v2164_v37, %v7582_v9  ;;  %v8989_v9 = vld [vmem:[#allocation117_spill] sm:$0xff]  ;;  %v9007_v37 = vld [vmem:[#allocation135_spill] sm:$0xff] }
 0x693   :  { %v5658_v60 = vpop.eup %5657 }
 0x694   :  { %v2166_v41 = vmul.f32 %v5658_v60, %v5656_v3  ;;  %v9008_v3 = vld [vmem:[#allocation131_spill] sm:$0xff]  ;;  %v9009_v60 = vld [vmem:[#allocation136_spill] sm:$0xff] }
 0x696   :  { %v7749_v44 = vsel %vm2183_vm1, %v2166_v41, %v7585_v61  ;;  %v8990_v61 = vld [vmem:[#allocation113_spill] sm:$0xff]  ;;  %v9010_v41 = vld [vmem:[#allocation134_spill] sm:$0xff] }
 0x697   :  { %2273 = vmatprep.mubr.f32.mxu0 %v7749_v44  ;;  %2344 = vmatprep.mubr.f32.mxu1 %v7749_v44 }
 0x698   :  { %2274 = vmatmul.mubr.f32.vlgmr.msra.gmra.mrb[20].mxu0 %v7755_v32  ;;  %2345 = vmatmul.mubr.f32.vlgmr.msra.gmra.mrb[20].mxu1 %v7755_v32 }
 0x699   :  { %4858 = vmatpush1.bf16.msra.mxu0 %v8626_v62  ;;  %4922 = vmatpush1.bf16.msra.mxu1 %v8627_v7 }
 0x69a   :  { %2415 = vmatprep.mubr.f32.mxu0 %v7749_v44  ;;  %2486 = vmatprep.mubr.f32.mxu1 %v7749_v44 }
 0x69b   :  { %4860 = vmatprep.subr.bf16.mxu0 %v8628_v13  ;;  %4924 = vmatprep.subr.bf16.mxu1 %v8629_v40 }
 0x69d   :  { %4862 = vmatpush1.bf16.msra.mxu0 %v8630_v54  ;;  %4926 = vmatpush1.bf16.msra.mxu1 %v8631_v18 }
 0x69e   :  { %4864 = vmatprep.subr.bf16.mxu0 %v8632_v50  ;;  %4928 = vmatprep.subr.bf16.mxu1 %v8714_v35 }
 0x6a1   :  { %4866 = vmatpush1.bf16.msra.mxu0 %v8715_v51  ;;  %4930 = vmatpush1.bf16.msra.mxu1 %v8716_v23 }
 0x6a2   :  { %4868 = vmatprep.subr.bf16.mxu0 %v8717_v24  ;;  %4932 = vmatprep.subr.bf16.mxu1 %v8718_v34 }
 0x6a5   :  { %4870 = vmatpush1.bf16.msra.mxu0 %v8719_v55  ;;  %4934 = vmatpush1.bf16.msra.mxu1 %v8720_v27 }
 0x6a6   :  { %4872 = vmatprep.subr.bf16.mxu0 %v8721_v19  ;;  %4936 = vmatprep.subr.bf16.mxu1 %v8722_v63 }
 0x6a9   :  { %4874 = vmatpush1.bf16.msra.mxu0 %v8723_v43  ;;  %4938 = vmatpush1.bf16.msra.mxu1 %v8724_v53 }
 0x6aa   :  { %4876 = vmatprep.subr.bf16.mxu0 %v8725_v28  ;;  %4940 = vmatprep.subr.bf16.mxu1 %v8726_v52 }
 0x6ad   :  { %4878 = vmatpush1.bf16.msra.mxu0 %v8807_v48  ;;  %4942 = vmatpush1.bf16.msra.mxu1 %v8808_v46 }
 0x6ae   :  { %4880 = vmatprep.subr.bf16.mxu0 %v8809_v1  ;;  %4944 = vmatprep.subr.bf16.mxu1 %v8810_v33 }
 0x6b1   :  { %4882 = vmatpush1.bf16.msra.mxu0 %v8811_v38  ;;  %4946 = vmatpush1.bf16.msra.mxu1 %v8812_v4 }
 0x6b2   :  { %4884 = vmatprep.subr.bf16.mxu0 %v8813_v14  ;;  %4948 = vmatprep.subr.bf16.mxu1 %v8734_v30 }
 0x6b5   :  { %4886 = vmatpush1.bf16.msra.mxu0 %v8814_v22  ;;  %4950 = vmatpush1.bf16.msra.mxu1 %v8736_v26 }
 0x6b6   :  { %4888 = vmatprep.subr.bf16.mxu0 %v8737_v56  ;;  %4952 = vmatprep.subr.bf16.mxu1 %v8738_v10 }
 0x6b9   :  { %4890 = vmatpush1.bf16.msra.mxu0 %v8815_v12  ;;  %4954 = vmatpush1.bf16.msra.mxu1 %v8740_v36 }
 0x6ba   :  { %4892 = vmatprep.subr.bf16.mxu0 %v8816_v57  ;;  %4956 = vmatprep.subr.bf16.mxu1 %v8742_v59 }
 0x6bd   :  { %4894 = vmatpush1.bf16.msra.mxu0 %v8743_v47  ;;  %4958 = vmatpush1.bf16.msra.mxu1 %v8744_v16 }
 0x6be   :  { %4896 = vmatprep.subr.bf16.mxu0 %v8664_v29  ;;  %4960 = vmatprep.subr.bf16.mxu1 %v8989_v9 }
 0x6c1   :  { %4898 = vmatpush1.bf16.msra.mxu0 %v8990_v61  ;;  %4962 = vmatpush1.bf16.msra.mxu1 %v8991_v49 }
 0x6c2   :  { %4900 = vmatprep.subr.bf16.mxu0 %v8992_v21  ;;  %4964 = vmatprep.subr.bf16.mxu1 %v8993_v6 }
 0x6c5   :  { %4902 = vmatpush1.bf16.msra.mxu0 %v8994_v8  ;;  %4966 = vmatpush1.bf16.msra.mxu1 %v8995_v0 }
 0x6c6   :  { %4904 = vmatprep.subr.bf16.mxu0 %v8996_v11  ;;  %4968 = vmatprep.subr.bf16.mxu1 %v8997_v42 }
 0x6c9   :  { %4906 = vmatpush1.bf16.msra.mxu0 %v8998_v2  ;;  %4970 = vmatpush1.bf16.msra.mxu1 %v8999_v5 }
 0x6ca   :  { %4908 = vmatprep.subr.bf16.mxu0 %v9000_v20  ;;  %4972 = vmatprep.subr.bf16.mxu1 %v9001_v17  ;;  %v9011_v20 = vld [vmem:[#allocation137_spill] sm:$0xff] }
 0x6cb   :  { %v9012_v17 = vld [vmem:[#allocation5_spill] sm:$0xff] }
 0x6cd   :  { %4910 = vmatpush1.bf16.msra.mxu0 %v9002_v58  ;;  %4974 = vmatpush1.bf16.msra.mxu1 %v9003_v31  ;;  %v9013_v58 = vld [vmem:[#allocation10_spill] sm:$0xff]  ;;  %v9024_v31 = vld [vmem:[#allocation13_spill] sm:$0xff] }
 0x6ce   :  { %4912 = vmatprep.subr.bf16.mxu0 %v9004_v15  ;;  %4976 = vmatprep.subr.bf16.mxu1 %v9005_v39  ;;  %v9014_v39 = vld [vmem:[#allocation6_spill] sm:$0xff]  ;;  %v9023_v15 = vld [vmem:[#allocation19_spill] sm:$0xff] }
 0x6d1   :  { %4914 = vmatpush1.bf16.msra.mxu0 %v9006_v25  ;;  %4978 = vmatpush1.bf16.msra.mxu1 %v9007_v37  ;;  %v9015_v25 = vld [vmem:[#allocation11_spill] sm:$0xff] }
 0x6d2   :  { %4916 = vmatprep.subr.bf16.mxu0 %v9008_v3  ;;  %4980 = vmatprep.subr.bf16.mxu1 %v9009_v60  ;;  %v9016_v37 = vld [vmem:[#allocation7_spill] sm:$0xff]  ;;  %v9017_v3 = vld [vmem:[#allocation14_spill] sm:$0xff]  ;;  %v9018_v60 = vld [vmem:[#allocation8_spill] sm:$0xff] }
 0x6d5   :  { %4918 = vmatpush1.bf16.msra.mxu0 %v9010_v41  ;;  %4982 = vmatpush1.bf16.msra.mxu1 %v9011_v20  ;;  %v9019_v41 = vld [vmem:[#allocation15_spill] sm:$0xff]  ;;  %v9020_v20 = vld [vmem:[#allocation9_spill] sm:$0xff] }
 0x6d6   :  { %4984 = vmatprep.subr.bf16.mxu0 %v9012_v17  ;;  %5048 = vmatprep.subr.bf16.mxu1 %v9013_v58  ;;  %v9021_v17 = vld [vmem:[#allocation17_spill] sm:$0xff]  ;;  %v9022_v58 = vld [vmem:[#allocation12_spill] sm:$0xff] }
 0x6d8   :  { %2416 = vmatmul.mubr.f32.vlgmr.msra.gmra.mrb[22].mxu0 %v7755_v32  ;;  %2487 = vmatmul.mubr.f32.vlgmr.msra.gmra.mrb[22].mxu1 %v7755_v32 }
 0x6d9   :  { %4986 = vmatpush1.bf16.msra.mxu0 %v9014_v39  ;;  %5050 = vmatpush1.bf16.msra.mxu1 %v9015_v25  ;;  %v9025_v39 = vld [vmem:[#allocation20_spill] sm:$0xff] }
 0x6da   :  { %4988 = vmatprep.subr.bf16.mxu0 %v9016_v37  ;;  %5052 = vmatprep.subr.bf16.mxu1 %v9017_v3  ;;  %v9026_v25 = vld [vmem:[#allocation16_spill] sm:$0xff]  ;;  %v9027_v37 = vld [vmem:[#allocation23_spill] sm:$0xff]  ;;  %v9028_v3 = vld [vmem:[#allocation18_spill] sm:$0xff] }
 0x6dd   :  { %4990 = vmatpush1.bf16.msra.mxu0 %v9018_v60  ;;  %5054 = vmatpush1.bf16.msra.mxu1 %v9019_v41  ;;  %v9029_v60 = vld [vmem:[#allocation24_spill] sm:$0xff]  ;;  %v9030_v41 = vld [vmem:[#allocation21_spill] sm:$0xff] }
 0x6de   :  { %4992 = vmatprep.subr.bf16.mxu0 %v9020_v20  ;;  %5056 = vmatprep.subr.bf16.mxu1 %v9021_v17  ;;  %v9031_v20 = vld [vmem:[#allocation27_spill] sm:$0xff]  ;;  %v9032_v17 = vld [vmem:[#allocation22_spill] sm:$0xff] }
 0x6e1   :  { %4994 = vmatpush1.bf16.msra.mxu0 %v9022_v58  ;;  %5058 = vmatpush1.bf16.msra.mxu1 %v9023_v15  ;;  %v9033_v58 = vld [vmem:[#allocation28_spill] sm:$0xff]  ;;  %v9034_v15 = vld [vmem:[#allocation25_spill] sm:$0xff] }
 0x6e2   :  { %4996 = vmatprep.subr.bf16.mxu0 %v9024_v31  ;;  %5060 = vmatprep.subr.bf16.mxu1 %v9025_v39  ;;  %v9035_v31 = vld [vmem:[#allocation31_spill] sm:$0xff]  ;;  %v9036_v39 = vld [vmem:[#allocation26_spill] sm:$0xff] }
 0x6e5   :  { %4998 = vmatpush1.bf16.msra.mxu0 %v9026_v25  ;;  %5062 = vmatpush1.bf16.msra.mxu1 %v9027_v37  ;;  %v9037_v25 = vld [vmem:[#allocation32_spill] sm:$0xff]  ;;  %v9038_v37 = vld [vmem:[#allocation29_spill] sm:$0xff] }
 0x6e6   :  { %5000 = vmatprep.subr.bf16.mxu0 %v9028_v3  ;;  %5064 = vmatprep.subr.bf16.mxu1 %v9029_v60  ;;  %v9039_v3 = vld [vmem:[#allocation35_spill] sm:$0xff]  ;;  %v9040_v60 = vld [vmem:[#allocation30_spill] sm:$0xff] }
 0x6e9   :  { %5002 = vmatpush1.bf16.msra.mxu0 %v9030_v41  ;;  %5066 = vmatpush1.bf16.msra.mxu1 %v9031_v20  ;;  %v9041_v41 = vld [vmem:[#allocation36_spill] sm:$0xff]  ;;  %v9042_v20 = vld [vmem:[#allocation33_spill] sm:$0xff] }
 0x6ea   :  { %5004 = vmatprep.subr.bf16.mxu0 %v9032_v17  ;;  %5068 = vmatprep.subr.bf16.mxu1 %v9033_v58  ;;  %v9043_v17 = vld [vmem:[#allocation39_spill] sm:$0xff]  ;;  %v9044_v58 = vld [vmem:[#allocation34_spill] sm:$0xff] }
 0x6ed   :  { %5006 = vmatpush1.bf16.msra.mxu0 %v9034_v15  ;;  %5070 = vmatpush1.bf16.msra.mxu1 %v9035_v31  ;;  %v9045_v15 = vld [vmem:[#allocation40_spill] sm:$0xff]  ;;  %v9046_v31 = vld [vmem:[#allocation37_spill] sm:$0xff] }
 0x6ee   :  { %5008 = vmatprep.subr.bf16.mxu0 %v9036_v39  ;;  %5072 = vmatprep.subr.bf16.mxu1 %v9037_v25  ;;  %v9047_v39 = vld [vmem:[#allocation43_spill] sm:$0xff]  ;;  %v9048_v25 = vld [vmem:[#allocation38_spill] sm:$0xff] }
 0x6f1   :  { %5010 = vmatpush1.bf16.msra.mxu0 %v9038_v37  ;;  %5074 = vmatpush1.bf16.msra.mxu1 %v9039_v3  ;;  %v9049_v37 = vld [vmem:[#allocation44_spill] sm:$0xff]  ;;  %v9050_v3 = vld [vmem:[#allocation41_spill] sm:$0xff] }
 0x6f2   :  { %5012 = vmatprep.subr.bf16.mxu0 %v9040_v60  ;;  %5076 = vmatprep.subr.bf16.mxu1 %v9041_v41  ;;  %v9051_v60 = vld [vmem:[#allocation47_spill] sm:$0xff]  ;;  %v9052_v41 = vld [vmem:[#allocation42_spill] sm:$0xff] }
 0x6f5   :  { %5014 = vmatpush1.bf16.msra.mxu0 %v9042_v20  ;;  %5078 = vmatpush1.bf16.msra.mxu1 %v9043_v17  ;;  %v9053_v20 = vld [vmem:[#allocation48_spill] sm:$0xff]  ;;  %v9054_v17 = vld [vmem:[#allocation45_spill] sm:$0xff] }
 0x6f6   :  { %5016 = vmatprep.subr.bf16.mxu0 %v9044_v58  ;;  %5080 = vmatprep.subr.bf16.mxu1 %v9045_v15  ;;  %v9055_v58 = vld [vmem:[#allocation51_spill] sm:$0xff]  ;;  %v9056_v15 = vld [vmem:[#allocation46_spill] sm:$0xff] }
 0x6f9   :  { %5018 = vmatpush1.bf16.msra.mxu0 %v9046_v31  ;;  %5082 = vmatpush1.bf16.msra.mxu1 %v9047_v39  ;;  %v9057_v31 = vld [vmem:[#allocation52_spill] sm:$0xff]  ;;  %v9058_v39 = vld [vmem:[#allocation49_spill] sm:$0xff] }
 0x6fa   :  { %5020 = vmatprep.subr.bf16.mxu0 %v9048_v25  ;;  %5084 = vmatprep.subr.bf16.mxu1 %v9049_v37  ;;  %v9059_v25 = vld [vmem:[#allocation55_spill] sm:$0xff]  ;;  %v9060_v37 = vld [vmem:[#allocation50_spill] sm:$0xff] }
 0x6fd   :  { %5022 = vmatpush1.bf16.msra.mxu0 %v9050_v3  ;;  %5086 = vmatpush1.bf16.msra.mxu1 %v9051_v60  ;;  %v9061_v3 = vld [vmem:[#allocation56_spill] sm:$0xff]  ;;  %v9062_v60 = vld [vmem:[#allocation53_spill] sm:$0xff] }
 0x6fe   :  { %5024 = vmatprep.subr.bf16.mxu0 %v9052_v41  ;;  %5088 = vmatprep.subr.bf16.mxu1 %v9053_v20  ;;  %v9063_v41 = vld [vmem:[#allocation59_spill] sm:$0xff]  ;;  %v9064_v20 = vld [vmem:[#allocation54_spill] sm:$0xff] }
 0x701   :  { %5026 = vmatpush1.bf16.msra.mxu0 %v9054_v17  ;;  %5090 = vmatpush1.bf16.msra.mxu1 %v9055_v58  ;;  %v9065_v17 = vld [vmem:[#allocation60_spill] sm:$0xff]  ;;  %v9066_v58 = vld [vmem:[#allocation57_spill] sm:$0xff] }
 0x702   :  { %5028 = vmatprep.subr.bf16.mxu0 %v9056_v15  ;;  %5092 = vmatprep.subr.bf16.mxu1 %v9057_v31  ;;  %v9067_v15 = vld [vmem:[#allocation63_spill] sm:$0xff]  ;;  %v9068_v31 = vld [vmem:[#allocation58_spill] sm:$0xff] }
 0x705   :  { %5030 = vmatpush1.bf16.msra.mxu0 %v9058_v39  ;;  %5094 = vmatpush1.bf16.msra.mxu1 %v9059_v25  ;;  %v9069_v39 = vld [vmem:[#allocation64_spill] sm:$0xff]  ;;  %v9070_v25 = vld [vmem:[#allocation61_spill] sm:$0xff] }
 0x706   :  { %5032 = vmatprep.subr.bf16.mxu0 %v9060_v37  ;;  %5096 = vmatprep.subr.bf16.mxu1 %v9061_v3  ;;  %v9071_v37 = vld [vmem:[#allocation67_spill] sm:$0xff]  ;;  %v9072_v3 = vld [vmem:[#allocation62_spill] sm:$0xff] }
 0x709   :  { %5034 = vmatpush1.bf16.msra.mxu0 %v9062_v60  ;;  %5098 = vmatpush1.bf16.msra.mxu1 %v9063_v41  ;;  %v9073_v60 = vld [vmem:[#allocation68_spill] sm:$0xff]  ;;  %v9074_v41 = vld [vmem:[#allocation65_spill] sm:$0xff] }
 0x70a   :  { %5036 = vmatprep.subr.bf16.mxu0 %v9064_v20  ;;  %5100 = vmatprep.subr.bf16.mxu1 %v9065_v17  ;;  %v9075_v20 = vld [vmem:[#allocation71_spill] sm:$0xff]  ;;  %v9076_v17 = vld [vmem:[#allocation66_spill] sm:$0xff] }
 0x70d   :  { %5038 = vmatpush1.bf16.msra.mxu0 %v9066_v58  ;;  %5102 = vmatpush1.bf16.msra.mxu1 %v9067_v15  ;;  %v9077_v58 = vld [vmem:[#allocation72_spill] sm:$0xff] }
 0x70e   :  { %5040 = vmatprep.subr.bf16.mxu0 %v9068_v31  ;;  %5104 = vmatprep.subr.bf16.mxu1 %v9069_v39  ;;  %v3403_v39 = vld [vmem:[%s8177_s0 + $0x50] sm:$0xff] }
 0x70f   :  { %v2198_v31 = vunpack.c.l.bf16 %v3403_v39 }
 0x711   :  { %5042 = vmatpush1.bf16.msra.mxu0 %v9070_v25  ;;  %5106 = vmatpush1.bf16.msra.mxu1 %v9071_v37  ;;  %v2199_v25 = vunpack.c.h.bf16 %v3403_v39 }
 0x712   :  { %5044 = vmatprep.subr.bf16.mxu0 %v9072_v3  ;;  %5108 = vmatprep.subr.bf16.mxu1 %v9073_v60  ;;  %v3404_v60 = vld [vmem:[%s8177_s0 + $0x58] sm:$0xff] }
 0x713   :  { %v2201_v42 = vunpack.c.h.bf16 %v3404_v60  ;;  %v2200_v11 = vunpack.c.l.bf16 %v3404_v60 }
 0x715   :  { %5046 = vmatpush1.bf16.msra.mxu0 %v9074_v41  ;;  %5110 = vmatpush1.bf16.msra.mxu1 %v9075_v20 }
 0x716   :  { %5112 = vmatprep.subr.bf16.mxu0 %v9076_v17  ;;  %5176 = vmatprep.subr.bf16.mxu1 %v9077_v58 }
 0x76b   :  { %v2275_v15 = vpop.f32.mrb[20].mxu0  ;;  %v2346_v37 = vpop.f32.mrb[20].mxu1 }
 0x76c   :  { %v2493_v5 = vadd.f32 %v2275_v15, %v2198_v31  ;;  %v2277_v41 = vpop.f32.mrb[21].mxu0  ;;  %v2348_v3 = vpop.f32.mrb[21].mxu1  ;;  %v2495_v8 = vadd.f32 %v2346_v37, %v2200_v11  ;;  %v3405_v11 = vld [vmem:[%s8178_s1 + $0x50] sm:$0xff] }
 0x76d   :  { %v2494_v20 = vadd.f32 %v2277_v41, %v2199_v25  ;;  %v2496_v58 = vadd.f32 %v2348_v3, %v2201_v42  ;;  %v2557_v42 = vpop.permute.xlu1 %2556 }
 0x76e   :  { %v3407_v2 = vmul.f32 -1.442695, %v2493_v5  ;;  %vm2558_vm2 = vcmp.eq.s32.totalorder %v2557_v42, 1  ;;  %v9083_v42 = vld [vmem:[#allocation114_spill] sm:$0xff] }
 0x76f   :  { %v3408_v17 = vmul.f32 -1.442695, %v2494_v20  ;;  %v3409_v0 = vmul.f32 -1.442695, %v2496_v58  ;;  %v2206_v58 = vunpack.c.h.bf16 %v3405_v11 }
 0x770   :  { %5659 = vpow2.f32 %v3407_v2  ;;  %v9078_v2 = vld [vmem:[#allocation101_spill] sm:$0xff] }
 0x771   :  { %5661 = vpow2.f32 %v3408_v17 }
 0x772   :  { %5663 = vpow2.f32 %v3409_v0 }
 0x773   :  { %5665 = vtanh.f32 %v2495_v8 }
 0x77a   :  { %v5660_v39 = vpop.eup %5659 }
 0x77b   :  { %v5662_v6 = vpop.eup %5661  ;;  %v2500_v21 = vadd.f32 1.0, %v5660_v39 }
 0x77c   :  { %v2506_v31 = vadd.f32 1.0, %v5662_v6  ;;  %v5664_v15 = vpop.eup %5663 }
 0x77d   :  { %5667 = vrcp.f32 %v2500_v21  ;;  %v5666_v49 = vpop.eup %5665  ;;  %v2513_v41 = vadd.f32 1.0, %v5664_v15 }
 0x77e   :  { %5669 = vrcp.f32 %v2506_v31  ;;  %v3406_v31 = vld [vmem:[%s8178_s1 + $0x58] sm:$0xff] }
 0x77f   :  { %5671 = vrcp.f32 %v2513_v41 }
 0x787   :  { %v5668_v25 = vpop.eup %5667 }
 0x788   :  { %v5670_v5 = vpop.eup %5669  ;;  %v2517_v20 = vmul.f32 %v5668_v25, %v5666_v49  ;;  %v2205_v49 = vunpack.c.l.bf16 %v3405_v11 }
 0x789   :  { %v2516_v17 = vmul.f32 %v5670_v5, %v9078_v2  ;;  %v5672_v6 = vpop.eup %5671 }
 0x78b   :  { %v2518_v3 = vadd.f32 %v2517_v20, %v2516_v17 }
 0x78d   :  { %5673 = vtanh.f32 %v2518_v3  ;;  %v7900_v0 = vsel %vm2558_vm2, %v2518_v3, %v9078_v2  ;;  %v2208_v2 = vunpack.c.h.bf16 %v3406_v31  ;;  %v2207_v3 = vunpack.c.l.bf16 %v3406_v31 }
 0x78e   :  { %9079 = vst [vmem:[#allocation96_spill] sm:$0xff] %v7900_v0 }
 0x797   :  { %v5674_v21 = vpop.eup %5673 }
 0x798   :  { %v2520_v8 = vmul.f32 %v5674_v21, %v5672_v6 }
 0x7ab   :  { %v2417_v37 = vpop.f32.mrb[22].mxu0  ;;  %v2488_v60 = vpop.f32.mrb[22].mxu1 }
 0x7ac   :  { %v2521_v39 = vadd.f32 %v2417_v37, %v2205_v49  ;;  %v2419_v15 = vpop.f32.mrb[23].mxu0  ;;  %v2490_v25 = vpop.f32.mrb[23].mxu1  ;;  %v2523_v21 = vadd.f32 %v2488_v60, %v2207_v3  ;;  %v9086_v3 = vld [vmem:[#allocation124_spill] sm:$0xff] }
 0x7ad   :  { %v2522_v5 = vadd.f32 %v2419_v15, %v2206_v58  ;;  %v2524_v17 = vadd.f32 %v2490_v25, %v2208_v2  ;;  %v2564_v25 = vpop.permute.xlu0 %2563 }
 0x7ae   :  { %v3410_v20 = vmul.f32 -1.442695, %v2521_v39  ;;  %vm2565_vm3 = vcmp.eq.s32.totalorder %v2564_v25, 1  ;;  %v9097_v25 = vld [vmem:[#allocation130_spill] sm:$0xff] }
 0x7af   :  { %v3411_v41 = vmul.f32 -1.442695, %v2522_v5  ;;  %v3412_v6 = vmul.f32 -1.442695, %v2524_v17  ;;  %v9085_v17 = vld [vmem:[#allocation118_spill] sm:$0xff] }
 0x7b0   :  { %5675 = vpow2.f32 %v3410_v20 }
 0x7b1   :  { %5677 = vpow2.f32 %v3411_v41 }
 0x7b2   :  { %5679 = vpow2.f32 %v3412_v6  ;;  %v9087_v6 = vld [vmem:[#allocation119_spill] sm:$0xff] }
 0x7b3   :  { %5681 = vtanh.f32 %v2523_v21  ;;  %v9088_v21 = vld [vmem:[#allocation125_spill] sm:$0xff] }
 0x7ba   :  { %v5676_v11 = vpop.eup %5675 }
 0x7bb   :  { %v5678_v0 = vpop.eup %5677  ;;  %v2528_v61 = vadd.f32 1.0, %v5676_v11  ;;  %v9089_v11 = vld [vmem:[#allocation122_spill] sm:$0xff] }
 0x7bc   :  { %v2534_v49 = vadd.f32 1.0, %v5678_v0  ;;  %v5680_v37 = vpop.eup %5679 }
 0x7bd   :  { %5683 = vrcp.f32 %v2528_v61  ;;  %v5682_v9 = vpop.eup %5681  ;;  %v2541_v5 = vadd.f32 1.0, %v5680_v37  ;;  %v9091_v37 = vld [vmem:[#allocation123_spill] sm:$0xff] }
 0x7be   :  { %5685 = vrcp.f32 %v2534_v49  ;;  %v9090_v49 = vld [vmem:[#allocation128_spill] sm:$0xff] }
 0x7bf   :  { %5687 = vrcp.f32 %v2541_v5  ;;  %v9095_v5 = vld [vmem:[#allocation127_spill] sm:$0xff] }
 0x7c7   :  { %v5684_v58 = vpop.eup %5683 }
 0x7c8   :  { %v5686_v39 = vpop.eup %5685  ;;  %v2545_v15 = vmul.f32 %v5684_v58, %v5682_v9  ;;  %v7919_v9 = vsel %vm2558_vm2, %v2520_v8, %v7755_v32  ;;  %v9082_v32 = vld [vmem:[#allocation120_spill] sm:$0xff]  ;;  %v9084_v8 = vld [vmem:[#allocation121_spill] sm:$0xff] }
 0x7c9   :  { %v2544_v20 = vmul.f32 %v5686_v39, %v7746_v45  ;;  %v5688_v41 = vpop.eup %5687  ;;  %v9092_v58 = vld [vmem:[#allocation129_spill] sm:$0xff]  ;;  %v9093_v39 = vld [vmem:[#allocation126_spill] sm:$0xff] }
 0x7cb   :  { %v2546_v31 = vadd.f32 %v2545_v15, %v2544_v20  ;;  %v9094_v15 = vld [vmem:[#allocation132_spill] sm:$0xff]  ;;  %v9096_v20 = vld [vmem:[#allocation133_spill] sm:$0xff] }
 0x7cd   :  { %5689 = vtanh.f32 %v2546_v31  ;;  %v7910_v60 = vsel %vm2565_vm3, %v2546_v31, %v7746_v45  ;;  %v9080_v45 = vld [vmem:[#allocation117_spill] sm:$0xff]  ;;  %v9098_v31 = vld [vmem:[#allocation135_spill] sm:$0xff] }
 0x7d7   :  { %v5690_v0 = vpop.eup %5689 }
 0x7d8   :  { %v2548_v61 = vmul.f32 %v5690_v0, %v5688_v41  ;;  %v9099_v41 = vld [vmem:[#allocation131_spill] sm:$0xff]  ;;  %v9100_v0 = vld [vmem:[#allocation136_spill] sm:$0xff] }
 0x7da   :  { %v7913_v2 = vsel %vm2565_vm3, %v2548_v61, %v7749_v44  ;;  %v9081_v44 = vld [vmem:[#allocation113_spill] sm:$0xff]  ;;  %v9101_v61 = vld [vmem:[#allocation134_spill] sm:$0xff] }
 0x7db   :  { %2655 = vmatprep.mubr.f32.mxu0 %v7913_v2  ;;  %2726 = vmatprep.mubr.f32.mxu1 %v7913_v2 }
 0x7dc   :  { %2656 = vmatmul.mubr.f32.vlgmr.msra.gmra.mrb[24].mxu0 %v7919_v9  ;;  %2727 = vmatmul.mubr.f32.vlgmr.msra.gmra.mrb[24].mxu1 %v7919_v9 }
 0x7dd   :  { %5114 = vmatpush1.bf16.msra.mxu0 %v8626_v62  ;;  %5178 = vmatpush1.bf16.msra.mxu1 %v8627_v7 }
 0x7de   :  { %2797 = vmatprep.mubr.f32.mxu0 %v7913_v2  ;;  %2868 = vmatprep.mubr.f32.mxu1 %v7913_v2 }
 0x7df   :  { %5116 = vmatprep.subr.bf16.mxu0 %v8628_v13  ;;  %5180 = vmatprep.subr.bf16.mxu1 %v8629_v40 }
 0x7e1   :  { %5118 = vmatpush1.bf16.msra.mxu0 %v8630_v54  ;;  %5182 = vmatpush1.bf16.msra.mxu1 %v8631_v18 }
 0x7e2   :  { %5120 = vmatprep.subr.bf16.mxu0 %v8632_v50  ;;  %5184 = vmatprep.subr.bf16.mxu1 %v8714_v35 }
 0x7e5   :  { %5122 = vmatpush1.bf16.msra.mxu0 %v8715_v51  ;;  %5186 = vmatpush1.bf16.msra.mxu1 %v8716_v23 }
 0x7e6   :  { %5124 = vmatprep.subr.bf16.mxu0 %v8717_v24  ;;  %5188 = vmatprep.subr.bf16.mxu1 %v8718_v34 }
 0x7e9   :  { %5126 = vmatpush1.bf16.msra.mxu0 %v8719_v55  ;;  %5190 = vmatpush1.bf16.msra.mxu1 %v8720_v27 }
 0x7ea   :  { %5128 = vmatprep.subr.bf16.mxu0 %v8721_v19  ;;  %5192 = vmatprep.subr.bf16.mxu1 %v8722_v63 }
 0x7ed   :  { %5130 = vmatpush1.bf16.msra.mxu0 %v8723_v43  ;;  %5194 = vmatpush1.bf16.msra.mxu1 %v8724_v53 }
 0x7ee   :  { %5132 = vmatprep.subr.bf16.mxu0 %v8725_v28  ;;  %5196 = vmatprep.subr.bf16.mxu1 %v8726_v52 }
 0x7f1   :  { %5134 = vmatpush1.bf16.msra.mxu0 %v8807_v48  ;;  %5198 = vmatpush1.bf16.msra.mxu1 %v8808_v46 }
 0x7f2   :  { %5136 = vmatprep.subr.bf16.mxu0 %v8809_v1  ;;  %5200 = vmatprep.subr.bf16.mxu1 %v8810_v33 }
 0x7f5   :  { %5138 = vmatpush1.bf16.msra.mxu0 %v8811_v38  ;;  %5202 = vmatpush1.bf16.msra.mxu1 %v8812_v4 }
 0x7f6   :  { %5140 = vmatprep.subr.bf16.mxu0 %v8813_v14  ;;  %5204 = vmatprep.subr.bf16.mxu1 %v8734_v30 }
 0x7f9   :  { %5142 = vmatpush1.bf16.msra.mxu0 %v8814_v22  ;;  %5206 = vmatpush1.bf16.msra.mxu1 %v8736_v26 }
 0x7fa   :  { %5144 = vmatprep.subr.bf16.mxu0 %v8737_v56  ;;  %5208 = vmatprep.subr.bf16.mxu1 %v8738_v10 }
 0x7fd   :  { %5146 = vmatpush1.bf16.msra.mxu0 %v8815_v12  ;;  %5210 = vmatpush1.bf16.msra.mxu1 %v8740_v36 }
 0x7fe   :  { %5148 = vmatprep.subr.bf16.mxu0 %v8816_v57  ;;  %5212 = vmatprep.subr.bf16.mxu1 %v8742_v59 }
 0x801   :  { %5150 = vmatpush1.bf16.msra.mxu0 %v8743_v47  ;;  %5214 = vmatpush1.bf16.msra.mxu1 %v8744_v16 }
 0x802   :  { %5152 = vmatprep.subr.bf16.mxu0 %v8664_v29  ;;  %5216 = vmatprep.subr.bf16.mxu1 %v9080_v45 }
 0x805   :  { %5154 = vmatpush1.bf16.msra.mxu0 %v9081_v44  ;;  %5218 = vmatpush1.bf16.msra.mxu1 %v9082_v32 }
 0x806   :  { %5156 = vmatprep.subr.bf16.mxu0 %v9083_v42  ;;  %5220 = vmatprep.subr.bf16.mxu1 %v9084_v8 }
 0x809   :  { %5158 = vmatpush1.bf16.msra.mxu0 %v9085_v17  ;;  %5222 = vmatpush1.bf16.msra.mxu1 %v9086_v3 }
 0x80a   :  { %5160 = vmatprep.subr.bf16.mxu0 %v9087_v6  ;;  %5224 = vmatprep.subr.bf16.mxu1 %v9088_v21 }
 0x80d   :  { %5162 = vmatpush1.bf16.msra.mxu0 %v9089_v11  ;;  %5226 = vmatpush1.bf16.msra.mxu1 %v9090_v49 }
 0x80e   :  { %5164 = vmatprep.subr.bf16.mxu0 %v9091_v37  ;;  %5228 = vmatprep.subr.bf16.mxu1 %v9092_v58  ;;  %v9102_v37 = vld [vmem:[#allocation137_spill] sm:$0xff] }
 0x80f   :  { %v9103_v58 = vld [vmem:[#allocation5_spill] sm:$0xff] }
 0x811   :  { %5166 = vmatpush1.bf16.msra.mxu0 %v9093_v39  ;;  %5230 = vmatpush1.bf16.msra.mxu1 %v9094_v15  ;;  %v9104_v39 = vld [vmem:[#allocation10_spill] sm:$0xff]  ;;  %v9115_v15 = vld [vmem:[#allocation13_spill] sm:$0xff] }
 0x812   :  { %5168 = vmatprep.subr.bf16.mxu0 %v9095_v5  ;;  %5232 = vmatprep.subr.bf16.mxu1 %v9096_v20  ;;  %v9105_v20 = vld [vmem:[#allocation6_spill] sm:$0xff]  ;;  %v9114_v5 = vld [vmem:[#allocation19_spill] sm:$0xff] }
 0x815   :  { %5170 = vmatpush1.bf16.msra.mxu0 %v9097_v25  ;;  %5234 = vmatpush1.bf16.msra.mxu1 %v9098_v31  ;;  %v9106_v25 = vld [vmem:[#allocation11_spill] sm:$0xff] }
 0x816   :  { %5172 = vmatprep.subr.bf16.mxu0 %v9099_v41  ;;  %5236 = vmatprep.subr.bf16.mxu1 %v9100_v0  ;;  %v9107_v31 = vld [vmem:[#allocation7_spill] sm:$0xff]  ;;  %v9108_v41 = vld [vmem:[#allocation14_spill] sm:$0xff]  ;;  %v9109_v0 = vld [vmem:[#allocation8_spill] sm:$0xff] }
 0x819   :  { %5174 = vmatpush1.bf16.msra.mxu0 %v9101_v61  ;;  %5238 = vmatpush1.bf16.msra.mxu1 %v9102_v37  ;;  %v9110_v61 = vld [vmem:[#allocation15_spill] sm:$0xff]  ;;  %v9111_v37 = vld [vmem:[#allocation9_spill] sm:$0xff] }
 0x81a   :  { %5240 = vmatprep.subr.bf16.mxu0 %v9103_v58  ;;  %5304 = vmatprep.subr.bf16.mxu1 %v9104_v39  ;;  %v9112_v58 = vld [vmem:[#allocation17_spill] sm:$0xff]  ;;  %v9113_v39 = vld [vmem:[#allocation12_spill] sm:$0xff] }
 0x81c   :  { %2798 = vmatmul.mubr.f32.vlgmr.msra.gmra.mrb[26].mxu0 %v7919_v9  ;;  %2869 = vmatmul.mubr.f32.vlgmr.msra.gmra.mrb[26].mxu1 %v7919_v9 }
 0x81d   :  { %5242 = vmatpush1.bf16.msra.mxu0 %v9105_v20  ;;  %5306 = vmatpush1.bf16.msra.mxu1 %v9106_v25  ;;  %v9116_v20 = vld [vmem:[#allocation20_spill] sm:$0xff] }
 0x81e   :  { %5244 = vmatprep.subr.bf16.mxu0 %v9107_v31  ;;  %5308 = vmatprep.subr.bf16.mxu1 %v9108_v41  ;;  %v9117_v25 = vld [vmem:[#allocation16_spill] sm:$0xff]  ;;  %v9118_v31 = vld [vmem:[#allocation23_spill] sm:$0xff]  ;;  %v9119_v41 = vld [vmem:[#allocation18_spill] sm:$0xff] }
 0x821   :  { %5246 = vmatpush1.bf16.msra.mxu0 %v9109_v0  ;;  %5310 = vmatpush1.bf16.msra.mxu1 %v9110_v61  ;;  %v9120_v0 = vld [vmem:[#allocation24_spill] sm:$0xff]  ;;  %v9121_v61 = vld [vmem:[#allocation21_spill] sm:$0xff] }
 0x822   :  { %5248 = vmatprep.subr.bf16.mxu0 %v9111_v37  ;;  %5312 = vmatprep.subr.bf16.mxu1 %v9112_v58  ;;  %v9122_v37 = vld [vmem:[#allocation27_spill] sm:$0xff]  ;;  %v9123_v58 = vld [vmem:[#allocation22_spill] sm:$0xff] }
 0x825   :  { %5250 = vmatpush1.bf16.msra.mxu0 %v9113_v39  ;;  %5314 = vmatpush1.bf16.msra.mxu1 %v9114_v5  ;;  %v9124_v39 = vld [vmem:[#allocation28_spill] sm:$0xff]  ;;  %v9125_v5 = vld [vmem:[#allocation25_spill] sm:$0xff] }
 0x826   :  { %5252 = vmatprep.subr.bf16.mxu0 %v9115_v15  ;;  %5316 = vmatprep.subr.bf16.mxu1 %v9116_v20  ;;  %v9126_v15 = vld [vmem:[#allocation31_spill] sm:$0xff]  ;;  %v9127_v20 = vld [vmem:[#allocation26_spill] sm:$0xff] }
 0x829   :  { %5254 = vmatpush1.bf16.msra.mxu0 %v9117_v25  ;;  %5318 = vmatpush1.bf16.msra.mxu1 %v9118_v31  ;;  %v9128_v25 = vld [vmem:[#allocation32_spill] sm:$0xff]  ;;  %v9129_v31 = vld [vmem:[#allocation29_spill] sm:$0xff] }
 0x82a   :  { %5256 = vmatprep.subr.bf16.mxu0 %v9119_v41  ;;  %5320 = vmatprep.subr.bf16.mxu1 %v9120_v0  ;;  %v9130_v41 = vld [vmem:[#allocation35_spill] sm:$0xff]  ;;  %v9131_v0 = vld [vmem:[#allocation30_spill] sm:$0xff] }
 0x82d   :  { %5258 = vmatpush1.bf16.msra.mxu0 %v9121_v61  ;;  %5322 = vmatpush1.bf16.msra.mxu1 %v9122_v37  ;;  %v9132_v61 = vld [vmem:[#allocation36_spill] sm:$0xff]  ;;  %v9133_v37 = vld [vmem:[#allocation33_spill] sm:$0xff] }
 0x82e   :  { %5260 = vmatprep.subr.bf16.mxu0 %v9123_v58  ;;  %5324 = vmatprep.subr.bf16.mxu1 %v9124_v39  ;;  %v9134_v58 = vld [vmem:[#allocation39_spill] sm:$0xff]  ;;  %v9135_v39 = vld [vmem:[#allocation34_spill] sm:$0xff] }
 0x831   :  { %5262 = vmatpush1.bf16.msra.mxu0 %v9125_v5  ;;  %5326 = vmatpush1.bf16.msra.mxu1 %v9126_v15  ;;  %v9136_v5 = vld [vmem:[#allocation40_spill] sm:$0xff]  ;;  %v9137_v15 = vld [vmem:[#allocation37_spill] sm:$0xff] }
 0x832   :  { %5264 = vmatprep.subr.bf16.mxu0 %v9127_v20  ;;  %5328 = vmatprep.subr.bf16.mxu1 %v9128_v25  ;;  %v9138_v20 = vld [vmem:[#allocation43_spill] sm:$0xff]  ;;  %v9139_v25 = vld [vmem:[#allocation38_spill] sm:$0xff] }
 0x835   :  { %5266 = vmatpush1.bf16.msra.mxu0 %v9129_v31  ;;  %5330 = vmatpush1.bf16.msra.mxu1 %v9130_v41  ;;  %v9140_v31 = vld [vmem:[#allocation44_spill] sm:$0xff]  ;;  %v9141_v41 = vld [vmem:[#allocation41_spill] sm:$0xff] }
 0x836   :  { %5268 = vmatprep.subr.bf16.mxu0 %v9131_v0  ;;  %5332 = vmatprep.subr.bf16.mxu1 %v9132_v61  ;;  %v9142_v0 = vld [vmem:[#allocation47_spill] sm:$0xff]  ;;  %v9143_v61 = vld [vmem:[#allocation42_spill] sm:$0xff] }
 0x839   :  { %5270 = vmatpush1.bf16.msra.mxu0 %v9133_v37  ;;  %5334 = vmatpush1.bf16.msra.mxu1 %v9134_v58  ;;  %v9144_v37 = vld [vmem:[#allocation48_spill] sm:$0xff]  ;;  %v9145_v58 = vld [vmem:[#allocation45_spill] sm:$0xff] }
 0x83a   :  { %5272 = vmatprep.subr.bf16.mxu0 %v9135_v39  ;;  %5336 = vmatprep.subr.bf16.mxu1 %v9136_v5  ;;  %v9146_v39 = vld [vmem:[#allocation51_spill] sm:$0xff]  ;;  %v9147_v5 = vld [vmem:[#allocation46_spill] sm:$0xff] }
 0x83d   :  { %5274 = vmatpush1.bf16.msra.mxu0 %v9137_v15  ;;  %5338 = vmatpush1.bf16.msra.mxu1 %v9138_v20  ;;  %v9148_v15 = vld [vmem:[#allocation52_spill] sm:$0xff]  ;;  %v9149_v20 = vld [vmem:[#allocation49_spill] sm:$0xff] }
 0x83e   :  { %5276 = vmatprep.subr.bf16.mxu0 %v9139_v25  ;;  %5340 = vmatprep.subr.bf16.mxu1 %v9140_v31  ;;  %v9150_v25 = vld [vmem:[#allocation55_spill] sm:$0xff]  ;;  %v9151_v31 = vld [vmem:[#allocation50_spill] sm:$0xff] }
 0x841   :  { %5278 = vmatpush1.bf16.msra.mxu0 %v9141_v41  ;;  %5342 = vmatpush1.bf16.msra.mxu1 %v9142_v0  ;;  %v9152_v41 = vld [vmem:[#allocation56_spill] sm:$0xff]  ;;  %v9153_v0 = vld [vmem:[#allocation53_spill] sm:$0xff] }
 0x842   :  { %5280 = vmatprep.subr.bf16.mxu0 %v9143_v61  ;;  %5344 = vmatprep.subr.bf16.mxu1 %v9144_v37  ;;  %v9154_v61 = vld [vmem:[#allocation59_spill] sm:$0xff]  ;;  %v9155_v37 = vld [vmem:[#allocation54_spill] sm:$0xff] }
 0x845   :  { %5282 = vmatpush1.bf16.msra.mxu0 %v9145_v58  ;;  %5346 = vmatpush1.bf16.msra.mxu1 %v9146_v39  ;;  %v9156_v58 = vld [vmem:[#allocation60_spill] sm:$0xff]  ;;  %v9157_v39 = vld [vmem:[#allocation57_spill] sm:$0xff] }
 0x846   :  { %5284 = vmatprep.subr.bf16.mxu0 %v9147_v5  ;;  %5348 = vmatprep.subr.bf16.mxu1 %v9148_v15  ;;  %v9158_v5 = vld [vmem:[#allocation63_spill] sm:$0xff]  ;;  %v9159_v15 = vld [vmem:[#allocation58_spill] sm:$0xff] }
 0x849   :  { %5286 = vmatpush1.bf16.msra.mxu0 %v9149_v20  ;;  %5350 = vmatpush1.bf16.msra.mxu1 %v9150_v25  ;;  %v9160_v20 = vld [vmem:[#allocation64_spill] sm:$0xff]  ;;  %v9161_v25 = vld [vmem:[#allocation61_spill] sm:$0xff] }
 0x84a   :  { %5288 = vmatprep.subr.bf16.mxu0 %v9151_v31  ;;  %5352 = vmatprep.subr.bf16.mxu1 %v9152_v41  ;;  %v9162_v31 = vld [vmem:[#allocation67_spill] sm:$0xff]  ;;  %v9163_v41 = vld [vmem:[#allocation62_spill] sm:$0xff] }
 0x84d   :  { %5290 = vmatpush1.bf16.msra.mxu0 %v9153_v0  ;;  %5354 = vmatpush1.bf16.msra.mxu1 %v9154_v61  ;;  %v9164_v0 = vld [vmem:[#allocation68_spill] sm:$0xff]  ;;  %v9165_v61 = vld [vmem:[#allocation65_spill] sm:$0xff] }
 0x84e   :  { %5292 = vmatprep.subr.bf16.mxu0 %v9155_v37  ;;  %5356 = vmatprep.subr.bf16.mxu1 %v9156_v58  ;;  %v9166_v37 = vld [vmem:[#allocation71_spill] sm:$0xff]  ;;  %v9167_v58 = vld [vmem:[#allocation66_spill] sm:$0xff] }
 0x851   :  { %5294 = vmatpush1.bf16.msra.mxu0 %v9157_v39  ;;  %5358 = vmatpush1.bf16.msra.mxu1 %v9158_v5  ;;  %v9168_v39 = vld [vmem:[#allocation72_spill] sm:$0xff]  ;;  %v3415_v5 = vld [vmem:[%s8177_s0 + $0x60] sm:$0xff] }
 0x852   :  { %5296 = vmatprep.subr.bf16.mxu0 %v9159_v15  ;;  %5360 = vmatprep.subr.bf16.mxu1 %v9160_v20  ;;  %v2580_v15 = vunpack.c.l.bf16 %v3415_v5  ;;  %v2581_v20 = vunpack.c.h.bf16 %v3415_v5 }
 0x855   :  { %5298 = vmatpush1.bf16.msra.mxu0 %v9161_v25  ;;  %5362 = vmatpush1.bf16.msra.mxu1 %v9162_v31 }
 0x856   :  { %5300 = vmatprep.subr.bf16.mxu0 %v9163_v41  ;;  %5364 = vmatprep.subr.bf16.mxu1 %v9164_v0  ;;  %v3416_v41 = vld [vmem:[%s8177_s0 + $0x68] sm:$0xff] }
 0x857   :  { %v2583_v21 = vunpack.c.h.bf16 %v3416_v41  ;;  %v2582_v6 = vunpack.c.l.bf16 %v3416_v41 }
 0x859   :  { %5302 = vmatpush1.bf16.msra.mxu0 %v9165_v61  ;;  %5366 = vmatpush1.bf16.msra.mxu1 %v9166_v37 }
 0x85a   :  { %5368 = vmatprep.subr.bf16.mxu0 %v9167_v58  ;;  %5432 = vmatprep.subr.bf16.mxu1 %v9168_v39 }
 0x8af   :  { %v2657_v25 = vpop.f32.mrb[24].mxu0  ;;  %v2728_v31 = vpop.f32.mrb[24].mxu1 }
 0x8b0   :  { %v2875_v49 = vadd.f32 %v2657_v25, %v2580_v15  ;;  %v2659_v0 = vpop.f32.mrb[25].mxu0  ;;  %v2730_v61 = vpop.f32.mrb[25].mxu1  ;;  %v2877_v17 = vadd.f32 %v2728_v31, %v2582_v6  ;;  %v3417_v6 = vld [vmem:[%s8178_s1 + $0x60] sm:$0xff] }
 0x8b1   :  { %v2876_v37 = vadd.f32 %v2659_v0, %v2581_v20  ;;  %v2878_v39 = vadd.f32 %v2730_v61, %v2583_v21  ;;  %v2939_v21 = vpop.permute.xlu1 %2938  ;;  %v2588_v31 = vunpack.c.h.bf16 %v3417_v6 }
 0x8b2   :  { %v3419_v11 = vmul.f32 -1.442695, %v2875_v49  ;;  %vm2940_vm4 = vcmp.eq.s32.totalorder %v2939_v21, 1 }
 0x8b3   :  { %v3420_v58 = vmul.f32 -1.442695, %v2876_v37  ;;  %v3421_v3 = vmul.f32 -1.442695, %v2878_v39 }
 0x8b4   :  { %5691 = vpow2.f32 %v3419_v11  ;;  %v9169_v11 = vld [vmem:[#allocation96_spill] sm:$0xff] }
 0x8b5   :  { %5693 = vpow2.f32 %v3420_v58 }
 0x8b6   :  { %5695 = vpow2.f32 %v3421_v3 }
 0x8b7   :  { %5697 = vtanh.f32 %v2877_v17 }
 0x8be   :  { %v5692_v5 = vpop.eup %5691 }
 0x8bf   :  { %v5694_v8 = vpop.eup %5693  ;;  %v2882_v42 = vadd.f32 1.0, %v5692_v5 }
 0x8c0   :  { %v2888_v15 = vadd.f32 1.0, %v5694_v8  ;;  %v5696_v25 = vpop.eup %5695 }
 0x8c1   :  { %5699 = vrcp.f32 %v2882_v42  ;;  %v5698_v32 = vpop.eup %5697  ;;  %v2895_v37 = vadd.f32 1.0, %v5696_v25 }
 0x8c2   :  { %5701 = vrcp.f32 %v2888_v15  ;;  %v3418_v15 = vld [vmem:[%s8178_s1 + $0x68] sm:$0xff] }
 0x8c3   :  { %5703 = vrcp.f32 %v2895_v37 }
 0x8cb   :  { %v5700_v20 = vpop.eup %5699 }
 0x8cc   :  { %v5702_v49 = vpop.eup %5701  ;;  %v2899_v0 = vmul.f32 %v5700_v20, %v5698_v32  ;;  %v2587_v32 = vunpack.c.l.bf16 %v3417_v6 }
 0x8cd   :  { %v2898_v58 = vmul.f32 %v5702_v49, %v9169_v11  ;;  %v5704_v8 = vpop.eup %5703 }
 0x8cf   :  { %v2900_v41 = vadd.f32 %v2899_v0, %v2898_v58 }
 0x8d1   :  { %5705 = vtanh.f32 %v2900_v41  ;;  %v8064_v3 = vsel %vm2940_vm4, %v2900_v41, %v9169_v11  ;;  %v2590_v11 = vunpack.c.h.bf16 %v3418_v15  ;;  %v2589_v41 = vunpack.c.l.bf16 %v3418_v15 }
 0x8d2   :  { %9170 = vst [vmem:[#allocation69_spill] sm:$0xff] %v8064_v3 }
 0x8db   :  { %v5706_v42 = vpop.eup %5705 }
 0x8dc   :  { %v2902_v17 = vmul.f32 %v5706_v42, %v5704_v8 }
 0x8ef   :  { %v2799_v61 = vpop.f32.mrb[26].mxu0  ;;  %v2870_v39 = vpop.f32.mrb[26].mxu1 }
 0x8f0   :  { %v2903_v5 = vadd.f32 %v2799_v61, %v2587_v32  ;;  %v2801_v25 = vpop.f32.mrb[27].mxu0  ;;  %v2872_v20 = vpop.f32.mrb[27].mxu1  ;;  %v2905_v42 = vadd.f32 %v2870_v39, %v2589_v41 }
 0x8f1   :  { %v2904_v49 = vadd.f32 %v2801_v25, %v2588_v31  ;;  %v2906_v58 = vadd.f32 %v2872_v20, %v2590_v11  ;;  %v2946_v20 = vpop.permute.xlu0 %2945 }
 0x8f2   :  { %v3422_v0 = vmul.f32 -1.442695, %v2903_v5  ;;  %vm2947_vm5 = vcmp.eq.s32.totalorder %v2946_v20, 1 }
 0x8f3   :  { %v3423_v37 = vmul.f32 -1.442695, %v2904_v49  ;;  %v3424_v8 = vmul.f32 -1.442695, %v2906_v58 }
 0x8f4   :  { %5707 = vpow2.f32 %v3422_v0 }
 0x8f5   :  { %5709 = vpow2.f32 %v3423_v37 }
 0x8f6   :  { %5711 = vpow2.f32 %v3424_v8 }
 0x8f7   :  { %5713 = vtanh.f32 %v2905_v42 }
 0x8fe   :  { %v5708_v6 = vpop.eup %5707 }
 0x8ff   :  { %v5710_v3 = vpop.eup %5709  ;;  %v2910_v44 = vadd.f32 1.0, %v5708_v6 }
 0x900   :  { %v2916_v32 = vadd.f32 1.0, %v5710_v3  ;;  %v5712_v61 = vpop.eup %5711 }
 0x901   :  { %5715 = vrcp.f32 %v2910_v44  ;;  %v5714_v45 = vpop.eup %5713  ;;  %v2923_v49 = vadd.f32 1.0, %v5712_v61  ;;  %v9194_v61 = vld [vmem:[#allocation69_spill] sm:$0xff] }
 0x902   :  { %5717 = vrcp.f32 %v2916_v32 }
 0x903   :  { %5719 = vrcp.f32 %v2923_v49  ;;  %v3321_v49 = vpop.permute.xlu0 %3320 }
 0x904   :  { %vm3322_vm6 = vcmp.eq.s32.totalorder %v3321_v49, 1 }
 0x90b   :  { %v5716_v31 = vpop.eup %5715 }
 0x90c   :  { %v5718_v5 = vpop.eup %5717  ;;  %v2927_v25 = vmul.f32 %v5716_v31, %v5714_v45  ;;  %v8083_v45 = vsel %vm2940_vm4, %v2902_v17, %v7919_v9 }
 0x90d   :  { %v2926_v0 = vmul.f32 %v5718_v5, %v7910_v60  ;;  %v5720_v37 = vpop.eup %5719 }
 0x90f   :  { %v2928_v15 = vadd.f32 %v2927_v25, %v2926_v0 }
 0x911   :  { %5721 = vtanh.f32 %v2928_v15  ;;  %v8074_v39 = vsel %vm2947_vm5, %v2928_v15, %v7910_v60 }
 0x91b   :  { %v5722_v3 = vpop.eup %5721 }
 0x91c   :  { %v2930_v44 = vmul.f32 %v5722_v3, %v5720_v37  ;;  %v3429_v37 = vld [vmem:[%s8178_s1 + $0x70] sm:$0xff] }
 0x91d   :  { %v2969_v3 = vunpack.c.l.bf16 %v3429_v37 }
 0x91e   :  { %v8077_v11 = vsel %vm2947_vm5, %v2930_v44, %v7913_v2  ;;  %v2970_v44 = vunpack.c.h.bf16 %v3429_v37 }
 0x91f   :  { %3037 = vmatprep.mubr.f32.mxu0 %v8077_v11  ;;  %3108 = vmatprep.mubr.f32.mxu1 %v8077_v11 }
 0x920   :  { %3038 = vmatmul.mubr.f32.vlgmr.msra.gmra.mrb[28].mxu0 %v8083_v45  ;;  %3109 = vmatmul.mubr.f32.vlgmr.msra.gmra.mrb[28].mxu1 %v8083_v45 }
 0x921   :  { %5370 = vmatpush1.bf16.msra.mxu0 %v8626_v62  ;;  %5434 = vmatpush1.bf16.msra.mxu1 %v8627_v7  ;;  %v9171_v62 = vld [vmem:[#allocation117_spill] sm:$0xff] }
 0x922   :  { %3179 = vmatprep.mubr.f32.mxu0 %v8077_v11  ;;  %3250 = vmatprep.mubr.f32.mxu1 %v8077_v11  ;;  %v9172_v7 = vld [vmem:[#allocation113_spill] sm:$0xff] }
 0x923   :  { %5372 = vmatprep.subr.bf16.mxu0 %v8628_v13  ;;  %5436 = vmatprep.subr.bf16.mxu1 %v8629_v40  ;;  %v9173_v13 = vld [vmem:[#allocation120_spill] sm:$0xff]  ;;  %v9174_v40 = vld [vmem:[#allocation114_spill] sm:$0xff] }
 0x925   :  { %5374 = vmatpush1.bf16.msra.mxu0 %v8630_v54  ;;  %5438 = vmatpush1.bf16.msra.mxu1 %v8631_v18  ;;  %v9175_v54 = vld [vmem:[#allocation121_spill] sm:$0xff]  ;;  %v9176_v18 = vld [vmem:[#allocation118_spill] sm:$0xff] }
 0x926   :  { %5376 = vmatprep.subr.bf16.mxu0 %v8632_v50  ;;  %5440 = vmatprep.subr.bf16.mxu1 %v8714_v35  ;;  %v9177_v50 = vld [vmem:[#allocation124_spill] sm:$0xff]  ;;  %v9178_v35 = vld [vmem:[#allocation119_spill] sm:$0xff] }
 0x929   :  { %5378 = vmatpush1.bf16.msra.mxu0 %v8715_v51  ;;  %5442 = vmatpush1.bf16.msra.mxu1 %v8716_v23  ;;  %v9179_v51 = vld [vmem:[#allocation125_spill] sm:$0xff]  ;;  %v9180_v23 = vld [vmem:[#allocation122_spill] sm:$0xff] }
 0x92a   :  { %5380 = vmatprep.subr.bf16.mxu0 %v8717_v24  ;;  %5444 = vmatprep.subr.bf16.mxu1 %v8718_v34  ;;  %v9182_v24 = vld [vmem:[#allocation123_spill] sm:$0xff]  ;;  %v9183_v34 = vld [vmem:[#allocation129_spill] sm:$0xff] }
 0x92d   :  { %5382 = vmatpush1.bf16.msra.mxu0 %v8719_v55  ;;  %5446 = vmatpush1.bf16.msra.mxu1 %v8720_v27  ;;  %v9184_v55 = vld [vmem:[#allocation126_spill] sm:$0xff]  ;;  %v9185_v27 = vld [vmem:[#allocation132_spill] sm:$0xff] }
 0x92e   :  { %5384 = vmatprep.subr.bf16.mxu0 %v8721_v19  ;;  %5448 = vmatprep.subr.bf16.mxu1 %v8722_v63  ;;  %v9186_v19 = vld [vmem:[#allocation127_spill] sm:$0xff]  ;;  %v9187_v63 = vld [vmem:[#allocation133_spill] sm:$0xff] }
 0x931   :  { %5386 = vmatpush1.bf16.msra.mxu0 %v8723_v43  ;;  %5450 = vmatpush1.bf16.msra.mxu1 %v8724_v53  ;;  %v9188_v43 = vld [vmem:[#allocation130_spill] sm:$0xff]  ;;  %v9189_v53 = vld [vmem:[#allocation135_spill] sm:$0xff] }
 0x932   :  { %5388 = vmatprep.subr.bf16.mxu0 %v8725_v28  ;;  %5452 = vmatprep.subr.bf16.mxu1 %v8726_v52  ;;  %v9190_v28 = vld [vmem:[#allocation131_spill] sm:$0xff]  ;;  %v9191_v52 = vld [vmem:[#allocation136_spill] sm:$0xff] }
 0x935   :  { %5390 = vmatpush1.bf16.msra.mxu0 %v8807_v48  ;;  %5454 = vmatpush1.bf16.msra.mxu1 %v8808_v46  ;;  %v3428_v48 = vld [vmem:[%s8177_s0 + $0x78] sm:$0xff] }
 0x936   :  { %5392 = vmatprep.subr.bf16.mxu0 %v8809_v1  ;;  %5456 = vmatprep.subr.bf16.mxu1 %v8810_v33 }
 0x939   :  { %5394 = vmatpush1.bf16.msra.mxu0 %v8811_v38  ;;  %5458 = vmatpush1.bf16.msra.mxu1 %v8812_v4 }
 0x93a   :  { %5396 = vmatprep.subr.bf16.mxu0 %v8813_v14  ;;  %5460 = vmatprep.subr.bf16.mxu1 %v8734_v30  ;;  %v2965_v14 = vunpack.c.h.bf16 %v3428_v48 }
 0x93d   :  { %5398 = vmatpush1.bf16.msra.mxu0 %v8814_v22  ;;  %5462 = vmatpush1.bf16.msra.mxu1 %v8736_v26 }
 0x93e   :  { %5400 = vmatprep.subr.bf16.mxu0 %v8737_v56  ;;  %5464 = vmatprep.subr.bf16.mxu1 %v8738_v10  ;;  %v9192_v10 = vld [vmem:[#allocation134_spill] sm:$0xff] }
 0x941   :  { %5402 = vmatpush1.bf16.msra.mxu0 %v8815_v12  ;;  %5466 = vmatpush1.bf16.msra.mxu1 %v8740_v36  ;;  %v9193_v36 = vld [vmem:[#allocation137_spill] sm:$0xff]  ;;  %v2964_v12 = vunpack.c.l.bf16 %v3428_v48 }
 0x942   :  { %5404 = vmatprep.subr.bf16.mxu0 %v8816_v57  ;;  %5468 = vmatprep.subr.bf16.mxu1 %v8742_v59  ;;  %v3427_v59 = vld [vmem:[%s8177_s0 + $0x70] sm:$0xff] }
 0x945   :  { %5406 = vmatpush1.bf16.msra.mxu0 %v8743_v47  ;;  %5470 = vmatpush1.bf16.msra.mxu1 %v8744_v16  ;;  %v2962_v47 = vunpack.c.l.bf16 %v3427_v59  ;;  %v2963_v16 = vunpack.c.h.bf16 %v3427_v59 }
 0x946   :  { %5408 = vmatprep.subr.bf16.mxu0 %v8664_v29  ;;  %5472 = vmatprep.subr.bf16.mxu1 %v9171_v62  ;;  %v9181_v29 = vld [vmem:[#allocation128_spill] sm:$0xff] }
 0x949   :  { %5410 = vmatpush1.bf16.msra.mxu0 %v9172_v7  ;;  %5474 = vmatpush1.bf16.msra.mxu1 %v9173_v13 }
 0x94a   :  { %5412 = vmatprep.subr.bf16.mxu0 %v9174_v40  ;;  %5476 = vmatprep.subr.bf16.mxu1 %v9175_v54  ;;  %v3430_v40 = vld [vmem:[%s8178_s1 + $0x78] sm:$0xff] }
 0x94d   :  { %5414 = vmatpush1.bf16.msra.mxu0 %v9176_v18  ;;  %5478 = vmatpush1.bf16.msra.mxu1 %v9177_v50 }
 0x94e   :  { %5416 = vmatprep.subr.bf16.mxu0 %v9178_v35  ;;  %5480 = vmatprep.subr.bf16.mxu1 %v9179_v51  ;;  %v2972_v51 = vunpack.c.h.bf16 %v3430_v40 }
 0x951   :  { %5418 = vmatpush1.bf16.msra.mxu0 %v9180_v23  ;;  %5482 = vmatpush1.bf16.msra.mxu1 %v9181_v29  ;;  %v2971_v29 = vunpack.c.l.bf16 %v3430_v40 }
 0x952   :  { %5420 = vmatprep.subr.bf16.mxu0 %v9182_v24  ;;  %5484 = vmatprep.subr.bf16.mxu1 %v9183_v34 }
 0x955   :  { %5422 = vmatpush1.bf16.msra.mxu0 %v9184_v55  ;;  %5486 = vmatpush1.bf16.msra.mxu1 %v9185_v27 }
 0x956   :  { %5424 = vmatprep.subr.bf16.mxu0 %v9186_v19  ;;  %5488 = vmatprep.subr.bf16.mxu1 %v9187_v63 }
 0x959   :  { %5426 = vmatpush1.bf16.msra.mxu0 %v9188_v43  ;;  %5490 = vmatpush1.bf16.msra.mxu1 %v9189_v53 }
 0x95a   :  { %5428 = vmatprep.subr.bf16.mxu0 %v9190_v28  ;;  %5492 = vmatprep.subr.bf16.mxu1 %v9191_v52 }
 0x95d   :  { %5430 = vmatpush1.bf16.msra.mxu0 %v9192_v10  ;;  %5494 = vmatpush1.bf16.msra.mxu1 %v9193_v36 }
 0x960   :  { %3180 = vmatmul.mubr.f32.vlgmr.msra.gmra.mrb[30].mxu0 %v8083_v45  ;;  %3251 = vmatmul.mubr.f32.vlgmr.msra.gmra.mrb[30].mxu1 %v8083_v45 }
 0x9f3   :  { %v3039_v30 = vpop.f32.mrb[28].mxu0  ;;  %v3110_v26 = vpop.f32.mrb[28].mxu1 }
 0x9f4   :  { %v3257_v56 = vadd.f32 %v3039_v30, %v2962_v47  ;;  %v3041_v46 = vpop.f32.mrb[29].mxu0  ;;  %v3112_v1 = vpop.f32.mrb[29].mxu1  ;;  %v3259_v60 = vadd.f32 %v3110_v26, %v2964_v12 }
 0x9f5   :  { %v3258_v33 = vadd.f32 %v3041_v46, %v2963_v16  ;;  %v3260_v22 = vadd.f32 %v3112_v1, %v2965_v14  ;;  %v3328_v30 = vpop.permute.xlu1 %3327 }
 0x9f6   :  { %v3431_v38 = vmul.f32 -1.442695, %v3257_v56  ;;  %vm3329_vm7 = vcmp.eq.s32.totalorder %v3328_v30, 1 }
 0x9f7   :  { %v3432_v4 = vmul.f32 -1.442695, %v3258_v33  ;;  %v3433_v57 = vmul.f32 -1.442695, %v3260_v22 }
 0x9f8   :  { %5723 = vpow2.f32 %v3431_v38 }
 0x9f9   :  { %5725 = vpow2.f32 %v3432_v4 }
 0x9fa   :  { %5727 = vpow2.f32 %v3433_v57 }
 0x9fb   :  { %5729 = vtanh.f32 %v3259_v60 }
 0xa02   :  { %v5724_v2 = vpop.eup %5723 }
 0xa03   :  { %v5726_v9 = vpop.eup %5725  ;;  %v3264_v21 = vadd.f32 1.0, %v5724_v2 }
 0xa04   :  { %v3270_v17 = vadd.f32 1.0, %v5726_v9  ;;  %v5728_v58 = vpop.eup %5727 }
 0xa05   :  { %5731 = vrcp.f32 %v3264_v21  ;;  %v5730_v41 = vpop.eup %5729  ;;  %v3277_v32 = vadd.f32 1.0, %v5728_v58 }
 0xa06   :  { %5733 = vrcp.f32 %v3270_v17 }
 0xa07   :  { %5735 = vrcp.f32 %v3277_v32 }
 0xa0f   :  { %v5732_v8 = vpop.eup %5731 }
 0xa10   :  { %v5734_v42 = vpop.eup %5733  ;;  %v3281_v6 = vmul.f32 %v5732_v8, %v5730_v41 }
 0xa11   :  { %v3280_v31 = vmul.f32 %v5734_v42, %v9194_v61  ;;  %v5736_v25 = vpop.eup %5735 }
 0xa13   :  { %v3282_v5 = vadd.f32 %v3281_v6, %v3280_v31 }
 0xa15   :  { %5737 = vtanh.f32 %v3282_v5 }
 0xa1f   :  { %v5738_v0 = vpop.eup %5737 }
 0xa20   :  { %v3284_v20 = vmul.f32 %v5738_v0, %v5736_v25 }
 0xa22   :  { %v3323_v15 = vsel %vm3322_vm6, %v3284_v20, %v8083_v45 }
 0xa23   :  { %3341 = vst [vmem:[%s8179_s4] sm:$0xff] %v3323_v15 }
 0xa33   :  { %v3181_v62 = vpop.f32.mrb[30].mxu0  ;;  %v3252_v7 = vpop.f32.mrb[30].mxu1 }
 0xa34   :  { %v3285_v13 = vadd.f32 %v3181_v62, %v2969_v3  ;;  %v3183_v54 = vpop.f32.mrb[31].mxu0  ;;  %v3254_v18 = vpop.f32.mrb[31].mxu1  ;;  %v3287_v34 = vadd.f32 %v3252_v7, %v2971_v29 }
 0xa35   :  { %v3286_v45 = vadd.f32 %v3183_v54, %v2970_v44  ;;  %v3288_v23 = vadd.f32 %v3254_v18, %v2972_v51 }
 0xa36   :  { %v3434_v50 = vmul.f32 -1.442695, %v3285_v13 }
 0xa37   :  { %v3435_v35 = vmul.f32 -1.442695, %v3286_v45  ;;  %v3436_v24 = vmul.f32 -1.442695, %v3288_v23 }
 0xa38   :  { %5739 = vpow2.f32 %v3434_v50 }
 0xa39   :  { %5741 = vpow2.f32 %v3435_v35 }
 0xa3a   :  { %5743 = vpow2.f32 %v3436_v24 }
 0xa3b   :  { %5745 = vtanh.f32 %v3287_v34 }
 0xa42   :  { %v5740_v55 = vpop.eup %5739 }
 0xa43   :  { %v5742_v27 = vpop.eup %5741  ;;  %v3292_v19 = vadd.f32 1.0, %v5740_v55 }
 0xa44   :  { %v3298_v63 = vadd.f32 1.0, %v5742_v27  ;;  %v5744_v43 = vpop.eup %5743 }
 0xa45   :  { %5747 = vrcp.f32 %v3292_v19  ;;  %v5746_v53 = vpop.eup %5745  ;;  %v3305_v36 = vadd.f32 1.0, %v5744_v43 }
 0xa46   :  { %5749 = vrcp.f32 %v3298_v63 }
 0xa47   :  { %5751 = vrcp.f32 %v3305_v36 }
 0xa4f   :  { %v5748_v28 = vpop.eup %5747 }
 0xa50   :  { %v5750_v52 = vpop.eup %5749  ;;  %v3309_v10 = vmul.f32 %v5748_v28, %v5746_v53 }
 0xa51   :  { %v3308_v59 = vmul.f32 %v5750_v52, %v8074_v39  ;;  %v5752_v16 = vpop.eup %5751 }
 0xa53   :  { %v3310_v47 = vadd.f32 %v3309_v10, %v3308_v59 }
 0xa55   :  { %5753 = vtanh.f32 %v3310_v47 }
 0xa5f   :  { %v5754_v26 = vpop.eup %5753 }
 0xa60   :  { %v3312_v56 = vmul.f32 %v5754_v26, %v5752_v16 }
 0xa62   :  { %v3330_v48 = vsel %vm3329_vm7, %v3312_v56, %v8077_v11 }
 0xa63   :  { %3342 = vst [vmem:[%s8179_s4 + $0x8] sm:$0xff] %v3330_v48 }

</bundles_post_ra>
